<compile_context>
chip_gen: v7x
topology: tpu7x:2x2x1
jax: 0.10.0
libtpu: 0.0.40
codegen_flags: <defaults>
</compile_context>

<pallas_src>
import functools
import math

import jax
import jax.numpy as jnp
from jax import lax
from jax.experimental import pallas as pl
from jax.experimental.pallas import tpu as pltpu

PAD = 0          # SemanticElementType.PAD
LN_EPS = 1e-6

# contract last dims of both operands: A @ B^T without materializing B^T
_DN_T = (((1,), (1,)), ((), ()))


def _row_tile(m, target=256):
    """Largest divisor of m that is <= target.

    Keeps BlockSpecs divisor-clean and bounds per-step VMEM (target chosen so a
    (tile, S) f32 score block stays far under v7x's 64 MiB even double-buffered)."""
    t = max(1, min(m, target))
    while m % t:
        t -= 1
    return t


def _ln(y, g, b, eps):
    mu = jnp.mean(y, axis=-1, keepdims=True)
    var = jnp.mean((y - mu) ** 2, axis=-1, keepdims=True)
    return (y - mu) * lax.rsqrt(var + eps) * g + b


# ----------------------------------------------------------------------------- kernels

def _attn_ln_kernel(xq_ref, xkv_ref, bias_ref, wq_ref, bq_ref, wkv_ref, bkv_ref,
                    wo_ref, bo_ref, g_ref, be_ref, g0_ref, b0_ref, o_ref,
                    *, n_head, d_k, d_v, scale, eps, input_ln):
    # Fused: [optional post-embedding LayerNorm] -> Q / fused-KV projection ->
    # multi-head attention -> single fused output projection -> residual -> LayerNorm.
    if input_ln:
        xq = _ln(xq_ref[0].astype(jnp.float32), g0_ref[...], b0_ref[...], eps)
        xkv = _ln(xkv_ref[0].astype(jnp.float32), g0_ref[...], b0_ref[...], eps)
        res = xq                                            # residual = LN(embed)
        xq_b, xkv_b = xq.astype(jnp.bfloat16), xkv.astype(jnp.bfloat16)
    else:
        xq_b, xkv_b = xq_ref[0], xkv_ref[0]                 # bf16 (TQ, D) / (S, D)
        res = xq_b.astype(jnp.float32)

    q = jnp.dot(xq_b, wq_ref[...], preferred_element_type=jnp.float32) + bq_ref[...]
    kv = jnp.dot(xkv_b, wkv_ref[...], preferred_element_type=jnp.float32) + bkv_ref[...]
    k, v = kv[:, :n_head * d_k], kv[:, n_head * d_k:]
    bias = bias_ref[0]                                      # (1, S) additive pad bias

    heads = []
    for h in range(n_head):                                 # static unroll over heads
        qh = q[:, h * d_k:(h + 1) * d_k].astype(jnp.bfloat16)      # (TQ, dk)
        kh = k[:, h * d_k:(h + 1) * d_k].astype(jnp.bfloat16)      # (S,  dk)
        vh = v[:, h * d_v:(h + 1) * d_v].astype(jnp.bfloat16)      # (S,  dv)
        s = lax.dot_general(qh, kh, _DN_T,
                            preferred_element_type=jnp.float32) * scale + bias
        s = s - jnp.max(s, axis=-1, keepdims=True)
        p = jnp.exp(s)
        p = p * pl.reciprocal(jnp.sum(p, axis=-1, keepdims=True), approx=True)
        heads.append(jnp.dot(p.astype(jnp.bfloat16), vh,
                             preferred_element_type=jnp.float32))  # (TQ, dv)

    o = jnp.concatenate(heads, axis=-1).astype(jnp.bfloat16)       # (TQ, H*dv)
    y = jnp.dot(o, wo_ref[...], preferred_element_type=jnp.float32) + bo_ref[...] + res
    o_ref[0] = _ln(y, g_ref[...], be_ref[...], eps).astype(o_ref.dtype)


def _ffn_ln_kernel(x_ref, w1_ref, b1_ref, w2_ref, b2_ref, g_ref, be_ref, o_ref, *, eps):
    x = x_ref[0]                                            # (TS, D) bf16
    h = jnp.dot(x, w1_ref[...], preferred_element_type=jnp.float32) + b1_ref[...]
    h = jnp.maximum(h, 0.0)
    y = jnp.dot(h.astype(jnp.bfloat16), w2_ref[...],
                preferred_element_type=jnp.float32) + b2_ref[...]
    y = y + x.astype(jnp.float32)                           # residual
    o_ref[0] = _ln(y, g_ref[...], be_ref[...], eps).astype(o_ref.dtype)


def _jointer_kernel(s_ref, t_ref, ms_ref, mt_ref, o_ref, *, scale, triu, ts):
    src = s_ref[0]                                          # (TS, D) bf16
    tar = t_ref[0]                                          # (S,  D) bf16
    sim = jax.nn.sigmoid(
        lax.dot_general(src, tar, _DN_T, preferred_element_type=jnp.float32) * scale)
    msk = ms_ref[0] * mt_ref[0]                             # (TS,1)*(1,S) -> (TS,S)
    if triu:
        row = lax.broadcasted_iota(jnp.int32, sim.shape, 0) + pl.program_id(1) * ts
        col = lax.broadcasted_iota(jnp.int32, sim.shape, 1)
        msk = msk * (col > row).astype(jnp.float32)
    o_ref[0] = sim * msk


def _sieve_jointer_kernel(s_ref, t_ref, sv_ref, ms_ref, mt_ref, o_ref, *, scale):
    # TODO(synk): exact SieveJointer gating formula unavailable; using a multiplicative
    #             sigmoid sieve gate on the source/sieve similarity.
    src, tar, sve = s_ref[0], t_ref[0], sv_ref[0]           # bf16
    sim = jax.nn.sigmoid(
        lax.dot_general(src, tar, _DN_T, preferred_element_type=jnp.float32) * scale)
    gate = jax.nn.sigmoid(
        lax.dot_general(src, sve, _DN_T, preferred_element_type=jnp.float32) * scale)
    o_ref[0] = sim * gate * (ms_ref[0] * mt_ref[0])


# ----------------------------------------------------------------------------- wrappers

def attention(x_q, x_kv, bias, p, n_head, d_k, d_v, input_ln_params=None):
    """Fused (optional input-LN) + MHA + out-proj + residual + LayerNorm."""
    B, S, D = x_q.shape
    Skv = x_kv.shape[1]
    TQ = _row_tile(S, 256)
    nq, nkv, nv = n_head * d_k, n_head * (d_k + d_v), n_head * d_v
    input_ln = input_ln_params is not None
    g0, b0 = input_ln_params if input_ln else (jnp.ones((D,), jnp.float32),
                                               jnp.zeros((D,), jnp.float32))
    kern = functools.partial(_attn_ln_kernel, n_head=n_head, d_k=d_k, d_v=d_v,
                             scale=1.0 / math.sqrt(d_k), eps=LN_EPS, input_ln=input_ln)
    return pl.pallas_call(
        kern,
        out_shape=jax.ShapeDtypeStruct((B, S, D), jnp.bfloat16),
        grid=(B, S // TQ),
        in_specs=[pl.BlockSpec((1, TQ, D), lambda b, i: (b, i, 0)),     # query rows
                  pl.BlockSpec((1, Skv, D), lambda b, i: (b, 0, 0)),    # full K/V rows
                  pl.BlockSpec((1, 1, Skv), lambda b, i: (b, 0, 0)),    # pad bias
                  pl.BlockSpec((D, nq), lambda b, i: (0, 0)),
                  pl.BlockSpec((1, nq), lambda b, i: (0, 0)),
                  pl.BlockSpec((D, nkv), lambda b, i: (0, 0)),
                  pl.BlockSpec((1, nkv), lambda b, i: (0, 0)),
                  pl.BlockSpec((nv, D), lambda b, i: (0, 0)),
                  pl.BlockSpec((1, D), lambda b, i: (0, 0)),
                  pl.BlockSpec((1, D), lambda b, i: (0, 0)),
                  pl.BlockSpec((1, D), lambda b, i: (0, 0)),
                  pl.BlockSpec((1, D), lambda b, i: (0, 0)),
                  pl.BlockSpec((1, D), lambda b, i: (0, 0))],
        out_specs=pl.BlockSpec((1, TQ, D), lambda b, i: (b, i, 0)),
        compiler_params=pltpu.CompilerParams(
            dimension_semantics=("parallel", "parallel")),
    )(x_q, x_kv, bias,
      p["w_q"], p["b_q"].reshape(1, nq), p["w_kv"], p["b_kv"].reshape(1, nkv),
      p["w_o"], p["b_o"].reshape(1, D), p["ln_g"].reshape(1, D), p["ln_b"].reshape(1, D),
      g0.reshape(1, D), b0.reshape(1, D))


def ffn(x, p):
    B, S, D = x.shape
    Di = p["w1"].shape[1]
    TS = _row_tile(S, 256)
    return pl.pallas_call(
        functools.partial(_ffn_ln_kernel, eps=LN_EPS),
        out_shape=jax.ShapeDtypeStruct((B, S, D), jnp.bfloat16),
        grid=(B, S // TS),
        in_specs=[pl.BlockSpec((1, TS, D), lambda b, i: (b, i, 0)),
                  pl.BlockSpec((D, Di), lambda b, i: (0, 0)),
                  pl.BlockSpec((1, Di), lambda b, i: (0, 0)),
                  pl.BlockSpec((Di, D), lambda b, i: (0, 0)),
                  pl.BlockSpec((1, D), lambda b, i: (0, 0)),
                  pl.BlockSpec((1, D), lambda b, i: (0, 0)),
                  pl.BlockSpec((1, D), lambda b, i: (0, 0))],
        out_specs=pl.BlockSpec((1, TS, D), lambda b, i: (b, i, 0)),
        compiler_params=pltpu.CompilerParams(
            dimension_semantics=("parallel", "parallel")),
    )(x, p["w1"], p["b1"].reshape(1, Di), p["w2"], p["b2"].reshape(1, D),
      p["ln_g"].reshape(1, D), p["ln_b"].reshape(1, D))


def jointer(source, target, mask_src, mask_tar, d_model, triu):
    # TODO(synk): original Jointer returns a ragged per-batch gather; here the full
    #             (B,S,S) matrix is returned with masked entries zeroed instead.
    B, S, D = source.shape
    TS = _row_tile(S, 256)
    kern = functools.partial(_jointer_kernel, scale=1.0 / math.sqrt(d_model),
                             triu=triu, ts=TS)
    return pl.pallas_call(
        kern,
        out_shape=jax.ShapeDtypeStruct((B, S, S), jnp.float32),
        grid=(B, S // TS),
        in_specs=[pl.BlockSpec((1, TS, D), lambda b, i: (b, i, 0)),
                  pl.BlockSpec((1, S, D), lambda b, i: (b, 0, 0)),
                  pl.BlockSpec((1, TS, 1), lambda b, i: (b, i, 0)),
                  pl.BlockSpec((1, 1, S), lambda b, i: (b, 0, 0))],
        out_specs=pl.BlockSpec((1, TS, S), lambda b, i: (b, i, 0)),
        compiler_params=pltpu.CompilerParams(
            dimension_semantics=("parallel", "parallel")),
    )(source, target, mask_src[:, :, None], mask_tar[:, None, :])


def sieve_jointer(source, target, sieve, mask_src, mask_tar, d_model):
    B, S, D = source.shape
    TS = _row_tile(S, 256)
    kern = functools.partial(_sieve_jointer_kernel, scale=1.0 / math.sqrt(d_model))
    return pl.pallas_call(
        kern,
        out_shape=jax.ShapeDtypeStruct((B, S, S), jnp.float32),
        grid=(B, S // TS),
        in_specs=[pl.BlockSpec((1, TS, D), lambda b, i: (b, i, 0)),
                  pl.BlockSpec((1, S, D), lambda b, i: (b, 0, 0)),
                  pl.BlockSpec((1, S, D), lambda b, i: (b, 0, 0)),
                  pl.BlockSpec((1, TS, 1), lambda b, i: (b, i, 0)),
                  pl.BlockSpec((1, 1, S), lambda b, i: (b, 0, 0))],
        out_specs=pl.BlockSpec((1, TS, S), lambda b, i: (b, i, 0)),
        compiler_params=pltpu.CompilerParams(
            dimension_semantics=("parallel", "parallel")),
    )(source, target, sieve, mask_src[:, :, None], mask_tar[:, None, :])


# ----------------------------------------------------------------------------- model glue

def embed(seq_id, seq_position, p):
    # glue: tiny gathers + (B,S,2)->(B,S,D) position projection; left to XLA.
    t = p["type_tab"][seq_id[:, :, 0]]                      # (B, S, D)
    s = p["staff_tab"][seq_id[:, :, 1]]                     # (B, S, D)
    pos = seq_position @ p["pos_w"] + p["pos_b"]
    return t + s + pos


def encoder1(seq_id, seq_position, bias, p, cfg):
    x = embed(seq_id, seq_position, p["emb"]).astype(jnp.bfloat16)
    emb_ln = (p["emb_ln_g"], p["emb_ln_b"])                 # fused into first attn kernel
    for li, lp in enumerate(p["layers"]):
        x = attention(x, x, bias, lp["slf"], cfg["n_head"], cfg["d_k"], cfg["d_v"],
                      input_ln_params=emb_ln if li == 0 else None)
        x = ffn(x, lp["ffn"])
    return x


def decoder1(seq_id, seq_position, enc_output, bias, p, cfg):
    x = embed(seq_id, seq_position, p["emb"]).astype(jnp.bfloat16)
    emb_ln = (p["emb_ln_g"], p["emb_ln_b"])
    for li, lp in enumerate(p["layers"]):
        x = attention(x, x, bias, lp["slf"], cfg["n_head"], cfg["d_k"], cfg["d_v"],
                      input_ln_params=emb_ln if li == 0 else None)
        x = attention(x, enc_output, bias, lp["crs"], cfg["n_head"], cfg["d_k"],
                      cfg["d_v"])
        x = ffn(x, lp["ffn"])
    return x


def transform_sieve_jointer_hv(params, seq_id, seq_position, mask, cfg):
    seq_type = seq_id[:, :, 0]
    seq_mask = (seq_type != PAD).astype(jnp.float32)[:, None, :]      # (B, 1, S)
    attn_bias = (seq_mask - 1.0) * 1e9                                # 0 keep / -1e9 pad

    target = encoder1(seq_id, seq_position, attn_bias, params["target"], cfg)
    sieve = encoder1(seq_id, seq_position, attn_bias, params["sieve"], cfg)
    source = decoder1(seq_id, seq_position, target, attn_bias, params["source"], cfg)
    vcode = decoder1(seq_id, seq_position, source, attn_bias, params["v"], cfg)

    mask_f = mask.astype(jnp.float32)                                 # (B, 3, S)
    h_results = sieve_jointer(source, target, sieve, mask_f[:, 0], mask_f[:, 1],
                              cfg["d_model"])
    v_results = jointer(vcode, vcode, mask_f[:, 2], mask_f[:, 2],
                        cfg["d_model"], triu=True)
    return h_results, v_results


# ----------------------------------------------------------------------------- params

def _init_tower(key, cfg, n_layers, cross):
    keys = iter(jax.random.split(key, 4096))
    D, Di, H, dk, dv = cfg["d_model"], cfg["d_inner"], cfg["n_head"], cfg["d_k"], cfg["d_v"]

    def nrm(shape, dtype=jnp.bfloat16):
        return (0.02 * jax.random.normal(next(keys), shape, jnp.float32)).astype(dtype)

    def attn_p():
        return {"w_q": nrm((D, H * dk)), "b_q": jnp.zeros((H * dk,), jnp.float32),
                "w_kv": nrm((D, H * (dk + dv))),
                "b_kv": jnp.zeros((H * (dk + dv),), jnp.float32),
                "w_o": nrm((H * dv, D)), "b_o": jnp.zeros((D,), jnp.float32),
                "ln_g": jnp.ones((D,), jnp.float32), "ln_b": jnp.zeros((D,), jnp.float32)}

    def ffn_p():
        return {"w1": nrm((D, Di)), "b1": jnp.zeros((Di,), jnp.float32),
                "w2": nrm((Di, D)), "b2": jnp.zeros((D,), jnp.float32),
                "ln_g": jnp.ones((D,), jnp.float32), "ln_b": jnp.zeros((D,), jnp.float32)}

    emb = {"type_tab": nrm((cfg["n_type"], D), jnp.float32).at[PAD].set(0.0),
           "staff_tab": nrm((cfg["n_staff"], D), jnp.float32),
           "pos_w": nrm((2, D), jnp.float32), "pos_b": jnp.zeros((D,), jnp.float32)}

    layers = []
    for _ in range(n_layers):
        lp = {"slf": attn_p(), "ffn": ffn_p()}
        if cross:
            lp["crs"] = attn_p()
        layers.append(lp)

    return {"emb": emb,
            "emb_ln_g": jnp.ones((D,), jnp.float32),
            "emb_ln_b": jnp.zeros((D,), jnp.float32),
            "layers": layers}


def init_params(key, cfg):
    k_t, k_si, k_so, k_v = jax.random.split(key, 4)
    return {"target": _init_tower(k_t, cfg, cfg["n_target_layers"], cross=False),
            "sieve": _init_tower(k_si, cfg, cfg["n_sieve_layers"], cross=False),
            "source": _init_tower(k_so, cfg, cfg["n_source_layers"], cross=True),
            "v": _init_tower(k_v, cfg, cfg["n_v_layers"], cross=True)}


# ----------------------------------------------------------------------------- main

if __name__ == "__main__":
    cfg = dict(d_model=32, d_inner=64, n_head=4, d_k=8, d_v=8,
               n_source_layers=2, n_target_layers=1, n_sieve_layers=1, n_v_layers=1,
               n_type=16, n_staff=4)
    B, S = 2, 8

    key = jax.random.PRNGKey(0)
    k1, k2, k3, k4, kp = jax.random.split(key, 5)

    seq_type = jax.random.randint(k1, (B, S), 1, cfg["n_type"]).astype(jnp.int32)
    seq_type = seq_type.at[:, -1].set(PAD)                  # make last token PAD
    seq_staff = jax.random.randint(k2, (B, S), 0, cfg["n_staff"]).astype(jnp.int32)
    seq_id = jnp.stack([seq_type, seq_staff], axis=-1)      # (B, S, 2) int32
    seq_position = jax.random.uniform(k3, (B, S, 2), jnp.float32)
    mask = jax.random.bernoulli(k4, 0.8, (B, 3, S))         # (B, 3, S) bool

    params = init_params(kp, cfg)

    fwd = jax.jit(functools.partial(transform_sieve_jointer_hv, cfg=cfg))
    h_results, v_results = fwd(params, seq_id, seq_position, mask)
    jax.block_until_ready((h_results, v_results))

    assert h_results.shape == (B, S, S) and v_results.shape == (B, S, S)
    assert bool(jnp.all(jnp.isfinite(h_results))) and bool(jnp.all(jnp.isfinite(v_results)))
    print("KERNEL_OK")
</pallas_src>

<mosaic_0001>
module attributes {stable_mosaic.version = 11 : i64} {
  func.func @_attn_ln_kernel(%arg0: i32, %arg1: i32, %arg2: memref<1x8x32xbf16, #tpu.memory_space<vmem>>, %arg3: memref<1x8x32xbf16, #tpu.memory_space<vmem>>, %arg4: memref<1x1x8xf32, #tpu.memory_space<vmem>>, %arg5: memref<32x32xbf16, #tpu.memory_space<vmem>>, %arg6: memref<1x32xf32, #tpu.memory_space<vmem>>, %arg7: memref<32x64xbf16, #tpu.memory_space<vmem>>, %arg8: memref<1x64xf32, #tpu.memory_space<vmem>>, %arg9: memref<32x32xbf16, #tpu.memory_space<vmem>>, %arg10: memref<1x32xf32, #tpu.memory_space<vmem>>, %arg11: memref<1x32xf32, #tpu.memory_space<vmem>>, %arg12: memref<1x32xf32, #tpu.memory_space<vmem>>, %arg13: memref<1x32xf32, #tpu.memory_space<vmem>>, %arg14: memref<1x32xf32, #tpu.memory_space<vmem>>, %arg15: memref<1x8x32xbf16, #tpu.memory_space<vmem>>) attributes {dimension_semantics = [#tpu.dimension_semantics<parallel>, #tpu.dimension_semantics<parallel>], iteration_bounds = array<i64: 2, 1>, scalar_prefetch = 0 : i64, scratch_operands = 0 : i64, tpu.core_type = #tpu.core_type<tc>, window_params = [{transform_indices = @transform_0, window_bounds = array<i64: 1, 8, 32>}, {transform_indices = @transform_1, window_bounds = array<i64: 1, 8, 32>}, {transform_indices = @transform_2, window_bounds = array<i64: 1, 1, 8>}, {pipeline_mode = #tpu.pipeline_mode<synchronous>, transform_indices = @transform_3, window_bounds = array<i64: 32, 32>}, {pipeline_mode = #tpu.pipeline_mode<synchronous>, transform_indices = @transform_4, window_bounds = array<i64: 1, 32>}, {pipeline_mode = #tpu.pipeline_mode<synchronous>, transform_indices = @transform_5, window_bounds = array<i64: 32, 64>}, {pipeline_mode = #tpu.pipeline_mode<synchronous>, transform_indices = @transform_6, window_bounds = array<i64: 1, 64>}, {pipeline_mode = #tpu.pipeline_mode<synchronous>, transform_indices = @transform_7, window_bounds = array<i64: 32, 32>}, {pipeline_mode = #tpu.pipeline_mode<synchronous>, transform_indices = @transform_8, window_bounds = array<i64: 1, 32>}, {pipeline_mode = #tpu.pipeline_mode<synchronous>, transform_indices = @transform_9, window_bounds = array<i64: 1, 32>}, {pipeline_mode = #tpu.pipeline_mode<synchronous>, transform_indices = @transform_10, window_bounds = array<i64: 1, 32>}, {pipeline_mode = #tpu.pipeline_mode<synchronous>, transform_indices = @transform_11, window_bounds = array<i64: 1, 32>}, {pipeline_mode = #tpu.pipeline_mode<synchronous>, transform_indices = @transform_12, window_bounds = array<i64: 1, 32>}, {transform_indices = @transform_13, window_bounds = array<i64: 1, 8, 32>}]} {
    %c0 = arith.constant 0 : index
    %c0_0 = arith.constant 0 : index
    %c0_1 = arith.constant 0 : index
    %0 = vector.load %arg2[%c0, %c0_0, %c0_1] : memref<1x8x32xbf16, #tpu.memory_space<vmem>>, vector<1x8x32xbf16>
    %1 = vector.shape_cast %0 : vector<1x8x32xbf16> to vector<8x32xbf16>
    %2 = arith.extf %1 : vector<8x32xbf16> to vector<8x32xf32>
    %c0_2 = arith.constant 0 : index
    %c0_3 = arith.constant 0 : index
    %3 = vector.load %arg13[%c0_2, %c0_3] : memref<1x32xf32, #tpu.memory_space<vmem>>, vector<1x32xf32>
    %c0_4 = arith.constant 0 : index
    %c0_5 = arith.constant 0 : index
    %4 = vector.load %arg14[%c0_4, %c0_5] : memref<1x32xf32, #tpu.memory_space<vmem>>, vector<1x32xf32>
    %cst = arith.constant dense<0.000000e+00> : vector<8xf32>
    %5 = vector.multi_reduction <add>, %2, %cst [1] : vector<8x32xf32> to vector<8xf32>
    %6 = vector.shape_cast %5 : vector<8xf32> to vector<8x1xf32>
    %cst_6 = arith.constant 3.200000e+01 : f32
    %7 = vector.broadcast %cst_6 : f32 to vector<8x1xf32>
    %8 = arith.divf %6, %7 : vector<8x1xf32>
    %9 = vector.broadcast %8 : vector<8x1xf32> to vector<8x32xf32>
    %10 = arith.subf %2, %9 : vector<8x32xf32>
    %11 = arith.mulf %10, %10 : vector<8x32xf32>
    %cst_7 = arith.constant dense<0.000000e+00> : vector<8xf32>
    %12 = vector.multi_reduction <add>, %11, %cst_7 [1] : vector<8x32xf32> to vector<8xf32>
    %13 = vector.shape_cast %12 : vector<8xf32> to vector<8x1xf32>
    %cst_8 = arith.constant 3.200000e+01 : f32
    %14 = vector.broadcast %cst_8 : f32 to vector<8x1xf32>
    %15 = arith.divf %13, %14 : vector<8x1xf32>
    %16 = vector.broadcast %8 : vector<8x1xf32> to vector<8x32xf32>
    %17 = arith.subf %2, %16 : vector<8x32xf32>
    %cst_9 = arith.constant 9.99999997E-7 : f32
    %18 = vector.broadcast %cst_9 : f32 to vector<8x1xf32>
    %19 = arith.addf %15, %18 : vector<8x1xf32>
    %20 = math.rsqrt %19 : vector<8x1xf32>
    %21 = vector.broadcast %20 : vector<8x1xf32> to vector<8x32xf32>
    %22 = arith.mulf %17, %21 : vector<8x32xf32>
    %23 = vector.broadcast %3 : vector<1x32xf32> to vector<8x32xf32>
    %24 = arith.mulf %22, %23 : vector<8x32xf32>
    %25 = vector.broadcast %4 : vector<1x32xf32> to vector<8x32xf32>
    %26 = arith.addf %24, %25 : vector<8x32xf32>
    %c0_10 = arith.constant 0 : index
    %c0_11 = arith.constant 0 : index
    %c0_12 = arith.constant 0 : index
    %27 = vector.load %arg3[%c0_10, %c0_11, %c0_12] : memref<1x8x32xbf16, #tpu.memory_space<vmem>>, vector<1x8x32xbf16>
    %28 = vector.shape_cast %27 : vector<1x8x32xbf16> to vector<8x32xbf16>
    %29 = arith.extf %28 : vector<8x32xbf16> to vector<8x32xf32>
    %c0_13 = arith.constant 0 : index
    %c0_14 = arith.constant 0 : index
    %30 = vector.load %arg13[%c0_13, %c0_14] : memref<1x32xf32, #tpu.memory_space<vmem>>, vector<1x32xf32>
    %c0_15 = arith.constant 0 : index
    %c0_16 = arith.constant 0 : index
    %31 = vector.load %arg14[%c0_15, %c0_16] : memref<1x32xf32, #tpu.memory_space<vmem>>, vector<1x32xf32>
    %cst_17 = arith.constant dense<0.000000e+00> : vector<8xf32>
    %32 = vector.multi_reduction <add>, %29, %cst_17 [1] : vector<8x32xf32> to vector<8xf32>
    %33 = vector.shape_cast %32 : vector<8xf32> to vector<8x1xf32>
    %cst_18 = arith.constant 3.200000e+01 : f32
    %34 = vector.broadcast %cst_18 : f32 to vector<8x1xf32>
    %35 = arith.divf %33, %34 : vector<8x1xf32>
    %36 = vector.broadcast %35 : vector<8x1xf32> to vector<8x32xf32>
    %37 = arith.subf %29, %36 : vector<8x32xf32>
    %38 = arith.mulf %37, %37 : vector<8x32xf32>
    %cst_19 = arith.constant dense<0.000000e+00> : vector<8xf32>
    %39 = vector.multi_reduction <add>, %38, %cst_19 [1] : vector<8x32xf32> to vector<8xf32>
    %40 = vector.shape_cast %39 : vector<8xf32> to vector<8x1xf32>
    %cst_20 = arith.constant 3.200000e+01 : f32
    %41 = vector.broadcast %cst_20 : f32 to vector<8x1xf32>
    %42 = arith.divf %40, %41 : vector<8x1xf32>
    %43 = vector.broadcast %35 : vector<8x1xf32> to vector<8x32xf32>
    %44 = arith.subf %29, %43 : vector<8x32xf32>
    %cst_21 = arith.constant 9.99999997E-7 : f32
    %45 = vector.broadcast %cst_21 : f32 to vector<8x1xf32>
    %46 = arith.addf %42, %45 : vector<8x1xf32>
    %47 = math.rsqrt %46 : vector<8x1xf32>
    %48 = vector.broadcast %47 : vector<8x1xf32> to vector<8x32xf32>
    %49 = arith.mulf %44, %48 : vector<8x32xf32>
    %50 = vector.broadcast %30 : vector<1x32xf32> to vector<8x32xf32>
    %51 = arith.mulf %49, %50 : vector<8x32xf32>
    %52 = vector.broadcast %31 : vector<1x32xf32> to vector<8x32xf32>
    %53 = arith.addf %51, %52 : vector<8x32xf32>
    %54 = arith.truncf %26 : vector<8x32xf32> to vector<8x32xbf16>
    %55 = arith.truncf %53 : vector<8x32xf32> to vector<8x32xbf16>
    %c0_22 = arith.constant 0 : index
    %c0_23 = arith.constant 0 : index
    %56 = vector.load %arg5[%c0_22, %c0_23] : memref<32x32xbf16, #tpu.memory_space<vmem>>, vector<32x32xbf16>
    %cst_24 = arith.constant dense<0.000000e+00> : vector<8x32xf32>
    %57 = tpu.matmul %54, %56, %cst_24 {dimension_numbers = #tpu.dot_dimension_numbers<[1], [0], [0], [1], [0, 0, 1, 1], [], []>} : vector<8x32xbf16>, vector<32x32xbf16>, vector<8x32xf32> -> vector<8x32xf32>
    %c0_25 = arith.constant 0 : index
    %c0_26 = arith.constant 0 : index
    %58 = vector.load %arg6[%c0_25, %c0_26] : memref<1x32xf32, #tpu.memory_space<vmem>>, vector<1x32xf32>
    %59 = vector.broadcast %58 : vector<1x32xf32> to vector<8x32xf32>
    %60 = arith.addf %57, %59 : vector<8x32xf32>
    %c0_27 = arith.constant 0 : index
    %c0_28 = arith.constant 0 : index
    %61 = vector.load %arg7[%c0_27, %c0_28] : memref<32x64xbf16, #tpu.memory_space<vmem>>, vector<32x64xbf16>
    %cst_29 = arith.constant dense<0.000000e+00> : vector<8x64xf32>
    %62 = tpu.matmul %55, %61, %cst_29 {dimension_numbers = #tpu.dot_dimension_numbers<[1], [0], [0], [1], [0, 0, 1, 1], [], []>} : vector<8x32xbf16>, vector<32x64xbf16>, vector<8x64xf32> -> vector<8x64xf32>
    %c0_30 = arith.constant 0 : index
    %c0_31 = arith.constant 0 : index
    %63 = vector.load %arg8[%c0_30, %c0_31] : memref<1x64xf32, #tpu.memory_space<vmem>>, vector<1x64xf32>
    %64 = vector.broadcast %63 : vector<1x64xf32> to vector<8x64xf32>
    %65 = arith.addf %62, %64 : vector<8x64xf32>
    %66 = vector.extract_strided_slice %65 {offsets = [0, 0], sizes = [8, 32], strides = [1, 1]} : vector<8x64xf32> to vector<8x32xf32>
    %67 = vector.extract_strided_slice %65 {offsets = [0, 32], sizes = [8, 32], strides = [1, 1]} : vector<8x64xf32> to vector<8x32xf32>
    %c0_32 = arith.constant 0 : index
    %c0_33 = arith.constant 0 : index
    %c0_34 = arith.constant 0 : index
    %68 = vector.load %arg4[%c0_32, %c0_33, %c0_34] : memref<1x1x8xf32, #tpu.memory_space<vmem>>, vector<1x1x8xf32>
    %69 = vector.shape_cast %68 : vector<1x1x8xf32> to vector<1x8xf32>
    %70 = vector.extract_strided_slice %60 {offsets = [0, 0], sizes = [8, 8], strides = [1, 1]} : vector<8x32xf32> to vector<8x8xf32>
    %71 = arith.truncf %70 : vector<8x8xf32> to vector<8x8xbf16>
    %72 = vector.extract_strided_slice %66 {offsets = [0, 0], sizes = [8, 8], strides = [1, 1]} : vector<8x32xf32> to vector<8x8xf32>
    %73 = arith.truncf %72 : vector<8x8xf32> to vector<8x8xbf16>
    %74 = vector.extract_strided_slice %67 {offsets = [0, 0], sizes = [8, 8], strides = [1, 1]} : vector<8x32xf32> to vector<8x8xf32>
    %75 = arith.truncf %74 : vector<8x8xf32> to vector<8x8xbf16>
    %cst_35 = arith.constant dense<0.000000e+00> : vector<8x8xf32>
    %76 = tpu.matmul %71, %73, %cst_35 {dimension_numbers = #tpu.dot_dimension_numbers<[1], [1], [0], [0], [0, 0, 1, 0], [], []>} : vector<8x8xbf16>, vector<8x8xbf16>, vector<8x8xf32> -> vector<8x8xf32>
    %cst_36 = arith.constant 0.353553385 : f32
    %77 = vector.broadcast %cst_36 : f32 to vector<8x8xf32>
    %78 = arith.mulf %76, %77 : vector<8x8xf32>
    %79 = vector.broadcast %69 : vector<1x8xf32> to vector<8x8xf32>
    %80 = arith.addf %78, %79 : vector<8x8xf32>
    %cst_37 = arith.constant dense<0xFF800000> : vector<8xf32>
    %81 = vector.multi_reduction <maximumf>, %80, %cst_37 [1] : vector<8x8xf32> to vector<8xf32>
    %82 = vector.shape_cast %81 : vector<8xf32> to vector<8x1xf32>
    %83 = vector.broadcast %82 : vector<8x1xf32> to vector<8x8xf32>
    %84 = arith.subf %80, %83 : vector<8x8xf32>
    %85 = math.exp %84 : vector<8x8xf32>
    %cst_38 = arith.constant dense<0.000000e+00> : vector<8xf32>
    %86 = vector.multi_reduction <add>, %85, %cst_38 [1] : vector<8x8xf32> to vector<8xf32>
    %87 = vector.shape_cast %86 : vector<8xf32> to vector<8x1xf32>
    %88 = tpu.reciprocal %87 {approx = true} : vector<8x1xf32> -> vector<8x1xf32>
    %89 = vector.broadcast %88 : vector<8x1xf32> to vector<8x8xf32>
    %90 = arith.mulf %85, %89 : vector<8x8xf32>
    %91 = arith.truncf %90 : vector<8x8xf32> to vector<8x8xbf16>
    %cst_39 = arith.constant dense<0.000000e+00> : vector<8x8xf32>
    %92 = tpu.matmul %91, %75, %cst_39 {dimension_numbers = #tpu.dot_dimension_numbers<[1], [0], [0], [1], [0, 0, 1, 1], [], []>} : vector<8x8xbf16>, vector<8x8xbf16>, vector<8x8xf32> -> vector<8x8xf32>
    %93 = vector.extract_strided_slice %60 {offsets = [0, 8], sizes = [8, 8], strides = [1, 1]} : vector<8x32xf32> to vector<8x8xf32>
    %94 = arith.truncf %93 : vector<8x8xf32> to vector<8x8xbf16>
    %95 = vector.extract_strided_slice %66 {offsets = [0, 8], sizes = [8, 8], strides = [1, 1]} : vector<8x32xf32> to vector<8x8xf32>
    %96 = arith.truncf %95 : vector<8x8xf32> to vector<8x8xbf16>
    %97 = vector.extract_strided_slice %67 {offsets = [0, 8], sizes = [8, 8], strides = [1, 1]} : vector<8x32xf32> to vector<8x8xf32>
    %98 = arith.truncf %97 : vector<8x8xf32> to vector<8x8xbf16>
    %cst_40 = arith.constant dense<0.000000e+00> : vector<8x8xf32>
    %99 = tpu.matmul %94, %96, %cst_40 {dimension_numbers = #tpu.dot_dimension_numbers<[1], [1], [0], [0], [0, 0, 1, 0], [], []>} : vector<8x8xbf16>, vector<8x8xbf16>, vector<8x8xf32> -> vector<8x8xf32>
    %cst_41 = arith.constant 0.353553385 : f32
    %100 = vector.broadcast %cst_41 : f32 to vector<8x8xf32>
    %101 = arith.mulf %99, %100 : vector<8x8xf32>
    %102 = vector.broadcast %69 : vector<1x8xf32> to vector<8x8xf32>
    %103 = arith.addf %101, %102 : vector<8x8xf32>
    %cst_42 = arith.constant dense<0xFF800000> : vector<8xf32>
    %104 = vector.multi_reduction <maximumf>, %103, %cst_42 [1] : vector<8x8xf32> to vector<8xf32>
    %105 = vector.shape_cast %104 : vector<8xf32> to vector<8x1xf32>
    %106 = vector.broadcast %105 : vector<8x1xf32> to vector<8x8xf32>
    %107 = arith.subf %103, %106 : vector<8x8xf32>
    %108 = math.exp %107 : vector<8x8xf32>
    %cst_43 = arith.constant dense<0.000000e+00> : vector<8xf32>
    %109 = vector.multi_reduction <add>, %108, %cst_43 [1] : vector<8x8xf32> to vector<8xf32>
    %110 = vector.shape_cast %109 : vector<8xf32> to vector<8x1xf32>
    %111 = tpu.reciprocal %110 {approx = true} : vector<8x1xf32> -> vector<8x1xf32>
    %112 = vector.broadcast %111 : vector<8x1xf32> to vector<8x8xf32>
    %113 = arith.mulf %108, %112 : vector<8x8xf32>
    %114 = arith.truncf %113 : vector<8x8xf32> to vector<8x8xbf16>
    %cst_44 = arith.constant dense<0.000000e+00> : vector<8x8xf32>
    %115 = tpu.matmul %114, %98, %cst_44 {dimension_numbers = #tpu.dot_dimension_numbers<[1], [0], [0], [1], [0, 0, 1, 1], [], []>} : vector<8x8xbf16>, vector<8x8xbf16>, vector<8x8xf32> -> vector<8x8xf32>
    %116 = vector.extract_strided_slice %60 {offsets = [0, 16], sizes = [8, 8], strides = [1, 1]} : vector<8x32xf32> to vector<8x8xf32>
    %117 = arith.truncf %116 : vector<8x8xf32> to vector<8x8xbf16>
    %118 = vector.extract_strided_slice %66 {offsets = [0, 16], sizes = [8, 8], strides = [1, 1]} : vector<8x32xf32> to vector<8x8xf32>
    %119 = arith.truncf %118 : vector<8x8xf32> to vector<8x8xbf16>
    %120 = vector.extract_strided_slice %67 {offsets = [0, 16], sizes = [8, 8], strides = [1, 1]} : vector<8x32xf32> to vector<8x8xf32>
    %121 = arith.truncf %120 : vector<8x8xf32> to vector<8x8xbf16>
    %cst_45 = arith.constant dense<0.000000e+00> : vector<8x8xf32>
    %122 = tpu.matmul %117, %119, %cst_45 {dimension_numbers = #tpu.dot_dimension_numbers<[1], [1], [0], [0], [0, 0, 1, 0], [], []>} : vector<8x8xbf16>, vector<8x8xbf16>, vector<8x8xf32> -> vector<8x8xf32>
    %cst_46 = arith.constant 0.353553385 : f32
    %123 = vector.broadcast %cst_46 : f32 to vector<8x8xf32>
    %124 = arith.mulf %122, %123 : vector<8x8xf32>
    %125 = vector.broadcast %69 : vector<1x8xf32> to vector<8x8xf32>
    %126 = arith.addf %124, %125 : vector<8x8xf32>
    %cst_47 = arith.constant dense<0xFF800000> : vector<8xf32>
    %127 = vector.multi_reduction <maximumf>, %126, %cst_47 [1] : vector<8x8xf32> to vector<8xf32>
    %128 = vector.shape_cast %127 : vector<8xf32> to vector<8x1xf32>
    %129 = vector.broadcast %128 : vector<8x1xf32> to vector<8x8xf32>
    %130 = arith.subf %126, %129 : vector<8x8xf32>
    %131 = math.exp %130 : vector<8x8xf32>
    %cst_48 = arith.constant dense<0.000000e+00> : vector<8xf32>
    %132 = vector.multi_reduction <add>, %131, %cst_48 [1] : vector<8x8xf32> to vector<8xf32>
    %133 = vector.shape_cast %132 : vector<8xf32> to vector<8x1xf32>
    %134 = tpu.reciprocal %133 {approx = true} : vector<8x1xf32> -> vector<8x1xf32>
    %135 = vector.broadcast %134 : vector<8x1xf32> to vector<8x8xf32>
    %136 = arith.mulf %131, %135 : vector<8x8xf32>
    %137 = arith.truncf %136 : vector<8x8xf32> to vector<8x8xbf16>
    %cst_49 = arith.constant dense<0.000000e+00> : vector<8x8xf32>
    %138 = tpu.matmul %137, %121, %cst_49 {dimension_numbers = #tpu.dot_dimension_numbers<[1], [0], [0], [1], [0, 0, 1, 1], [], []>} : vector<8x8xbf16>, vector<8x8xbf16>, vector<8x8xf32> -> vector<8x8xf32>
    %139 = vector.extract_strided_slice %60 {offsets = [0, 24], sizes = [8, 8], strides = [1, 1]} : vector<8x32xf32> to vector<8x8xf32>
    %140 = arith.truncf %139 : vector<8x8xf32> to vector<8x8xbf16>
    %141 = vector.extract_strided_slice %66 {offsets = [0, 24], sizes = [8, 8], strides = [1, 1]} : vector<8x32xf32> to vector<8x8xf32>
    %142 = arith.truncf %141 : vector<8x8xf32> to vector<8x8xbf16>
    %143 = vector.extract_strided_slice %67 {offsets = [0, 24], sizes = [8, 8], strides = [1, 1]} : vector<8x32xf32> to vector<8x8xf32>
    %144 = arith.truncf %143 : vector<8x8xf32> to vector<8x8xbf16>
    %cst_50 = arith.constant dense<0.000000e+00> : vector<8x8xf32>
    %145 = tpu.matmul %140, %142, %cst_50 {dimension_numbers = #tpu.dot_dimension_numbers<[1], [1], [0], [0], [0, 0, 1, 0], [], []>} : vector<8x8xbf16>, vector<8x8xbf16>, vector<8x8xf32> -> vector<8x8xf32>
    %cst_51 = arith.constant 0.353553385 : f32
    %146 = vector.broadcast %cst_51 : f32 to vector<8x8xf32>
    %147 = arith.mulf %145, %146 : vector<8x8xf32>
    %148 = vector.broadcast %69 : vector<1x8xf32> to vector<8x8xf32>
    %149 = arith.addf %147, %148 : vector<8x8xf32>
    %cst_52 = arith.constant dense<0xFF800000> : vector<8xf32>
    %150 = vector.multi_reduction <maximumf>, %149, %cst_52 [1] : vector<8x8xf32> to vector<8xf32>
    %151 = vector.shape_cast %150 : vector<8xf32> to vector<8x1xf32>
    %152 = vector.broadcast %151 : vector<8x1xf32> to vector<8x8xf32>
    %153 = arith.subf %149, %152 : vector<8x8xf32>
    %154 = math.exp %153 : vector<8x8xf32>
    %cst_53 = arith.constant dense<0.000000e+00> : vector<8xf32>
    %155 = vector.multi_reduction <add>, %154, %cst_53 [1] : vector<8x8xf32> to vector<8xf32>
    %156 = vector.shape_cast %155 : vector<8xf32> to vector<8x1xf32>
    %157 = tpu.reciprocal %156 {approx = true} : vector<8x1xf32> -> vector<8x1xf32>
    %158 = vector.broadcast %157 : vector<8x1xf32> to vector<8x8xf32>
    %159 = arith.mulf %154, %158 : vector<8x8xf32>
    %160 = arith.truncf %159 : vector<8x8xf32> to vector<8x8xbf16>
    %cst_54 = arith.constant dense<0.000000e+00> : vector<8x8xf32>
    %161 = tpu.matmul %160, %144, %cst_54 {dimension_numbers = #tpu.dot_dimension_numbers<[1], [0], [0], [1], [0, 0, 1, 1], [], []>} : vector<8x8xbf16>, vector<8x8xbf16>, vector<8x8xf32> -> vector<8x8xf32>
    %162 = tpu.concatenate %92, %115, %138, %161 in 1 : vector<8x8xf32>, vector<8x8xf32>, vector<8x8xf32>, vector<8x8xf32> -> vector<8x32xf32>
    %163 = arith.truncf %162 : vector<8x32xf32> to vector<8x32xbf16>
    %c0_55 = arith.constant 0 : index
    %c0_56 = arith.constant 0 : index
    %164 = vector.load %arg9[%c0_55, %c0_56] : memref<32x32xbf16, #tpu.memory_space<vmem>>, vector<32x32xbf16>
    %cst_57 = arith.constant dense<0.000000e+00> : vector<8x32xf32>
    %165 = tpu.matmul %163, %164, %cst_57 {dimension_numbers = #tpu.dot_dimension_numbers<[1], [0], [0], [1], [0, 0, 1, 1], [], []>} : vector<8x32xbf16>, vector<32x32xbf16>, vector<8x32xf32> -> vector<8x32xf32>
    %c0_58 = arith.constant 0 : index
    %c0_59 = arith.constant 0 : index
    %166 = vector.load %arg10[%c0_58, %c0_59] : memref<1x32xf32, #tpu.memory_space<vmem>>, vector<1x32xf32>
    %167 = vector.broadcast %166 : vector<1x32xf32> to vector<8x32xf32>
    %168 = arith.addf %165, %167 : vector<8x32xf32>
    %169 = arith.addf %168, %26 : vector<8x32xf32>
    %c0_60 = arith.constant 0 : index
    %c0_61 = arith.constant 0 : index
    %170 = vector.load %arg11[%c0_60, %c0_61] : memref<1x32xf32, #tpu.memory_space<vmem>>, vector<1x32xf32>
    %c0_62 = arith.constant 0 : index
    %c0_63 = arith.constant 0 : index
    %171 = vector.load %arg12[%c0_62, %c0_63] : memref<1x32xf32, #tpu.memory_space<vmem>>, vector<1x32xf32>
    %cst_64 = arith.constant dense<0.000000e+00> : vector<8xf32>
    %172 = vector.multi_reduction <add>, %169, %cst_64 [1] : vector<8x32xf32> to vector<8xf32>
    %173 = vector.shape_cast %172 : vector<8xf32> to vector<8x1xf32>
    %cst_65 = arith.constant 3.200000e+01 : f32
    %174 = vector.broadcast %cst_65 : f32 to vector<8x1xf32>
    %175 = arith.divf %173, %174 : vector<8x1xf32>
    %176 = vector.broadcast %175 : vector<8x1xf32> to vector<8x32xf32>
    %177 = arith.subf %169, %176 : vector<8x32xf32>
    %178 = arith.mulf %177, %177 : vector<8x32xf32>
    %cst_66 = arith.constant dense<0.000000e+00> : vector<8xf32>
    %179 = vector.multi_reduction <add>, %178, %cst_66 [1] : vector<8x32xf32> to vector<8xf32>
    %180 = vector.shape_cast %179 : vector<8xf32> to vector<8x1xf32>
    %cst_67 = arith.constant 3.200000e+01 : f32
    %181 = vector.broadcast %cst_67 : f32 to vector<8x1xf32>
    %182 = arith.divf %180, %181 : vector<8x1xf32>
    %183 = vector.broadcast %175 : vector<8x1xf32> to vector<8x32xf32>
    %184 = arith.subf %169, %183 : vector<8x32xf32>
    %cst_68 = arith.constant 9.99999997E-7 : f32
    %185 = vector.broadcast %cst_68 : f32 to vector<8x1xf32>
    %186 = arith.addf %182, %185 : vector<8x1xf32>
    %187 = math.rsqrt %186 : vector<8x1xf32>
    %188 = vector.broadcast %187 : vector<8x1xf32> to vector<8x32xf32>
    %189 = arith.mulf %184, %188 : vector<8x32xf32>
    %190 = vector.broadcast %170 : vector<1x32xf32> to vector<8x32xf32>
    %191 = arith.mulf %189, %190 : vector<8x32xf32>
    %192 = vector.broadcast %171 : vector<1x32xf32> to vector<8x32xf32>
    %193 = arith.addf %191, %192 : vector<8x32xf32>
    %194 = arith.truncf %193 : vector<8x32xf32> to vector<8x32xbf16>
    %c0_69 = arith.constant 0 : index
    %c0_70 = arith.constant 0 : index
    %c0_71 = arith.constant 0 : index
    %195 = vector.load %arg15[%c0_69, %c0_70, %c0_71] : memref<1x8x32xbf16, #tpu.memory_space<vmem>>, vector<1x8x32xbf16>
    %196 = vector.shape_cast %195 : vector<1x8x32xbf16> to vector<8x32xbf16>
    %197 = vector.shape_cast %194 : vector<8x32xbf16> to vector<1x8x32xbf16>
    tpu.vector_store %arg15[%c0_69, %c0_70, %c0_71], %197 {strides = array<i32>} : memref<1x8x32xbf16, #tpu.memory_space<vmem>>, vector<1x8x32xbf16>,
    return
  }
  func.func @transform_0(%arg0: i32, %arg1: i32) -> (i32, i32, i32) {
    %c0_i32 = arith.constant 0 : i32
    %c0_i32_0 = arith.constant 0 : i32
    return %arg0, %arg1, %c0_i32 : i32, i32, i32
  }
  func.func @transform_1(%arg0: i32, %arg1: i32) -> (i32, i32, i32) {
    %c0_i32 = arith.constant 0 : i32
    %c0_i32_0 = arith.constant 0 : i32
    %c0_i32_1 = arith.constant 0 : i32
    return %arg0, %c0_i32, %c0_i32_0 : i32, i32, i32
  }
  func.func @transform_2(%arg0: i32, %arg1: i32) -> (i32, i32, i32) {
    %c0_i32 = arith.constant 0 : i32
    %c0_i32_0 = arith.constant 0 : i32
    %c0_i32_1 = arith.constant 0 : i32
    return %arg0, %c0_i32, %c0_i32_0 : i32, i32, i32
  }
  func.func @transform_3(%arg0: i32, %arg1: i32) -> (i32, i32) {
    %c0_i32 = arith.constant 0 : i32
    %c0_i32_0 = arith.constant 0 : i32
    %c0_i32_1 = arith.constant 0 : i32
    return %c0_i32, %c0_i32_0 : i32, i32
  }
  func.func @transform_4(%arg0: i32, %arg1: i32) -> (i32, i32) {
    %c0_i32 = arith.constant 0 : i32
    %c0_i32_0 = arith.constant 0 : i32
    %c0_i32_1 = arith.constant 0 : i32
    return %c0_i32, %c0_i32_0 : i32, i32
  }
  func.func @transform_5(%arg0: i32, %arg1: i32) -> (i32, i32) {
    %c0_i32 = arith.constant 0 : i32
    %c0_i32_0 = arith.constant 0 : i32
    %c0_i32_1 = arith.constant 0 : i32
    return %c0_i32, %c0_i32_0 : i32, i32
  }
  func.func @transform_6(%arg0: i32, %arg1: i32) -> (i32, i32) {
    %c0_i32 = arith.constant 0 : i32
    %c0_i32_0 = arith.constant 0 : i32
    %c0_i32_1 = arith.constant 0 : i32
    return %c0_i32, %c0_i32_0 : i32, i32
  }
  func.func @transform_7(%arg0: i32, %arg1: i32) -> (i32, i32) {
    %c0_i32 = arith.constant 0 : i32
    %c0_i32_0 = arith.constant 0 : i32
    %c0_i32_1 = arith.constant 0 : i32
    return %c0_i32, %c0_i32_0 : i32, i32
  }
  func.func @transform_8(%arg0: i32, %arg1: i32) -> (i32, i32) {
    %c0_i32 = arith.constant 0 : i32
    %c0_i32_0 = arith.constant 0 : i32
    %c0_i32_1 = arith.constant 0 : i32
    return %c0_i32, %c0_i32_0 : i32, i32
  }
  func.func @transform_9(%arg0: i32, %arg1: i32) -> (i32, i32) {
    %c0_i32 = arith.constant 0 : i32
    %c0_i32_0 = arith.constant 0 : i32
    %c0_i32_1 = arith.constant 0 : i32
    return %c0_i32, %c0_i32_0 : i32, i32
  }
  func.func @transform_10(%arg0: i32, %arg1: i32) -> (i32, i32) {
    %c0_i32 = arith.constant 0 : i32
    %c0_i32_0 = arith.constant 0 : i32
    %c0_i32_1 = arith.constant 0 : i32
    return %c0_i32, %c0_i32_0 : i32, i32
  }
  func.func @transform_11(%arg0: i32, %arg1: i32) -> (i32, i32) {
    %c0_i32 = arith.constant 0 : i32
    %c0_i32_0 = arith.constant 0 : i32
    %c0_i32_1 = arith.constant 0 : i32
    return %c0_i32, %c0_i32_0 : i32, i32
  }
  func.func @transform_12(%arg0: i32, %arg1: i32) -> (i32, i32) {
    %c0_i32 = arith.constant 0 : i32
    %c0_i32_0 = arith.constant 0 : i32
    %c0_i32_1 = arith.constant 0 : i32
    return %c0_i32, %c0_i32_0 : i32, i32
  }
  func.func @transform_13(%arg0: i32, %arg1: i32) -> (i32, i32, i32) {
    %c0_i32 = arith.constant 0 : i32
    %c0_i32_0 = arith.constant 0 : i32
    return %arg0, %arg1, %c0_i32 : i32, i32, i32
  }
}

module attributes {stable_mosaic.version = 11 : i64} {
  func.func @_ffn_ln_kernel(%arg0: i32, %arg1: i32, %arg2: memref<1x8x32xbf16, #tpu.memory_space<vmem>>, %arg3: memref<32x64xbf16, #tpu.memory_space<vmem>>, %arg4: memref<1x64xf32, #tpu.memory_space<vmem>>, %arg5: memref<64x32xbf16, #tpu.memory_space<vmem>>, %arg6: memref<1x32xf32, #tpu.memory_space<vmem>>, %arg7: memref<1x32xf32, #tpu.memory_space<vmem>>, %arg8: memref<1x32xf32, #tpu.memory_space<vmem>>, %arg9: memref<1x8x32xbf16, #tpu.memory_space<vmem>>) attributes {dimension_semantics = [#tpu.dimension_semantics<parallel>, #tpu.dimension_semantics<parallel>], iteration_bounds = array<i64: 2, 1>, scalar_prefetch = 0 : i64, scratch_operands = 0 : i64, tpu.core_type = #tpu.core_type<tc>, window_params = [{transform_indices = @transform_0, window_bounds = array<i64: 1, 8, 32>}, {pipeline_mode = #tpu.pipeline_mode<synchronous>, transform_indices = @transform_1, window_bounds = array<i64: 32, 64>}, {pipeline_mode = #tpu.pipeline_mode<synchronous>, transform_indices = @transform_2, window_bounds = array<i64: 1, 64>}, {pipeline_mode = #tpu.pipeline_mode<synchronous>, transform_indices = @transform_3, window_bounds = array<i64: 64, 32>}, {pipeline_mode = #tpu.pipeline_mode<synchronous>, transform_indices = @transform_4, window_bounds = array<i64: 1, 32>}, {pipeline_mode = #tpu.pipeline_mode<synchronous>, transform_indices = @transform_5, window_bounds = array<i64: 1, 32>}, {pipeline_mode = #tpu.pipeline_mode<synchronous>, transform_indices = @transform_6, window_bounds = array<i64: 1, 32>}, {transform_indices = @transform_7, window_bounds = array<i64: 1, 8, 32>}]} {
    %c0 = arith.constant 0 : index
    %c0_0 = arith.constant 0 : index
    %c0_1 = arith.constant 0 : index
    %0 = vector.load %arg2[%c0, %c0_0, %c0_1] : memref<1x8x32xbf16, #tpu.memory_space<vmem>>, vector<1x8x32xbf16>
    %1 = vector.shape_cast %0 : vector<1x8x32xbf16> to vector<8x32xbf16>
    %c0_2 = arith.constant 0 : index
    %c0_3 = arith.constant 0 : index
    %2 = vector.load %arg3[%c0_2, %c0_3] : memref<32x64xbf16, #tpu.memory_space<vmem>>, vector<32x64xbf16>
    %cst = arith.constant dense<0.000000e+00> : vector<8x64xf32>
    %3 = tpu.matmul %1, %2, %cst {dimension_numbers = #tpu.dot_dimension_numbers<[1], [0], [0], [1], [0, 0, 1, 1], [], []>} : vector<8x32xbf16>, vector<32x64xbf16>, vector<8x64xf32> -> vector<8x64xf32>
    %c0_4 = arith.constant 0 : index
    %c0_5 = arith.constant 0 : index
    %4 = vector.load %arg4[%c0_4, %c0_5] : memref<1x64xf32, #tpu.memory_space<vmem>>, vector<1x64xf32>
    %5 = vector.broadcast %4 : vector<1x64xf32> to vector<8x64xf32>
    %6 = arith.addf %3, %5 : vector<8x64xf32>
    %cst_6 = arith.constant 0.000000e+00 : f32
    %7 = vector.broadcast %cst_6 : f32 to vector<8x64xf32>
    %8 = arith.maximumf %6, %7 : vector<8x64xf32>
    %9 = arith.truncf %8 : vector<8x64xf32> to vector<8x64xbf16>
    %c0_7 = arith.constant 0 : index
    %c0_8 = arith.constant 0 : index
    %10 = vector.load %arg5[%c0_7, %c0_8] : memref<64x32xbf16, #tpu.memory_space<vmem>>, vector<64x32xbf16>
    %cst_9 = arith.constant dense<0.000000e+00> : vector<8x32xf32>
    %11 = tpu.matmul %9, %10, %cst_9 {dimension_numbers = #tpu.dot_dimension_numbers<[1], [0], [0], [1], [0, 0, 1, 1], [], []>} : vector<8x64xbf16>, vector<64x32xbf16>, vector<8x32xf32> -> vector<8x32xf32>
    %c0_10 = arith.constant 0 : index
    %c0_11 = arith.constant 0 : index
    %12 = vector.load %arg6[%c0_10, %c0_11] : memref<1x32xf32, #tpu.memory_space<vmem>>, vector<1x32xf32>
    %13 = vector.broadcast %12 : vector<1x32xf32> to vector<8x32xf32>
    %14 = arith.addf %11, %13 : vector<8x32xf32>
    %15 = arith.extf %1 : vector<8x32xbf16> to vector<8x32xf32>
    %16 = arith.addf %14, %15 : vector<8x32xf32>
    %c0_12 = arith.constant 0 : index
    %c0_13 = arith.constant 0 : index
    %17 = vector.load %arg7[%c0_12, %c0_13] : memref<1x32xf32, #tpu.memory_space<vmem>>, vector<1x32xf32>
    %c0_14 = arith.constant 0 : index
    %c0_15 = arith.constant 0 : index
    %18 = vector.load %arg8[%c0_14, %c0_15] : memref<1x32xf32, #tpu.memory_space<vmem>>, vector<1x32xf32>
    %cst_16 = arith.constant dense<0.000000e+00> : vector<8xf32>
    %19 = vector.multi_reduction <add>, %16, %cst_16 [1] : vector<8x32xf32> to vector<8xf32>
    %20 = vector.shape_cast %19 : vector<8xf32> to vector<8x1xf32>
    %cst_17 = arith.constant 3.200000e+01 : f32
    %21 = vector.broadcast %cst_17 : f32 to vector<8x1xf32>
    %22 = arith.divf %20, %21 : vector<8x1xf32>
    %23 = vector.broadcast %22 : vector<8x1xf32> to vector<8x32xf32>
    %24 = arith.subf %16, %23 : vector<8x32xf32>
    %25 = arith.mulf %24, %24 : vector<8x32xf32>
    %cst_18 = arith.constant dense<0.000000e+00> : vector<8xf32>
    %26 = vector.multi_reduction <add>, %25, %cst_18 [1] : vector<8x32xf32> to vector<8xf32>
    %27 = vector.shape_cast %26 : vector<8xf32> to vector<8x1xf32>
    %cst_19 = arith.constant 3.200000e+01 : f32
    %28 = vector.broadcast %cst_19 : f32 to vector<8x1xf32>
    %29 = arith.divf %27, %28 : vector<8x1xf32>
    %30 = vector.broadcast %22 : vector<8x1xf32> to vector<8x32xf32>
    %31 = arith.subf %16, %30 : vector<8x32xf32>
    %cst_20 = arith.constant 9.99999997E-7 : f32
    %32 = vector.broadcast %cst_20 : f32 to vector<8x1xf32>
    %33 = arith.addf %29, %32 : vector<8x1xf32>
    %34 = math.rsqrt %33 : vector<8x1xf32>
    %35 = vector.broadcast %34 : vector<8x1xf32> to vector<8x32xf32>
    %36 = arith.mulf %31, %35 : vector<8x32xf32>
    %37 = vector.broadcast %17 : vector<1x32xf32> to vector<8x32xf32>
    %38 = arith.mulf %36, %37 : vector<8x32xf32>
    %39 = vector.broadcast %18 : vector<1x32xf32> to vector<8x32xf32>
    %40 = arith.addf %38, %39 : vector<8x32xf32>
    %41 = arith.truncf %40 : vector<8x32xf32> to vector<8x32xbf16>
    %c0_21 = arith.constant 0 : index
    %c0_22 = arith.constant 0 : index
    %c0_23 = arith.constant 0 : index
    %42 = vector.load %arg9[%c0_21, %c0_22, %c0_23] : memref<1x8x32xbf16, #tpu.memory_space<vmem>>, vector<1x8x32xbf16>
    %43 = vector.shape_cast %42 : vector<1x8x32xbf16> to vector<8x32xbf16>
    %44 = vector.shape_cast %41 : vector<8x32xbf16> to vector<1x8x32xbf16>
    tpu.vector_store %arg9[%c0_21, %c0_22, %c0_23], %44 {strides = array<i32>} : memref<1x8x32xbf16, #tpu.memory_space<vmem>>, vector<1x8x32xbf16>,
    return
  }
  func.func @transform_0(%arg0: i32, %arg1: i32) -> (i32, i32, i32) {
    %c0_i32 = arith.constant 0 : i32
    %c0_i32_0 = arith.constant 0 : i32
    return %arg0, %arg1, %c0_i32 : i32, i32, i32
  }
  func.func @transform_1(%arg0: i32, %arg1: i32) -> (i32, i32) {
    %c0_i32 = arith.constant 0 : i32
    %c0_i32_0 = arith.constant 0 : i32
    %c0_i32_1 = arith.constant 0 : i32
    return %c0_i32, %c0_i32_0 : i32, i32
  }
  func.func @transform_2(%arg0: i32, %arg1: i32) -> (i32, i32) {
    %c0_i32 = arith.constant 0 : i32
    %c0_i32_0 = arith.constant 0 : i32
    %c0_i32_1 = arith.constant 0 : i32
    return %c0_i32, %c0_i32_0 : i32, i32
  }
  func.func @transform_3(%arg0: i32, %arg1: i32) -> (i32, i32) {
    %c0_i32 = arith.constant 0 : i32
    %c0_i32_0 = arith.constant 0 : i32
    %c0_i32_1 = arith.constant 0 : i32
    return %c0_i32, %c0_i32_0 : i32, i32
  }
  func.func @transform_4(%arg0: i32, %arg1: i32) -> (i32, i32) {
    %c0_i32 = arith.constant 0 : i32
    %c0_i32_0 = arith.constant 0 : i32
    %c0_i32_1 = arith.constant 0 : i32
    return %c0_i32, %c0_i32_0 : i32, i32
  }
  func.func @transform_5(%arg0: i32, %arg1: i32) -> (i32, i32) {
    %c0_i32 = arith.constant 0 : i32
    %c0_i32_0 = arith.constant 0 : i32
    %c0_i32_1 = arith.constant 0 : i32
    return %c0_i32, %c0_i32_0 : i32, i32
  }
  func.func @transform_6(%arg0: i32, %arg1: i32) -> (i32, i32) {
    %c0_i32 = arith.constant 0 : i32
    %c0_i32_0 = arith.constant 0 : i32
    %c0_i32_1 = arith.constant 0 : i32
    return %c0_i32, %c0_i32_0 : i32, i32
  }
  func.func @transform_7(%arg0: i32, %arg1: i32) -> (i32, i32, i32) {
    %c0_i32 = arith.constant 0 : i32
    %c0_i32_0 = arith.constant 0 : i32
    return %arg0, %arg1, %c0_i32 : i32, i32, i32
  }
}

module attributes {stable_mosaic.version = 11 : i64} {
  func.func @_attn_ln_kernel(%arg0: i32, %arg1: i32, %arg2: memref<1x8x32xbf16, #tpu.memory_space<vmem>>, %arg3: memref<1x8x32xbf16, #tpu.memory_space<vmem>>, %arg4: memref<1x1x8xf32, #tpu.memory_space<vmem>>, %arg5: memref<32x32xbf16, #tpu.memory_space<vmem>>, %arg6: memref<1x32xf32, #tpu.memory_space<vmem>>, %arg7: memref<32x64xbf16, #tpu.memory_space<vmem>>, %arg8: memref<1x64xf32, #tpu.memory_space<vmem>>, %arg9: memref<32x32xbf16, #tpu.memory_space<vmem>>, %arg10: memref<1x32xf32, #tpu.memory_space<vmem>>, %arg11: memref<1x32xf32, #tpu.memory_space<vmem>>, %arg12: memref<1x32xf32, #tpu.memory_space<vmem>>, %arg13: memref<1x32xf32, #tpu.memory_space<vmem>>, %arg14: memref<1x32xf32, #tpu.memory_space<vmem>>, %arg15: memref<1x8x32xbf16, #tpu.memory_space<vmem>>) attributes {dimension_semantics = [#tpu.dimension_semantics<parallel>, #tpu.dimension_semantics<parallel>], iteration_bounds = array<i64: 2, 1>, scalar_prefetch = 0 : i64, scratch_operands = 0 : i64, tpu.core_type = #tpu.core_type<tc>, window_params = [{transform_indices = @transform_0, window_bounds = array<i64: 1, 8, 32>}, {transform_indices = @transform_1, window_bounds = array<i64: 1, 8, 32>}, {transform_indices = @transform_2, window_bounds = array<i64: 1, 1, 8>}, {pipeline_mode = #tpu.pipeline_mode<synchronous>, transform_indices = @transform_3, window_bounds = array<i64: 32, 32>}, {pipeline_mode = #tpu.pipeline_mode<synchronous>, transform_indices = @transform_4, window_bounds = array<i64: 1, 32>}, {pipeline_mode = #tpu.pipeline_mode<synchronous>, transform_indices = @transform_5, window_bounds = array<i64: 32, 64>}, {pipeline_mode = #tpu.pipeline_mode<synchronous>, transform_indices = @transform_6, window_bounds = array<i64: 1, 64>}, {pipeline_mode = #tpu.pipeline_mode<synchronous>, transform_indices = @transform_7, window_bounds = array<i64: 32, 32>}, {pipeline_mode = #tpu.pipeline_mode<synchronous>, transform_indices = @transform_8, window_bounds = array<i64: 1, 32>}, {pipeline_mode = #tpu.pipeline_mode<synchronous>, transform_indices = @transform_9, window_bounds = array<i64: 1, 32>}, {pipeline_mode = #tpu.pipeline_mode<synchronous>, transform_indices = @transform_10, window_bounds = array<i64: 1, 32>}, {pipeline_mode = #tpu.pipeline_mode<synchronous>, transform_indices = @transform_11, window_bounds = array<i64: 1, 32>}, {pipeline_mode = #tpu.pipeline_mode<synchronous>, transform_indices = @transform_12, window_bounds = array<i64: 1, 32>}, {transform_indices = @transform_13, window_bounds = array<i64: 1, 8, 32>}]} {
    %c0 = arith.constant 0 : index
    %c0_0 = arith.constant 0 : index
    %c0_1 = arith.constant 0 : index
    %0 = vector.load %arg2[%c0, %c0_0, %c0_1] : memref<1x8x32xbf16, #tpu.memory_space<vmem>>, vector<1x8x32xbf16>
    %1 = vector.shape_cast %0 : vector<1x8x32xbf16> to vector<8x32xbf16>
    %c0_2 = arith.constant 0 : index
    %c0_3 = arith.constant 0 : index
    %c0_4 = arith.constant 0 : index
    %2 = vector.load %arg3[%c0_2, %c0_3, %c0_4] : memref<1x8x32xbf16, #tpu.memory_space<vmem>>, vector<1x8x32xbf16>
    %3 = vector.shape_cast %2 : vector<1x8x32xbf16> to vector<8x32xbf16>
    %4 = arith.extf %1 : vector<8x32xbf16> to vector<8x32xf32>
    %c0_5 = arith.constant 0 : index
    %c0_6 = arith.constant 0 : index
    %5 = vector.load %arg5[%c0_5, %c0_6] : memref<32x32xbf16, #tpu.memory_space<vmem>>, vector<32x32xbf16>
    %cst = arith.constant dense<0.000000e+00> : vector<8x32xf32>
    %6 = tpu.matmul %1, %5, %cst {dimension_numbers = #tpu.dot_dimension_numbers<[1], [0], [0], [1], [0, 0, 1, 1], [], []>} : vector<8x32xbf16>, vector<32x32xbf16>, vector<8x32xf32> -> vector<8x32xf32>
    %c0_7 = arith.constant 0 : index
    %c0_8 = arith.constant 0 : index
    %7 = vector.load %arg6[%c0_7, %c0_8] : memref<1x32xf32, #tpu.memory_space<vmem>>, vector<1x32xf32>
    %8 = vector.broadcast %7 : vector<1x32xf32> to vector<8x32xf32>
    %9 = arith.addf %6, %8 : vector<8x32xf32>
    %c0_9 = arith.constant 0 : index
    %c0_10 = arith.constant 0 : index
    %10 = vector.load %arg7[%c0_9, %c0_10] : memref<32x64xbf16, #tpu.memory_space<vmem>>, vector<32x64xbf16>
    %cst_11 = arith.constant dense<0.000000e+00> : vector<8x64xf32>
    %11 = tpu.matmul %3, %10, %cst_11 {dimension_numbers = #tpu.dot_dimension_numbers<[1], [0], [0], [1], [0, 0, 1, 1], [], []>} : vector<8x32xbf16>, vector<32x64xbf16>, vector<8x64xf32> -> vector<8x64xf32>
    %c0_12 = arith.constant 0 : index
    %c0_13 = arith.constant 0 : index
    %12 = vector.load %arg8[%c0_12, %c0_13] : memref<1x64xf32, #tpu.memory_space<vmem>>, vector<1x64xf32>
    %13 = vector.broadcast %12 : vector<1x64xf32> to vector<8x64xf32>
    %14 = arith.addf %11, %13 : vector<8x64xf32>
    %15 = vector.extract_strided_slice %14 {offsets = [0, 0], sizes = [8, 32], strides = [1, 1]} : vector<8x64xf32> to vector<8x32xf32>
    %16 = vector.extract_strided_slice %14 {offsets = [0, 32], sizes = [8, 32], strides = [1, 1]} : vector<8x64xf32> to vector<8x32xf32>
    %c0_14 = arith.constant 0 : index
    %c0_15 = arith.constant 0 : index
    %c0_16 = arith.constant 0 : index
    %17 = vector.load %arg4[%c0_14, %c0_15, %c0_16] : memref<1x1x8xf32, #tpu.memory_space<vmem>>, vector<1x1x8xf32>
    %18 = vector.shape_cast %17 : vector<1x1x8xf32> to vector<1x8xf32>
    %19 = vector.extract_strided_slice %9 {offsets = [0, 0], sizes = [8, 8], strides = [1, 1]} : vector<8x32xf32> to vector<8x8xf32>
    %20 = arith.truncf %19 : vector<8x8xf32> to vector<8x8xbf16>
    %21 = vector.extract_strided_slice %15 {offsets = [0, 0], sizes = [8, 8], strides = [1, 1]} : vector<8x32xf32> to vector<8x8xf32>
    %22 = arith.truncf %21 : vector<8x8xf32> to vector<8x8xbf16>
    %23 = vector.extract_strided_slice %16 {offsets = [0, 0], sizes = [8, 8], strides = [1, 1]} : vector<8x32xf32> to vector<8x8xf32>
    %24 = arith.truncf %23 : vector<8x8xf32> to vector<8x8xbf16>
    %cst_17 = arith.constant dense<0.000000e+00> : vector<8x8xf32>
    %25 = tpu.matmul %20, %22, %cst_17 {dimension_numbers = #tpu.dot_dimension_numbers<[1], [1], [0], [0], [0, 0, 1, 0], [], []>} : vector<8x8xbf16>, vector<8x8xbf16>, vector<8x8xf32> -> vector<8x8xf32>
    %cst_18 = arith.constant 0.353553385 : f32
    %26 = vector.broadcast %cst_18 : f32 to vector<8x8xf32>
    %27 = arith.mulf %25, %26 : vector<8x8xf32>
    %28 = vector.broadcast %18 : vector<1x8xf32> to vector<8x8xf32>
    %29 = arith.addf %27, %28 : vector<8x8xf32>
    %cst_19 = arith.constant dense<0xFF800000> : vector<8xf32>
    %30 = vector.multi_reduction <maximumf>, %29, %cst_19 [1] : vector<8x8xf32> to vector<8xf32>
    %31 = vector.shape_cast %30 : vector<8xf32> to vector<8x1xf32>
    %32 = vector.broadcast %31 : vector<8x1xf32> to vector<8x8xf32>
    %33 = arith.subf %29, %32 : vector<8x8xf32>
    %34 = math.exp %33 : vector<8x8xf32>
    %cst_20 = arith.constant dense<0.000000e+00> : vector<8xf32>
    %35 = vector.multi_reduction <add>, %34, %cst_20 [1] : vector<8x8xf32> to vector<8xf32>
    %36 = vector.shape_cast %35 : vector<8xf32> to vector<8x1xf32>
    %37 = tpu.reciprocal %36 {approx = true} : vector<8x1xf32> -> vector<8x1xf32>
    %38 = vector.broadcast %37 : vector<8x1xf32> to vector<8x8xf32>
    %39 = arith.mulf %34, %38 : vector<8x8xf32>
    %40 = arith.truncf %39 : vector<8x8xf32> to vector<8x8xbf16>
    %cst_21 = arith.constant dense<0.000000e+00> : vector<8x8xf32>
    %41 = tpu.matmul %40, %24, %cst_21 {dimension_numbers = #tpu.dot_dimension_numbers<[1], [0], [0], [1], [0, 0, 1, 1], [], []>} : vector<8x8xbf16>, vector<8x8xbf16>, vector<8x8xf32> -> vector<8x8xf32>
    %42 = vector.extract_strided_slice %9 {offsets = [0, 8], sizes = [8, 8], strides = [1, 1]} : vector<8x32xf32> to vector<8x8xf32>
    %43 = arith.truncf %42 : vector<8x8xf32> to vector<8x8xbf16>
    %44 = vector.extract_strided_slice %15 {offsets = [0, 8], sizes = [8, 8], strides = [1, 1]} : vector<8x32xf32> to vector<8x8xf32>
    %45 = arith.truncf %44 : vector<8x8xf32> to vector<8x8xbf16>
    %46 = vector.extract_strided_slice %16 {offsets = [0, 8], sizes = [8, 8], strides = [1, 1]} : vector<8x32xf32> to vector<8x8xf32>
    %47 = arith.truncf %46 : vector<8x8xf32> to vector<8x8xbf16>
    %cst_22 = arith.constant dense<0.000000e+00> : vector<8x8xf32>
    %48 = tpu.matmul %43, %45, %cst_22 {dimension_numbers = #tpu.dot_dimension_numbers<[1], [1], [0], [0], [0, 0, 1, 0], [], []>} : vector<8x8xbf16>, vector<8x8xbf16>, vector<8x8xf32> -> vector<8x8xf32>
    %cst_23 = arith.constant 0.353553385 : f32
    %49 = vector.broadcast %cst_23 : f32 to vector<8x8xf32>
    %50 = arith.mulf %48, %49 : vector<8x8xf32>
    %51 = vector.broadcast %18 : vector<1x8xf32> to vector<8x8xf32>
    %52 = arith.addf %50, %51 : vector<8x8xf32>
    %cst_24 = arith.constant dense<0xFF800000> : vector<8xf32>
    %53 = vector.multi_reduction <maximumf>, %52, %cst_24 [1] : vector<8x8xf32> to vector<8xf32>
    %54 = vector.shape_cast %53 : vector<8xf32> to vector<8x1xf32>
    %55 = vector.broadcast %54 : vector<8x1xf32> to vector<8x8xf32>
    %56 = arith.subf %52, %55 : vector<8x8xf32>
    %57 = math.exp %56 : vector<8x8xf32>
    %cst_25 = arith.constant dense<0.000000e+00> : vector<8xf32>
    %58 = vector.multi_reduction <add>, %57, %cst_25 [1] : vector<8x8xf32> to vector<8xf32>
    %59 = vector.shape_cast %58 : vector<8xf32> to vector<8x1xf32>
    %60 = tpu.reciprocal %59 {approx = true} : vector<8x1xf32> -> vector<8x1xf32>
    %61 = vector.broadcast %60 : vector<8x1xf32> to vector<8x8xf32>
    %62 = arith.mulf %57, %61 : vector<8x8xf32>
    %63 = arith.truncf %62 : vector<8x8xf32> to vector<8x8xbf16>
    %cst_26 = arith.constant dense<0.000000e+00> : vector<8x8xf32>
    %64 = tpu.matmul %63, %47, %cst_26 {dimension_numbers = #tpu.dot_dimension_numbers<[1], [0], [0], [1], [0, 0, 1, 1], [], []>} : vector<8x8xbf16>, vector<8x8xbf16>, vector<8x8xf32> -> vector<8x8xf32>
    %65 = vector.extract_strided_slice %9 {offsets = [0, 16], sizes = [8, 8], strides = [1, 1]} : vector<8x32xf32> to vector<8x8xf32>
    %66 = arith.truncf %65 : vector<8x8xf32> to vector<8x8xbf16>
    %67 = vector.extract_strided_slice %15 {offsets = [0, 16], sizes = [8, 8], strides = [1, 1]} : vector<8x32xf32> to vector<8x8xf32>
    %68 = arith.truncf %67 : vector<8x8xf32> to vector<8x8xbf16>
    %69 = vector.extract_strided_slice %16 {offsets = [0, 16], sizes = [8, 8], strides = [1, 1]} : vector<8x32xf32> to vector<8x8xf32>
    %70 = arith.truncf %69 : vector<8x8xf32> to vector<8x8xbf16>
    %cst_27 = arith.constant dense<0.000000e+00> : vector<8x8xf32>
    %71 = tpu.matmul %66, %68, %cst_27 {dimension_numbers = #tpu.dot_dimension_numbers<[1], [1], [0], [0], [0, 0, 1, 0], [], []>} : vector<8x8xbf16>, vector<8x8xbf16>, vector<8x8xf32> -> vector<8x8xf32>
    %cst_28 = arith.constant 0.353553385 : f32
    %72 = vector.broadcast %cst_28 : f32 to vector<8x8xf32>
    %73 = arith.mulf %71, %72 : vector<8x8xf32>
    %74 = vector.broadcast %18 : vector<1x8xf32> to vector<8x8xf32>
    %75 = arith.addf %73, %74 : vector<8x8xf32>
    %cst_29 = arith.constant dense<0xFF800000> : vector<8xf32>
    %76 = vector.multi_reduction <maximumf>, %75, %cst_29 [1] : vector<8x8xf32> to vector<8xf32>
    %77 = vector.shape_cast %76 : vector<8xf32> to vector<8x1xf32>
    %78 = vector.broadcast %77 : vector<8x1xf32> to vector<8x8xf32>
    %79 = arith.subf %75, %78 : vector<8x8xf32>
    %80 = math.exp %79 : vector<8x8xf32>
    %cst_30 = arith.constant dense<0.000000e+00> : vector<8xf32>
    %81 = vector.multi_reduction <add>, %80, %cst_30 [1] : vector<8x8xf32> to vector<8xf32>
    %82 = vector.shape_cast %81 : vector<8xf32> to vector<8x1xf32>
    %83 = tpu.reciprocal %82 {approx = true} : vector<8x1xf32> -> vector<8x1xf32>
    %84 = vector.broadcast %83 : vector<8x1xf32> to vector<8x8xf32>
    %85 = arith.mulf %80, %84 : vector<8x8xf32>
    %86 = arith.truncf %85 : vector<8x8xf32> to vector<8x8xbf16>
    %cst_31 = arith.constant dense<0.000000e+00> : vector<8x8xf32>
    %87 = tpu.matmul %86, %70, %cst_31 {dimension_numbers = #tpu.dot_dimension_numbers<[1], [0], [0], [1], [0, 0, 1, 1], [], []>} : vector<8x8xbf16>, vector<8x8xbf16>, vector<8x8xf32> -> vector<8x8xf32>
    %88 = vector.extract_strided_slice %9 {offsets = [0, 24], sizes = [8, 8], strides = [1, 1]} : vector<8x32xf32> to vector<8x8xf32>
    %89 = arith.truncf %88 : vector<8x8xf32> to vector<8x8xbf16>
    %90 = vector.extract_strided_slice %15 {offsets = [0, 24], sizes = [8, 8], strides = [1, 1]} : vector<8x32xf32> to vector<8x8xf32>
    %91 = arith.truncf %90 : vector<8x8xf32> to vector<8x8xbf16>
    %92 = vector.extract_strided_slice %16 {offsets = [0, 24], sizes = [8, 8], strides = [1, 1]} : vector<8x32xf32> to vector<8x8xf32>
    %93 = arith.truncf %92 : vector<8x8xf32> to vector<8x8xbf16>
    %cst_32 = arith.constant dense<0.000000e+00> : vector<8x8xf32>
    %94 = tpu.matmul %89, %91, %cst_32 {dimension_numbers = #tpu.dot_dimension_numbers<[1], [1], [0], [0], [0, 0, 1, 0], [], []>} : vector<8x8xbf16>, vector<8x8xbf16>, vector<8x8xf32> -> vector<8x8xf32>
    %cst_33 = arith.constant 0.353553385 : f32
    %95 = vector.broadcast %cst_33 : f32 to vector<8x8xf32>
    %96 = arith.mulf %94, %95 : vector<8x8xf32>
    %97 = vector.broadcast %18 : vector<1x8xf32> to vector<8x8xf32>
    %98 = arith.addf %96, %97 : vector<8x8xf32>
    %cst_34 = arith.constant dense<0xFF800000> : vector<8xf32>
    %99 = vector.multi_reduction <maximumf>, %98, %cst_34 [1] : vector<8x8xf32> to vector<8xf32>
    %100 = vector.shape_cast %99 : vector<8xf32> to vector<8x1xf32>
    %101 = vector.broadcast %100 : vector<8x1xf32> to vector<8x8xf32>
    %102 = arith.subf %98, %101 : vector<8x8xf32>
    %103 = math.exp %102 : vector<8x8xf32>
    %cst_35 = arith.constant dense<0.000000e+00> : vector<8xf32>
    %104 = vector.multi_reduction <add>, %103, %cst_35 [1] : vector<8x8xf32> to vector<8xf32>
    %105 = vector.shape_cast %104 : vector<8xf32> to vector<8x1xf32>
    %106 = tpu.reciprocal %105 {approx = true} : vector<8x1xf32> -> vector<8x1xf32>
    %107 = vector.broadcast %106 : vector<8x1xf32> to vector<8x8xf32>
    %108 = arith.mulf %103, %107 : vector<8x8xf32>
    %109 = arith.truncf %108 : vector<8x8xf32> to vector<8x8xbf16>
    %cst_36 = arith.constant dense<0.000000e+00> : vector<8x8xf32>
    %110 = tpu.matmul %109, %93, %cst_36 {dimension_numbers = #tpu.dot_dimension_numbers<[1], [0], [0], [1], [0, 0, 1, 1], [], []>} : vector<8x8xbf16>, vector<8x8xbf16>, vector<8x8xf32> -> vector<8x8xf32>
    %111 = tpu.concatenate %41, %64, %87, %110 in 1 : vector<8x8xf32>, vector<8x8xf32>, vector<8x8xf32>, vector<8x8xf32> -> vector<8x32xf32>
    %112 = arith.truncf %111 : vector<8x32xf32> to vector<8x32xbf16>
    %c0_37 = arith.constant 0 : index
    %c0_38 = arith.constant 0 : index
    %113 = vector.load %arg9[%c0_37, %c0_38] : memref<32x32xbf16, #tpu.memory_space<vmem>>, vector<32x32xbf16>
    %cst_39 = arith.constant dense<0.000000e+00> : vector<8x32xf32>
    %114 = tpu.matmul %112, %113, %cst_39 {dimension_numbers = #tpu.dot_dimension_numbers<[1], [0], [0], [1], [0, 0, 1, 1], [], []>} : vector<8x32xbf16>, vector<32x32xbf16>, vector<8x32xf32> -> vector<8x32xf32>
    %c0_40 = arith.constant 0 : index
    %c0_41 = arith.constant 0 : index
    %115 = vector.load %arg10[%c0_40, %c0_41] : memref<1x32xf32, #tpu.memory_space<vmem>>, vector<1x32xf32>
    %116 = vector.broadcast %115 : vector<1x32xf32> to vector<8x32xf32>
    %117 = arith.addf %114, %116 : vector<8x32xf32>
    %118 = arith.addf %117, %4 : vector<8x32xf32>
    %c0_42 = arith.constant 0 : index
    %c0_43 = arith.constant 0 : index
    %119 = vector.load %arg11[%c0_42, %c0_43] : memref<1x32xf32, #tpu.memory_space<vmem>>, vector<1x32xf32>
    %c0_44 = arith.constant 0 : index
    %c0_45 = arith.constant 0 : index
    %120 = vector.load %arg12[%c0_44, %c0_45] : memref<1x32xf32, #tpu.memory_space<vmem>>, vector<1x32xf32>
    %cst_46 = arith.constant dense<0.000000e+00> : vector<8xf32>
    %121 = vector.multi_reduction <add>, %118, %cst_46 [1] : vector<8x32xf32> to vector<8xf32>
    %122 = vector.shape_cast %121 : vector<8xf32> to vector<8x1xf32>
    %cst_47 = arith.constant 3.200000e+01 : f32
    %123 = vector.broadcast %cst_47 : f32 to vector<8x1xf32>
    %124 = arith.divf %122, %123 : vector<8x1xf32>
    %125 = vector.broadcast %124 : vector<8x1xf32> to vector<8x32xf32>
    %126 = arith.subf %118, %125 : vector<8x32xf32>
    %127 = arith.mulf %126, %126 : vector<8x32xf32>
    %cst_48 = arith.constant dense<0.000000e+00> : vector<8xf32>
    %128 = vector.multi_reduction <add>, %127, %cst_48 [1] : vector<8x32xf32> to vector<8xf32>
    %129 = vector.shape_cast %128 : vector<8xf32> to vector<8x1xf32>
    %cst_49 = arith.constant 3.200000e+01 : f32
    %130 = vector.broadcast %cst_49 : f32 to vector<8x1xf32>
    %131 = arith.divf %129, %130 : vector<8x1xf32>
    %132 = vector.broadcast %124 : vector<8x1xf32> to vector<8x32xf32>
    %133 = arith.subf %118, %132 : vector<8x32xf32>
    %cst_50 = arith.constant 9.99999997E-7 : f32
    %134 = vector.broadcast %cst_50 : f32 to vector<8x1xf32>
    %135 = arith.addf %131, %134 : vector<8x1xf32>
    %136 = math.rsqrt %135 : vector<8x1xf32>
    %137 = vector.broadcast %136 : vector<8x1xf32> to vector<8x32xf32>
    %138 = arith.mulf %133, %137 : vector<8x32xf32>
    %139 = vector.broadcast %119 : vector<1x32xf32> to vector<8x32xf32>
    %140 = arith.mulf %138, %139 : vector<8x32xf32>
    %141 = vector.broadcast %120 : vector<1x32xf32> to vector<8x32xf32>
    %142 = arith.addf %140, %141 : vector<8x32xf32>
    %143 = arith.truncf %142 : vector<8x32xf32> to vector<8x32xbf16>
    %c0_51 = arith.constant 0 : index
    %c0_52 = arith.constant 0 : index
    %c0_53 = arith.constant 0 : index
    %144 = vector.load %arg15[%c0_51, %c0_52, %c0_53] : memref<1x8x32xbf16, #tpu.memory_space<vmem>>, vector<1x8x32xbf16>
    %145 = vector.shape_cast %144 : vector<1x8x32xbf16> to vector<8x32xbf16>
    %146 = vector.shape_cast %143 : vector<8x32xbf16> to vector<1x8x32xbf16>
    tpu.vector_store %arg15[%c0_51, %c0_52, %c0_53], %146 {strides = array<i32>} : memref<1x8x32xbf16, #tpu.memory_space<vmem>>, vector<1x8x32xbf16>,
    return
  }
  func.func @transform_0(%arg0: i32, %arg1: i32) -> (i32, i32, i32) {
    %c0_i32 = arith.constant 0 : i32
    %c0_i32_0 = arith.constant 0 : i32
    return %arg0, %arg1, %c0_i32 : i32, i32, i32
  }
  func.func @transform_1(%arg0: i32, %arg1: i32) -> (i32, i32, i32) {
    %c0_i32 = arith.constant 0 : i32
    %c0_i32_0 = arith.constant 0 : i32
    %c0_i32_1 = arith.constant 0 : i32
    return %arg0, %c0_i32, %c0_i32_0 : i32, i32, i32
  }
  func.func @transform_2(%arg0: i32, %arg1: i32) -> (i32, i32, i32) {
    %c0_i32 = arith.constant 0 : i32
    %c0_i32_0 = arith.constant 0 : i32
    %c0_i32_1 = arith.constant 0 : i32
    return %arg0, %c0_i32, %c0_i32_0 : i32, i32, i32
  }
  func.func @transform_3(%arg0: i32, %arg1: i32) -> (i32, i32) {
    %c0_i32 = arith.constant 0 : i32
    %c0_i32_0 = arith.constant 0 : i32
    %c0_i32_1 = arith.constant 0 : i32
    return %c0_i32, %c0_i32_0 : i32, i32
  }
  func.func @transform_4(%arg0: i32, %arg1: i32) -> (i32, i32) {
    %c0_i32 = arith.constant 0 : i32
    %c0_i32_0 = arith.constant 0 : i32
    %c0_i32_1 = arith.constant 0 : i32
    return %c0_i32, %c0_i32_0 : i32, i32
  }
  func.func @transform_5(%arg0: i32, %arg1: i32) -> (i32, i32) {
    %c0_i32 = arith.constant 0 : i32
    %c0_i32_0 = arith.constant 0 : i32
    %c0_i32_1 = arith.constant 0 : i32
    return %c0_i32, %c0_i32_0 : i32, i32
  }
  func.func @transform_6(%arg0: i32, %arg1: i32) -> (i32, i32) {
    %c0_i32 = arith.constant 0 : i32
    %c0_i32_0 = arith.constant 0 : i32
    %c0_i32_1 = arith.constant 0 : i32
    return %c0_i32, %c0_i32_0 : i32, i32
  }
  func.func @transform_7(%arg0: i32, %arg1: i32) -> (i32, i32) {
    %c0_i32 = arith.constant 0 : i32
    %c0_i32_0 = arith.constant 0 : i32
    %c0_i32_1 = arith.constant 0 : i32
    return %c0_i32, %c0_i32_0 : i32, i32
  }
  func.func @transform_8(%arg0: i32, %arg1: i32) -> (i32, i32) {
    %c0_i32 = arith.constant 0 : i32
    %c0_i32_0 = arith.constant 0 : i32
    %c0_i32_1 = arith.constant 0 : i32
    return %c0_i32, %c0_i32_0 : i32, i32
  }
  func.func @transform_9(%arg0: i32, %arg1: i32) -> (i32, i32) {
    %c0_i32 = arith.constant 0 : i32
    %c0_i32_0 = arith.constant 0 : i32
    %c0_i32_1 = arith.constant 0 : i32
    return %c0_i32, %c0_i32_0 : i32, i32
  }
  func.func @transform_10(%arg0: i32, %arg1: i32) -> (i32, i32) {
    %c0_i32 = arith.constant 0 : i32
    %c0_i32_0 = arith.constant 0 : i32
    %c0_i32_1 = arith.constant 0 : i32
    return %c0_i32, %c0_i32_0 : i32, i32
  }
  func.func @transform_11(%arg0: i32, %arg1: i32) -> (i32, i32) {
    %c0_i32 = arith.constant 0 : i32
    %c0_i32_0 = arith.constant 0 : i32
    %c0_i32_1 = arith.constant 0 : i32
    return %c0_i32, %c0_i32_0 : i32, i32
  }
  func.func @transform_12(%arg0: i32, %arg1: i32) -> (i32, i32) {
    %c0_i32 = arith.constant 0 : i32
    %c0_i32_0 = arith.constant 0 : i32
    %c0_i32_1 = arith.constant 0 : i32
    return %c0_i32, %c0_i32_0 : i32, i32
  }
  func.func @transform_13(%arg0: i32, %arg1: i32) -> (i32, i32, i32) {
    %c0_i32 = arith.constant 0 : i32
    %c0_i32_0 = arith.constant 0 : i32
    return %arg0, %arg1, %c0_i32 : i32, i32, i32
  }
}

module attributes {stable_mosaic.version = 11 : i64} {
  func.func @_sieve_jointer_kernel(%arg0: i32, %arg1: i32, %arg2: memref<1x8x32xbf16, #tpu.memory_space<vmem>>, %arg3: memref<1x8x32xbf16, #tpu.memory_space<vmem>>, %arg4: memref<1x8x32xbf16, #tpu.memory_space<vmem>>, %arg5: memref<1x8x1xf32, #tpu.memory_space<vmem>>, %arg6: memref<1x1x8xf32, #tpu.memory_space<vmem>>, %arg7: memref<1x8x8xf32, #tpu.memory_space<vmem>>) attributes {dimension_semantics = [#tpu.dimension_semantics<parallel>, #tpu.dimension_semantics<parallel>], iteration_bounds = array<i64: 2, 1>, scalar_prefetch = 0 : i64, scratch_operands = 0 : i64, tpu.core_type = #tpu.core_type<tc>, window_params = [{transform_indices = @transform_0, window_bounds = array<i64: 1, 8, 32>}, {transform_indices = @transform_1, window_bounds = array<i64: 1, 8, 32>}, {transform_indices = @transform_2, window_bounds = array<i64: 1, 8, 32>}, {transform_indices = @transform_3, window_bounds = array<i64: 1, 8, 1>}, {transform_indices = @transform_4, window_bounds = array<i64: 1, 1, 8>}, {transform_indices = @transform_5, window_bounds = array<i64: 1, 8, 8>}]} {
    %c0 = arith.constant 0 : index
    %c0_0 = arith.constant 0 : index
    %c0_1 = arith.constant 0 : index
    %0 = vector.load %arg2[%c0, %c0_0, %c0_1] : memref<1x8x32xbf16, #tpu.memory_space<vmem>>, vector<1x8x32xbf16>
    %1 = vector.shape_cast %0 : vector<1x8x32xbf16> to vector<8x32xbf16>
    %c0_2 = arith.constant 0 : index
    %c0_3 = arith.constant 0 : index
    %c0_4 = arith.constant 0 : index
    %2 = vector.load %arg3[%c0_2, %c0_3, %c0_4] : memref<1x8x32xbf16, #tpu.memory_space<vmem>>, vector<1x8x32xbf16>
    %3 = vector.shape_cast %2 : vector<1x8x32xbf16> to vector<8x32xbf16>
    %c0_5 = arith.constant 0 : index
    %c0_6 = arith.constant 0 : index
    %c0_7 = arith.constant 0 : index
    %4 = vector.load %arg4[%c0_5, %c0_6, %c0_7] : memref<1x8x32xbf16, #tpu.memory_space<vmem>>, vector<1x8x32xbf16>
    %5 = vector.shape_cast %4 : vector<1x8x32xbf16> to vector<8x32xbf16>
    %cst = arith.constant dense<0.000000e+00> : vector<8x8xf32>
    %6 = tpu.matmul %1, %3, %cst {dimension_numbers = #tpu.dot_dimension_numbers<[1], [1], [0], [0], [0, 0, 1, 0], [], []>} : vector<8x32xbf16>, vector<8x32xbf16>, vector<8x8xf32> -> vector<8x8xf32>
    %cst_8 = arith.constant 0.176776692 : f32
    %7 = vector.broadcast %cst_8 : f32 to vector<8x8xf32>
    %8 = arith.mulf %6, %7 : vector<8x8xf32>
    %9 = arith.negf %8 : vector<8x8xf32>
    %10 = math.exp %9 : vector<8x8xf32>
    %cst_9 = arith.constant 1.000000e+00 : f32
    %11 = vector.broadcast %cst_9 : f32 to vector<8x8xf32>
    %12 = arith.addf %11, %10 : vector<8x8xf32>
    %13 = arith.divf %11, %12 : vector<8x8xf32>
    %cst_10 = arith.constant dense<0.000000e+00> : vector<8x8xf32>
    %14 = tpu.matmul %1, %5, %cst_10 {dimension_numbers = #tpu.dot_dimension_numbers<[1], [1], [0], [0], [0, 0, 1, 0], [], []>} : vector<8x32xbf16>, vector<8x32xbf16>, vector<8x8xf32> -> vector<8x8xf32>
    %cst_11 = arith.constant 0.176776692 : f32
    %15 = vector.broadcast %cst_11 : f32 to vector<8x8xf32>
    %16 = arith.mulf %14, %15 : vector<8x8xf32>
    %17 = arith.negf %16 : vector<8x8xf32>
    %18 = math.exp %17 : vector<8x8xf32>
    %cst_12 = arith.constant 1.000000e+00 : f32
    %19 = vector.broadcast %cst_12 : f32 to vector<8x8xf32>
    %20 = arith.addf %19, %18 : vector<8x8xf32>
    %21 = arith.divf %19, %20 : vector<8x8xf32>
    %22 = arith.mulf %13, %21 : vector<8x8xf32>
    %c0_13 = arith.constant 0 : index
    %c0_14 = arith.constant 0 : index
    %c0_15 = arith.constant 0 : index
    %23 = vector.load %arg5[%c0_13, %c0_14, %c0_15] : memref<1x8x1xf32, #tpu.memory_space<vmem>>, vector<1x8x1xf32>
    %24 = vector.shape_cast %23 : vector<1x8x1xf32> to vector<8x1xf32>
    %c0_16 = arith.constant 0 : index
    %c0_17 = arith.constant 0 : index
    %c0_18 = arith.constant 0 : index
    %25 = vector.load %arg6[%c0_16, %c0_17, %c0_18] : memref<1x1x8xf32, #tpu.memory_space<vmem>>, vector<1x1x8xf32>
    %26 = vector.shape_cast %25 : vector<1x1x8xf32> to vector<1x8xf32>
    %27 = vector.broadcast %24 : vector<8x1xf32> to vector<8x8xf32>
    %28 = vector.broadcast %26 : vector<1x8xf32> to vector<8x8xf32>
    %29 = arith.mulf %27, %28 : vector<8x8xf32>
    %30 = arith.mulf %22, %29 : vector<8x8xf32>
    %c0_19 = arith.constant 0 : index
    %c0_20 = arith.constant 0 : index
    %c0_21 = arith.constant 0 : index
    %31 = vector.load %arg7[%c0_19, %c0_20, %c0_21] : memref<1x8x8xf32, #tpu.memory_space<vmem>>, vector<1x8x8xf32>
    %32 = vector.shape_cast %31 : vector<1x8x8xf32> to vector<8x8xf32>
    %33 = vector.shape_cast %30 : vector<8x8xf32> to vector<1x8x8xf32>
    tpu.vector_store %arg7[%c0_19, %c0_20, %c0_21], %33 {strides = array<i32>} : memref<1x8x8xf32, #tpu.memory_space<vmem>>, vector<1x8x8xf32>,
    return
  }
  func.func @transform_0(%arg0: i32, %arg1: i32) -> (i32, i32, i32) {
    %c0_i32 = arith.constant 0 : i32
    %c0_i32_0 = arith.constant 0 : i32
    return %arg0, %arg1, %c0_i32 : i32, i32, i32
  }
  func.func @transform_1(%arg0: i32, %arg1: i32) -> (i32, i32, i32) {
    %c0_i32 = arith.constant 0 : i32
    %c0_i32_0 = arith.constant 0 : i32
    %c0_i32_1 = arith.constant 0 : i32
    return %arg0, %c0_i32, %c0_i32_0 : i32, i32, i32
  }
  func.func @transform_2(%arg0: i32, %arg1: i32) -> (i32, i32, i32) {
    %c0_i32 = arith.constant 0 : i32
    %c0_i32_0 = arith.constant 0 : i32
    %c0_i32_1 = arith.constant 0 : i32
    return %arg0, %c0_i32, %c0_i32_0 : i32, i32, i32
  }
  func.func @transform_3(%arg0: i32, %arg1: i32) -> (i32, i32, i32) {
    %c0_i32 = arith.constant 0 : i32
    %c0_i32_0 = arith.constant 0 : i32
    return %arg0, %arg1, %c0_i32 : i32, i32, i32
  }
  func.func @transform_4(%arg0: i32, %arg1: i32) -> (i32, i32, i32) {
    %c0_i32 = arith.constant 0 : i32
    %c0_i32_0 = arith.constant 0 : i32
    %c0_i32_1 = arith.constant 0 : i32
    return %arg0, %c0_i32, %c0_i32_0 : i32, i32, i32
  }
  func.func @transform_5(%arg0: i32, %arg1: i32) -> (i32, i32, i32) {
    %c0_i32 = arith.constant 0 : i32
    %c0_i32_0 = arith.constant 0 : i32
    return %arg0, %arg1, %c0_i32 : i32, i32, i32
  }
}

module attributes {stable_mosaic.version = 11 : i64} {
  func.func @_jointer_kernel(%arg0: i32, %arg1: i32, %arg2: memref<1x8x32xbf16, #tpu.memory_space<vmem>>, %arg3: memref<1x8x32xbf16, #tpu.memory_space<vmem>>, %arg4: memref<1x8x1xf32, #tpu.memory_space<vmem>>, %arg5: memref<1x1x8xf32, #tpu.memory_space<vmem>>, %arg6: memref<1x8x8xf32, #tpu.memory_space<vmem>>) attributes {dimension_semantics = [#tpu.dimension_semantics<parallel>, #tpu.dimension_semantics<parallel>], iteration_bounds = array<i64: 2, 1>, scalar_prefetch = 0 : i64, scratch_operands = 0 : i64, tpu.core_type = #tpu.core_type<tc>, window_params = [{transform_indices = @transform_0, window_bounds = array<i64: 1, 8, 32>}, {transform_indices = @transform_1, window_bounds = array<i64: 1, 8, 32>}, {transform_indices = @transform_2, window_bounds = array<i64: 1, 8, 1>}, {transform_indices = @transform_3, window_bounds = array<i64: 1, 1, 8>}, {transform_indices = @transform_4, window_bounds = array<i64: 1, 8, 8>}]} {
    %c0 = arith.constant 0 : index
    %c0_0 = arith.constant 0 : index
    %c0_1 = arith.constant 0 : index
    %0 = vector.load %arg2[%c0, %c0_0, %c0_1] : memref<1x8x32xbf16, #tpu.memory_space<vmem>>, vector<1x8x32xbf16>
    %1 = vector.shape_cast %0 : vector<1x8x32xbf16> to vector<8x32xbf16>
    %c0_2 = arith.constant 0 : index
    %c0_3 = arith.constant 0 : index
    %c0_4 = arith.constant 0 : index
    %2 = vector.load %arg3[%c0_2, %c0_3, %c0_4] : memref<1x8x32xbf16, #tpu.memory_space<vmem>>, vector<1x8x32xbf16>
    %3 = vector.shape_cast %2 : vector<1x8x32xbf16> to vector<8x32xbf16>
    %cst = arith.constant dense<0.000000e+00> : vector<8x8xf32>
    %4 = tpu.matmul %1, %3, %cst {dimension_numbers = #tpu.dot_dimension_numbers<[1], [1], [0], [0], [0, 0, 1, 0], [], []>} : vector<8x32xbf16>, vector<8x32xbf16>, vector<8x8xf32> -> vector<8x8xf32>
    %cst_5 = arith.constant 0.176776692 : f32
    %5 = vector.broadcast %cst_5 : f32 to vector<8x8xf32>
    %6 = arith.mulf %4, %5 : vector<8x8xf32>
    %7 = arith.negf %6 : vector<8x8xf32>
    %8 = math.exp %7 : vector<8x8xf32>
    %cst_6 = arith.constant 1.000000e+00 : f32
    %9 = vector.broadcast %cst_6 : f32 to vector<8x8xf32>
    %10 = arith.addf %9, %8 : vector<8x8xf32>
    %11 = arith.divf %9, %10 : vector<8x8xf32>
    %c0_7 = arith.constant 0 : index
    %c0_8 = arith.constant 0 : index
    %c0_9 = arith.constant 0 : index
    %12 = vector.load %arg4[%c0_7, %c0_8, %c0_9] : memref<1x8x1xf32, #tpu.memory_space<vmem>>, vector<1x8x1xf32>
    %13 = vector.shape_cast %12 : vector<1x8x1xf32> to vector<8x1xf32>
    %c0_10 = arith.constant 0 : index
    %c0_11 = arith.constant 0 : index
    %c0_12 = arith.constant 0 : index
    %14 = vector.load %arg5[%c0_10, %c0_11, %c0_12] : memref<1x1x8xf32, #tpu.memory_space<vmem>>, vector<1x1x8xf32>
    %15 = vector.shape_cast %14 : vector<1x1x8xf32> to vector<1x8xf32>
    %16 = vector.broadcast %13 : vector<8x1xf32> to vector<8x8xf32>
    %17 = vector.broadcast %15 : vector<1x8xf32> to vector<8x8xf32>
    %18 = arith.mulf %16, %17 : vector<8x8xf32>
    %19 = tpu.iota {dimensions = array<i32: 0>} : vector<8x8xi32>
    %c8_i32 = arith.constant 8 : i32
    %20 = arith.muli %arg1, %c8_i32 : i32
    %21 = vector.broadcast %20 : i32 to vector<8x8xi32>
    %22 = arith.addi %19, %21 : vector<8x8xi32>
    %23 = tpu.iota {dimensions = array<i32: 1>} : vector<8x8xi32>
    %24 = arith.cmpi sgt, %23, %22 : vector<8x8xi32>
    %25 = arith.extui %24 : vector<8x8xi1> to vector<8x8xi32>
    %26 = arith.sitofp %25 : vector<8x8xi32> to vector<8x8xf32>
    %27 = arith.mulf %18, %26 : vector<8x8xf32>
    %28 = arith.mulf %11, %27 : vector<8x8xf32>
    %c0_13 = arith.constant 0 : index
    %c0_14 = arith.constant 0 : index
    %c0_15 = arith.constant 0 : index
    %29 = vector.load %arg6[%c0_13, %c0_14, %c0_15] : memref<1x8x8xf32, #tpu.memory_space<vmem>>, vector<1x8x8xf32>
    %30 = vector.shape_cast %29 : vector<1x8x8xf32> to vector<8x8xf32>
    %31 = vector.shape_cast %28 : vector<8x8xf32> to vector<1x8x8xf32>
    tpu.vector_store %arg6[%c0_13, %c0_14, %c0_15], %31 {strides = array<i32>} : memref<1x8x8xf32, #tpu.memory_space<vmem>>, vector<1x8x8xf32>,
    return
  }
  func.func @transform_0(%arg0: i32, %arg1: i32) -> (i32, i32, i32) {
    %c0_i32 = arith.constant 0 : i32
    %c0_i32_0 = arith.constant 0 : i32
    return %arg0, %arg1, %c0_i32 : i32, i32, i32
  }
  func.func @transform_1(%arg0: i32, %arg1: i32) -> (i32, i32, i32) {
    %c0_i32 = arith.constant 0 : i32
    %c0_i32_0 = arith.constant 0 : i32
    %c0_i32_1 = arith.constant 0 : i32
    return %arg0, %c0_i32, %c0_i32_0 : i32, i32, i32
  }
  func.func @transform_2(%arg0: i32, %arg1: i32) -> (i32, i32, i32) {
    %c0_i32 = arith.constant 0 : i32
    %c0_i32_0 = arith.constant 0 : i32
    return %arg0, %arg1, %c0_i32 : i32, i32, i32
  }
  func.func @transform_3(%arg0: i32, %arg1: i32) -> (i32, i32, i32) {
    %c0_i32 = arith.constant 0 : i32
    %c0_i32_0 = arith.constant 0 : i32
    %c0_i32_1 = arith.constant 0 : i32
    return %arg0, %c0_i32, %c0_i32_0 : i32, i32, i32
  }
  func.func @transform_4(%arg0: i32, %arg1: i32) -> (i32, i32, i32) {
    %c0_i32 = arith.constant 0 : i32
    %c0_i32_0 = arith.constant 0 : i32
    return %arg0, %arg1, %c0_i32 : i32, i32, i32
  }
}

</mosaic_0001>

<bundles_post_ra>
// kernel: transform_sieve_jointer_hv.28
= control target key start
LH: loop header
LB: loop body
LE: loop exit
PB: predicated region body
PF: predicated region fallthrough
CT: control target
= control target key end

     0   :  { %10 = vsyncpa [#allocation3], 0  ;;  %s930_s0 = inlined_call_operand.vmem [shape: bf16[2,8,32], index: 0, kind: input, shape index: {}]   ;;  %s931_s1 = inlined_call_operand.vmem [shape: bf16[2,8,32], index: 1, kind: input, shape index: {}]   ;;  %s932_s2 = inlined_call_operand.vmem [shape: bf16[2,8,32], index: 2, kind: input, shape index: {}]   ;;  %s933_s3 = inlined_call_operand.vmem [shape: f32[2,8,1], index: 3, kind: input, shape index: {}]   ;;  %s934_s4 = inlined_call_operand.vmem [shape: f32[2,1,8], index: 4, kind: input, shape index: {}]   ;;  %s935_s5 = inlined_call_operand.hbm [shape: f32[2,8,8], index: 5, kind: output, shape index: {}]  }
   0x1   :  { %12 = vsyncpa [#allocation3 + $0x1], 0  ;;  %s797_s18 = smov 0   ;;  %s799_s19 = smov 0  }
   0x2   :  { %s801_s20 = smov 0   ;;  %s803_s21 = smov 0  }
   0x3   :  { %s805_s22 = smov 0   ;;  %s807_s23 = smov 0  }
   0x4 LB: > { %s581_s24 = sadd.s32 4294967295, %s761_s23   ;;  %s582_s25 = sadd.s32 4294967294, %s761_s23   ;;  %s761_s23 = sphi %s807_s23, %s18_s23   ;;  %s757_s22 = sphi %s805_s22, %s942_s22   ;;  %s753_s21 = sphi %s803_s21, %s941_s21   ;;  %s749_s20 = sphi %s801_s20, %s940_s20   ;;  %s745_s19 = sphi %s799_s19, %s939_s19   ;;  %s741_s18 = sphi %s797_s18, %s938_s18  }
   0x5   : > { %s30_s26 = sadd.s32 1, %s757_s22  ;;  %s173_s27 = sadd.s32 1, %s749_s20 }
   0x6   : > { %p32_p0 = scmp.ge.s32.totalorder %s30_s26, 2  ;;  %p183_p1 = scmp.ne.s32.totalorder %s749_s20, %s745_s19 }
   0x7   : > { %p184_p2 = scmp.eq.s32.totalorder %s581_s24, 1  ;;  %p189_p3 = scmp.ne.s32.totalorder %s745_s19, %s741_s18 }
   0x8   : > { %s944_s26 = smov (%p32_p0, %s30_s26), 0  ;;  %p190_p5 = scmp.eq.s32.totalorder %s582_s25, 1 }
   0x9   : > { %p837_p4 = por %p184_p2, %p183_p1  ;;  %s168_s29 = ssub.s32 %s757_s22, %s944_s26 }
   0xa   : > { %p585_p6 = scmp.ge.s32.totalorder %s761_s23, 1  ;;  %p171_p7 = scmp.eq.s32.totalorder %s168_s29, 0 }
   0xb   : > { %p844_p8 = por %p190_p5, %p189_p3  ;;  %p248_p9 = scmp.lt.s32.totalorder %s761_s23, 3 }
   0xc   : > { %s850_s6 = scalar_select %p171_p7, %s749_s20, %s173_s27  }
   0xd   : > { %p249_p10 = pnand %p585_p6, %p248_p9 }
   0xe   : > { %p296_p11 = scmp.lt.s32.totalorder (!%p249_p10), %s753_s21, 1  ;;  %v763_v0 = vmov (!%p249_p10), 0.0   ;;  %vm764_vm0 = vmmov (!%p249_p10), 0   ;;  %v765_v1 = vmov (!%p249_p10), 0   ;;  %vm325_vm1 = vcmask (!%p249_p10), 261120   ;;  %s597_s13 = sshll.u32 (!%p249_p10), %s753_s21, 7 }
   0xf   : > { %252 = sbr.rel (%p249_p10) target bundleno = 294 (0x126), region = 40  ;;  %604 = vmatprep.subr.bf16.mxu0 (!%p249_p10), %v763_v0  ;;  %610 = vmatprep.subr.bf16.mxu1 (!%p249_p10), %v763_v0  ;;  %vm445_vm2 = vcmask (!%p249_p10), 64512  }
  0x10   : > { %606 = vmatprep.mubr.msk.bf16.mxu0 (!%p249_p10), %vm764_vm0, %v763_v0  ;;  %612 = vmatprep.mubr.msk.bf16.mxu1 (!%p249_p10), %vm764_vm0, %v763_v0 }
  0x11   : > { %674 = vset.pattern.permute.xlu0 (!%p249_p10), %v765_v1 }
  0x16   : > { %s854_s7 = scalar_select %p296_p11, %s753_s21, 1 }
  0x17   : > { %s766_s21 = smov [#allocation2]  }
  0x18   : > { %s587_s8 = sshll.u32 %s854_s7, 2  ;;  %s590_s9 = sshll.u32 %s854_s7, 3 }
  0x19   : > { %s306_s12 = scalar_lea.vmem %s931_s1, %s587_s8  ;;  %s310_s15 = scalar_lea.vmem %s932_s2, %s587_s8 }
  0x1a   : > { %v323_v2 = vld [vmem:[%s306_s12] sm:$0xf]  ;;  %s317_s24 = scalar_lea.vmem %s933_s3, %s590_s9  ;;  %s302_s29 = scalar_lea.vmem %s930_s0, %s587_s8 }
  0x1b   : > { %v324_v3 = vld [vmem:[%s310_s15] sm:$0xf]  ;;  %v330_v4 = vsel %vm325_vm1, %v323_v2, 0  ;;  %s293_s8 = sand.u32 1, %s745_s19   ;;  %s320_s11 = scalar_lea.vmem %s934_s4, %s854_s7 }
  0x1c   : > { %v380_v5 = vsel %vm325_vm1, %v324_v3, 0  ;;  %v430_v6 = vld [vmem:[%s317_s24] sm:$0xff]  ;;  %605 = vmatpush3.bf16.xpose.msra.mxu0 %v330_v4  ;;  %s586_s12 = sshll.u32 %s293_s8, 3  ;;  %s883_s24 = scalar_lea.hbm %s935_s5, %s597_s13 }
  0x1d   : > { %611 = vmatpush3.bf16.xpose.msra.mxu1 %v380_v5  ;;  %434 = vperm.xlu0 %674, %v430_v6   ;;  %v322_v7 = vld [vmem:[%s302_s29] sm:$0xf]  ;;  %s295_s14 = scalar_lea.vmem [#allocation2], %s586_s12  ;;  %s448_s7 = scalar_lea.sflag [#allocation3], %s293_s8 }
  0x1e   : > { %v595_v24 = vld [vmem:[%s320_s11] ss:$0 sm:$0xff]  ;;  %s462_s15 = sshll.u32 %s295_s14, 4  ;;  %s687_s27 = sshll.u32 %s766_s21, 4  ;;  %s885_s15 = int_to_ptr.vmem [resolvable:$true] %s462_s15  ;;  %s688_s27 = int_to_ptr.vmem [resolvable:$false] %s687_s27 }
  0x1f   : > { %s683_s25 = scalar_lea.vmem %s885_s15, 128  ;;  %s689_s29 = scalar_lea.vmem %s688_s27, 256 }
  0x20   : > { %p684_p12 = scmp.ne.s32.totalorder %s885_s15, %s683_s25  ;;  %p690_p1 = scmp.lt.s32.totalorder %s885_s15, %s688_s27 }
  0x21   : > { %p691_p2 = scmp.lt.s32.totalorder %s689_s29, %s683_s25 }
  0x22   : > { %p685_p13 = pnand %p684_p12, %p837_p4 }
  0x23   : > { %607 = vmatmul.mubr.msk.bf16.vlgmr.msra.gmra.mrb[0].mxu0 %vm325_vm1, %v322_v7  ;;  %p692_p3 = por %p691_p2, %p690_p1 }
  0x24   : > { %613 = vmatmul.mubr.msk.bf16.vlgmr.msra.gmra.mrb[0].mxu1 %vm325_vm1, %v322_v7  ;;  %p686_p0 = pneg %p685_p13 }
  0x26   : > { %p693_p5 = pnand %p692_p3, %p686_p0 }
  0x9c   : > { %v435_v25 = vpop.permute.xlu0 %434 }
  0x9d   : > { %v443_v27 = vmul.f32 %v595_v24, %v435_v25 }
  0xf6   : > { %v366_v8 = vpop.f32.mrb[0].mxu0 }
  0xf7   : > { %v416_v9 = vpop.f32.mrb[0].mxu1  ;;  %v592_v10 = vmul.f32 -0.17677669, %v366_v8  ;;  %v608_v12 = vpop.f32.mrb[1].mxu0 }
  0xf8   : > { %v594_v11 = vmul.f32 -0.17677669, %v416_v9  ;;  %v614_v13 = vpop.f32.mrb[1].mxu1  ;;  %v369_v14 = vpop.f32.mrb[2].mxu0 }
  0xf9   : > { %v419_v15 = vpop.f32.mrb[2].mxu1  ;;  %v374_v16 = vmul.f32 1.442695, %v592_v10  ;;  %v609_v18 = vpop.f32.mrb[3].mxu0 }
  0xfa   : > { %v424_v17 = vmul.f32 1.442695, %v594_v11  ;;  %v615_v19 = vpop.f32.mrb[3].mxu1 }
  0xfb   : > { %675 = vpow2.f32 %v374_v16 }
  0xfc   : > { %677 = vpow2.f32 %v424_v17 }
 0x105   : > { %v676_v20 = vpop.eup %675 }
 0x106   : > { %v678_v21 = vpop.eup %677  ;;  %v376_v22 = vadd.f32 1.0, %v676_v20 }
 0x107   : > { %v426_v23 = vadd.f32 1.0, %v678_v21 }
 0x108   : > { %679 = vrcp.f32 %v376_v22 }
 0x109   : > { %681 = vrcp.f32 %v426_v23 }
 0x112   : > { %v680_v26 = vpop.eup %679 }
 0x113   : > { %v682_v28 = vpop.eup %681 }
 0x114   : > { %v429_v29 = vmul.f32 %v682_v28, %v680_v26 }
 0x116   : > { %v444_v30 = vmul.f32 %v443_v27, %v429_v29 }
 0x118   : > { %446 = vst.msk [vmem:[%s295_s14] sm:$0xff] %vm445_vm2, %v444_v30 }
 0x119   : > { %696 = shalt.err (!%p693_p5)
}
 0x11a   : > { %s697_s8 = scalar_lea.hbm %s883_s24, 128  ;;  %s701_s11 = scalar_lea.hbm %s935_s5, 256 }
 0x11b   : > { %p698_p6 = scmp.ne.s32.totalorder %s883_s24, %s697_s8  ;;  %p702_p10 = scmp.lt.u32.totalorder %s883_s24, %s935_s5 }
 0x11c   : > { %p703_p11 = scmp.lt.u32.totalorder %s701_s11, %s697_s8  ;;  %p705_p13 = scmp.lt.u32.totalorder %s697_s8, %s883_s24 }
 0x11d   : > { %p699_p7 = pnand %p698_p6, %p837_p4 }
 0x11e   : > { %p704_p12 = por %p703_p11, %p702_p10 }
 0x11f   : > { %p700_p9 = pneg %p699_p7 }
 0x120   : > { %p706_p0 = por %p705_p13, %p704_p12 }
 0x122   : > { %p707_p1 = pnand %p706_p0, %p700_p9 }
 0x124   : > { %710 = shalt.err (!%p707_p1)
}
 0x125   : > { %616 = dma.vmem_to_hbm [thread:$0]  (%p837_p4), %s885_s15, 128, %s883_s24, %s448_s7  }
 0x126 PF: > { %p622_p2 = scmp.ge.s32.totalorder %s761_s23, 2  ;;  %s474_s14 = sand.u32 1, %s741_s18  }
 0x127   : > { %s475_s16 = scalar_lea.sflag [#allocation3], %s474_s14 }
 0x128   : > { %p619_p3 = pnand %p622_p2, %p844_p8 }
 0x12a   : > { %736 = dma.done.wait (!%p619_p3), %s475_s16, 128  }
 0x12b   : > { %738 = vsyncadd (!%p619_p3), %s475_s16, 4294967168  ;;  %s18_s23 = sadd.s32 1, %s761_s23   ;;  %s938_s18 = smov %s745_s19 }
 0x12c   : > { %p15_p5 = scmp.ge.s32.totalorder %s18_s23, 4   ;;  %s939_s19 = smov %s749_s20 }
 0x12d   : > { %s940_s20 = smov %s850_s6  ;;  %s941_s21 = smov %s757_s22 }
 0x12e   : > { %s942_s22 = smov %s944_s26  ;;  %17 = sbr.rel (!%p15_p5) target bundleno = 4 (0x4), region = 87 }
 0x135   :  { %480 = vsyncpa [#allocation3], 1 }
 0x136   :  { %482 = vsyncpa [#allocation3 + $0x1], 1 }

// kernel: transform_sieve_jointer_hv.16
= control target key start
LH: loop header
LB: loop body
LE: loop exit
PB: predicated region body
PF: predicated region fallthrough
CT: control target
= control target key end

     0   :  { %s717_s24 = smov 0   ;;  %s719_s25 = smov 0   ;;  %s790_s0 = inlined_call_operand.vmem [shape: bf16[2,8,32], index: 0, kind: input, shape index: {}]   ;;  %s791_s1 = inlined_call_operand.vmem [shape: bf16[32,64], index: 1, kind: input, shape index: {}]   ;;  %s792_s2 = inlined_call_operand.vmem [shape: f32[1,64], index: 2, kind: input, shape index: {}]   ;;  %s793_s3 = inlined_call_operand.vmem [shape: bf16[64,32], index: 3, kind: input, shape index: {}]   ;;  %s794_s4 = inlined_call_operand.vmem [shape: f32[1,32], index: 4, kind: input, shape index: {}]   ;;  %s795_s5 = inlined_call_operand.vmem [shape: f32[1,32], index: 5, kind: input, shape index: {}]   ;;  %s796_s6 = inlined_call_operand.vmem [shape: f32[1,32], index: 6, kind: input, shape index: {}]   ;;  %s797_s7 = inlined_call_operand.vmem [shape: bf16[2,8,32], index: 7, kind: output, shape index: {}]  }
   0x1   :  { %s721_s26 = smov 0  }
   0x2 LB: > { %s29_s27 = sadd.s32 1, %s669_s25  ;;  %p572_p0 = scmp.ge.s32.totalorder %s673_s26, 1  ;;  %s673_s26 = sphi %s721_s26, %s17_s26   ;;  %s669_s25 = sphi %s719_s25, %s799_s25   ;;  %s665_s24 = sphi %s717_s24, %s798_s24  }
   0x3   : > { %p31_p1 = scmp.ge.s32.totalorder %s29_s27, 2  ;;  %p255_p2 = scmp.lt.s32.totalorder %s673_s26, 3 }
   0x5   : > { %s801_s27 = smov (%p31_p1, %s29_s27), 0  ;;  %p256_p3 = pnand %p572_p0, %p255_p2 }
   0x6   : > { %v643_v0 = vld [vmem:[%s791_s1] sm:$0xff] (!%p256_p3)   ;;  %v675_v1 = vmov (!%p256_p3), 0.0   ;;  %v644_v2 = vld [vmem:[%s791_s1 + $0x8] sm:$0xff] (!%p256_p3)   ;;  %vm676_vm0 = vmmov (!%p256_p3), 0   ;;  %p291_p4 = scmp.lt.s32.totalorder (!%p256_p3), %s665_s24, 1  ;;  %vm330_vm1 = vcmask (!%p256_p3), 261120  }
   0x7   : > { %259 = sbr.rel (%p256_p3) target bundleno = 768 (0x300), region = 48  ;;  %597 = vmatprep.subr.bf16.mxu0 (!%p256_p3), %v675_v1  ;;  %605 = vmatprep.subr.bf16.mxu1 (!%p256_p3), %v675_v1  ;;  %v645_v3 = vld [vmem:[%s793_s3] sm:$0xff] (!%p256_p3)   ;;  %v646_v4 = vld [vmem:[%s793_s3 + $0x8] sm:$0xff] (!%p256_p3)   ;;  %v647_v6 = vld [vmem:[%s793_s3 + $0x10] sm:$0xff] (!%p256_p3)   ;;  %vm415_vm2 = vcmask (!%p256_p3), 523264   ;;  %vm492_vm3 = vcmask (!%p256_p3), 257024  }
   0x8   : > { %598 = vmatpush3.bf16.msra.mxu0 (!%p256_p3), %v643_v0  ;;  %601 = vmatprep.mubr.msk.bf16.mxu0 (!%p256_p3), %vm676_vm0, %v675_v1  ;;  %v648_v7 = vld [vmem:[%s793_s3 + $0x18] sm:$0xff] (!%p256_p3)   ;;  %v575_v8 = vld [vmem:[%s792_s2] ss:$0 sm:$0xff] (!%p256_p3) }
   0x9   : > { %599 = vmatprep.subr.bf16.mxu0 (!%p256_p3), %v675_v1  ;;  %613 = vmatprep.mubr.msk.bf16.mxu1 (!%p256_p3), %vm676_vm0, %v675_v1  ;;  %v579_v16 = vld [vmem:[%s794_s4] ss:$0 sm:$0xff] (!%p256_p3) }
   0xa   : > { %606 = vmatpush3.bf16.msra.mxu1 (!%p256_p3), %v645_v3  ;;  %v585_v34 = vld [vmem:[%s795_s5] ss:$0 sm:$0xff] (!%p256_p3) }
   0xb   : > { %607 = vmatprep.subr.bf16.mxu1 (!%p256_p3), %v675_v1  ;;  %v586_v36 = vld [vmem:[%s796_s6] ss:$0 sm:$0xff] (!%p256_p3) }
   0xc   : > { %600 = vmatpush3.bf16.msra.mxu0 (!%p256_p3), %v644_v2 }
   0xe   : > { %s803_s24 = smov (!%p291_p4, %s665_s24), 1  ;;  %608 = vmatpush3.bf16.msra.mxu1 %v646_v4 }
   0xf   : > { %s573_s13 = sshll.u32 %s803_s24, 2  ;;  %609 = vmatprep.subr.bf16.mxu1 %v675_v1 }
  0x10   : > { %s297_s16 = scalar_lea.vmem %s790_s0, %s573_s13  ;;  %s304_s12 = scalar_lea.vmem %s797_s7, %s573_s13 }
  0x11   : > { %v306_v5 = vld [vmem:[%s297_s16] sm:$0xf] }
  0x12   : > { %602 = vmatmul.mubr.msk.bf16.vlgmr.msra.gmra.mrb[0].mxu0 %vm330_vm1, %v306_v5  ;;  %610 = vmatpush3.bf16.msra.mxu1 %v647_v6  ;;  %v459_v17 = vunpack.c.l.bf16 %v306_v5 }
  0x13   : > { %611 = vmatprep.subr.bf16.mxu1 %v675_v1 }
  0x16   : > { %612 = vmatpush3.bf16.msra.mxu1 %v648_v7 }
  0xe5   : > { %v368_v9 = vpop.f32.mrb[0].mxu0 }
  0xe6   : > { %v369_v10 = vadd.f32 %v575_v8, %v368_v9  ;;  %v603_v11 = vpop.f32.mrb[1].mxu0 }
  0xe7   : > { %v371_v12 = vpop.f32.mrb[2].mxu0 }
  0xe8   : > { %v374_v13 = vmax.f32 %v369_v10, 0.0  ;;  %v604_v14 = vpop.f32.mrb[3].mxu0 }
  0xea   : > { %v375_v15 = vpack.c.bf16 %v374_v13, %v374_v13 }
  0xec   : > { %614 = vmatmul.mubr.msk.bf16.vlgmr.msra.gmra.mrb[0].mxu1 %vm415_vm2, %v375_v15 }
 0x1bf   : > { %v453_v18 = vpop.f32.mrb[0].mxu1 }
 0x1c0   : > { %v454_v19 = vadd.f32 %v579_v16, %v453_v18  ;;  %v615_v20 = vpop.f32.mrb[1].mxu1 }
 0x1c1   : > { %v456_v21 = vpop.f32.mrb[2].mxu1 }
 0x1c2   : > { %v616_v22 = vpop.f32.mrb[3].mxu1  ;;  %v460_v23 = vadd.f32 %v459_v17, %v454_v19 }
 0x1c4   : > { %v463_v24 = vsel %vm330_vm1, %v460_v23, 0.0 }
 0x1c5   : > { %464 = vadd.xlane.f32.xlu0 %v463_v24 }
 0x252   : > { %v465_v25 = vpop.xlane.xlu0 %464 }
 0x253   : > { %v467_v26 = vmul.f32 0.03125, %v465_v25 }
 0x255   : > { %v468_v27 = vsub.f32 %v460_v23, %v467_v26 }
 0x257   : > { %v469_v28 = vmul.f32 %v468_v27, %v468_v27 }
 0x259   : > { %v470_v29 = vsel %vm330_vm1, %v469_v28, 0.0 }
 0x25a   : > { %471 = vadd.xlane.f32.xlu0 %v470_v29 }
 0x2e7   : > { %v472_v30 = vpop.xlane.xlu0 %471 }
 0x2e8   : > { %v473_v31 = vmul.f32 0.03125, %v472_v30 }
 0x2ea   : > { %v474_v32 = vadd.f32 1e-06, %v473_v31 }
 0x2ec   : > { %649 = vrsqrt.f32 %v474_v32 }
 0x2f6   : > { %v650_v33 = vpop.eup %649 }
 0x2f7   : > { %v476_v35 = vmul.f32 %v650_v33, %v468_v27 }
 0x2f9   : > { %v483_v37 = vmul.f32 %v585_v34, %v476_v35 }
 0x2fb   : > { %v490_v38 = vadd.f32 %v586_v36, %v483_v37 }
 0x2fd   : > { %v491_v39 = vpack.c.bf16 %v490_v38, %v490_v38 }
 0x2ff   : > { %493 = vst.msk [vmem:[%s304_s12] sm:$0xf] %vm492_vm3, %v491_v39 }
 0x300 PF: > { %s17_s26 = sadd.s32 1, %s673_s26   ;;  %s798_s24 = smov %s669_s25 }
 0x301   : > { %p14_p5 = scmp.ge.s32.totalorder %s17_s26, 4   ;;  %s799_s25 = smov %s801_s27 }
 0x303   :  { %16 = sbr.rel (!%p14_p5) target bundleno = 2 (0x2), region = 78 }

// kernel: transform_sieve_jointer_hv.15
= control target key start
LH: loop header
LB: loop body
LE: loop exit
PB: predicated region body
PF: predicated region fallthrough
CT: control target
= control target key end

     0   :  { %s1654_s25 = smov 0   ;;  %s1656_s26 = smov 0   ;;  %s1826_s0 = inlined_call_operand.vmem [shape: bf16[2,8,32], index: 0, kind: input, shape index: {}, may-alias: {0,1}]   ;;  %s1827_s1 = inlined_call_operand.vmem [shape: bf16[2,8,32], index: 1, kind: input, shape index: {}, may-alias: {0,1}]   ;;  %s1828_s2 = inlined_call_operand.vmem [shape: f32[2,1,8], index: 2, kind: input, shape index: {}]   ;;  %s1829_s3 = inlined_call_operand.vmem [shape: bf16[32,32], index: 3, kind: input, shape index: {}]   ;;  %s1830_s4 = inlined_call_operand.vmem [shape: f32[1,32], index: 4, kind: input, shape index: {}]   ;;  %s1831_s5 = inlined_call_operand.vmem [shape: bf16[32,64], index: 5, kind: input, shape index: {}]   ;;  %s1832_s6 = inlined_call_operand.vmem [shape: f32[1,64], index: 6, kind: input, shape index: {}]   ;;  %s1833_s7 = inlined_call_operand.vmem [shape: bf16[32,32], index: 7, kind: input, shape index: {}]   ;;  %s1834_s8 = inlined_call_operand.vmem [shape: f32[1,32], index: 8, kind: input, shape index: {}]   ;;  %s1835_s9 = inlined_call_operand.vmem [shape: f32[1,32], index: 9, kind: input, shape index: {}]   ;;  %s1836_s10 = inlined_call_operand.vmem [shape: f32[1,32], index: 10, kind: input, shape index: {}]   ;;  %s1837_s11 = inlined_call_operand.vmem [shape: f32[1,32], index: 11, kind: input, shape index: {}]   ;;  %s1838_s12 = inlined_call_operand.vmem [shape: f32[1,32], index: 12, kind: input, shape index: {}]   ;;  %s1839_s13 = inlined_call_operand.vmem [shape: bf16[2,8,32], index: 13, kind: output, shape index: {}]  }
   0x1   :  { %s1658_s27 = smov 0  }
   0x2 LB: > { %s35_s28 = sadd.s32 1, %s1566_s26  ;;  %p1356_p0 = scmp.ge.s32.totalorder %s1570_s27, 1  ;;  %s1570_s27 = sphi %s1658_s27, %s23_s27   ;;  %s1566_s26 = sphi %s1656_s26, %s1841_s26   ;;  %s1562_s25 = sphi %s1654_s25, %s1840_s25  }
   0x3   : > { %p37_p1 = scmp.ge.s32.totalorder %s35_s28, 2  ;;  %p422_p2 = scmp.lt.s32.totalorder %s1570_s27, 3 }
   0x5   : > { %s1843_s28 = smov (%p37_p1, %s35_s28), 0  ;;  %p423_p3 = pnand %p1356_p0, %p422_p2 }
   0x6   : > { %p477_p4 = scmp.lt.s32.totalorder (!%p423_p3), %s1562_s25, 1  ;;  %vm503_vm0 = vcmask (!%p423_p3), 261120   ;;  %v1520_v16 = vld [vmem:[%s1831_s5] sm:$0xff] (!%p423_p3)   ;;  %v1572_v17 = vmov (!%p423_p3), 0.0   ;;  %v1522_v19 = vld [vmem:[%s1831_s5 + $0x8] sm:$0xff] (!%p423_p3)   ;;  %vm1573_vm1 = vmmov (!%p423_p3), 0  }
   0x7   : > { %426 = sbr.rel (%p423_p3) target bundleno = 2125 (0x84d), region = 72  ;;  %1420 = vmatprep.subr.bf16.mxu1 (!%p423_p3), %v1572_v17  ;;  %1412 = vmatprep.subr.bf16.mxu0 (!%p423_p3), %v1572_v17  ;;  %v1521_v18 = vld [vmem:[%s1829_s3] sm:$0xff] (!%p423_p3)   ;;  %v1523_v20 = vld [vmem:[%s1829_s3 + $0x8] sm:$0xff] (!%p423_p3)   ;;  %vm686_vm2 = vcmask (!%p423_p3), 64512   ;;  %s1574_s23 = smov (!%p423_p3), 120   ;;  %vm759_vm3 = vcmask (!%p423_p3), 1043456  }
   0x8   : > { %1421 = vmatpush3.bf16.msra.mxu1 (!%p423_p3), %v1520_v16  ;;  %1413 = vmatpush3.bf16.msra.mxu0 (!%p423_p3), %v1521_v18  ;;  %v1360_v28 = vld [vmem:[%s1837_s11] ss:$0 sm:$0xff] (!%p423_p3)  ;;  %s1575_s24 = smov (!%p423_p3), 104   ;;  %s1576_s30 = smov (!%p423_p3), 112   ;;  %vm1153_vm4 = vcmask (!%p423_p3), 130048   ;;  %vm1155_vm5 = vcmask (!%p423_p3), 195584  }
   0x9   : > { %1422 = vmatprep.subr.bf16.mxu1 (!%p423_p3), %v1572_v17  ;;  %1424 = vmatprep.mubr.msk.bf16.mxu1 (!%p423_p3), %vm1573_vm1, %v1572_v17  ;;  %v1361_v30 = vld [vmem:[%s1838_s12] ss:$0 sm:$0xff] (!%p423_p3)  ;;  %s1578_s17 = smov (!%p423_p3), 80   ;;  %s1580_s19 = smov (!%p423_p3), 72   ;;  %vm1255_vm6 = vcmask (!%p423_p3), 257024  }
   0xa   : > { %1414 = vmatprep.subr.bf16.mxu0 (!%p423_p3), %v1572_v17  ;;  %1416 = vmatprep.mubr.msk.bf16.mxu0 (!%p423_p3), %vm1573_vm1, %v1572_v17  ;;  %v1366_v39 = vld [vmem:[%s1832_s6] ss:$0 sm:$0xff] (!%p423_p3)  ;;  %s1581_s22 = smov (!%p423_p3), 8   ;;  %s1583_s14 = smov (!%p423_p3), 24  }
   0xb   : > { %v1362_v44 = vld [vmem:[%s1830_s4] ss:$0 sm:$0xff] (!%p423_p3) }
   0xc   : > { %1423 = vmatpush3.bf16.msra.mxu1 (!%p423_p3), %v1522_v19  ;;  %1415 = vmatpush3.bf16.msra.mxu0 (!%p423_p3), %v1523_v20 }
   0xd   : > { %1434 = vmatprep.subr.bf16.mxu1 (!%p423_p3), %v1572_v17  ;;  %1428 = vmatprep.subr.bf16.mxu0 (!%p423_p3), %v1572_v17 }
   0xe   : > { %s1845_s25 = smov (!%p477_p4, %s1562_s25), 1 }
   0xf   : > { %s1675_s29 = sshll.u32 %s1845_s25, 2  ;;  %s490_s16 = scalar_lea.vmem %s1828_s2, %s1845_s25 }
  0x10   : > { %s487_s15 = scalar_lea.vmem %s1827_s1, %s1675_s29  ;;  %s483_s18 = scalar_lea.vmem %s1826_s0, %s1675_s29 }
  0x11   : > { %v532_v0 = vld [vmem:[%s487_s15] sm:$0xf]  ;;  %s1577_s25 = smov 88  }
  0x12   : > { %v533_v1 = vunpack.c.l.bf16 %v532_v0  ;;  %v499_v2 = vld [vmem:[%s483_s18] sm:$0xf]  ;;  %s1579_s18 = smov 96  }
  0x13   : > { %v500_v3 = vunpack.c.l.bf16 %v499_v2  ;;  %v1371_v0 = vld [vmem:[%s490_s16] ss:$0 sm:$0xff] }
  0x14   : > { %v534_v4 = vsel %vm503_vm0, %v533_v1, 0.0 }
  0x15   : > { %535 = vadd.xlane.f32.xlu0 %v534_v4  ;;  %v504_v5 = vsel %vm503_vm0, %v500_v3, 0.0 }
  0x19   : > { %505 = vadd.xlane.f32.xlu0 %v504_v5 }
  0xa2   : > { %v536_v6 = vpop.xlane.xlu0 %535 }
  0xa3   : > { %v537_v7 = vmul.f32 0.03125, %v536_v6 }
  0xa5   : > { %v538_v8 = vsub.f32 %v533_v1, %v537_v7 }
  0xa6   : > { %v506_v9 = vpop.xlane.xlu0 %505 }
  0xa7   : > { %v508_v10 = vmul.f32 0.03125, %v506_v9  ;;  %v539_v11 = vmul.f32 %v538_v8, %v538_v8 }
  0xa9   : > { %v509_v12 = vsub.f32 %v500_v3, %v508_v10  ;;  %v540_v13 = vsel %vm503_vm0, %v539_v11, 0.0 }
  0xaa   : > { %541 = vadd.xlane.f32.xlu1 %v540_v13 }
  0xab   : > { %v510_v14 = vmul.f32 %v509_v12, %v509_v12 }
  0xad   : > { %v511_v15 = vsel %vm503_vm0, %v510_v14, 0.0 }
  0xae   : > { %512 = vadd.xlane.f32.xlu1 %v511_v15 }
 0x137   : > { %v542_v21 = vpop.xlane.xlu1 %541 }
 0x138   : > { %v543_v22 = vmul.f32 0.03125, %v542_v21 }
 0x13a   : > { %v544_v23 = vadd.f32 1e-06, %v543_v22 }
 0x13b   : > { %v513_v24 = vpop.xlane.xlu1 %512 }
 0x13c   : > { %1526 = vrsqrt.f32 %v544_v23  ;;  %v514_v25 = vmul.f32 0.03125, %v513_v24 }
 0x13e   : > { %v515_v26 = vadd.f32 1e-06, %v514_v25 }
 0x140   : > { %1528 = vrsqrt.f32 %v515_v26 }
 0x146   : > { %v1527_v27 = vpop.eup %1526 }
 0x147   : > { %v546_v29 = vmul.f32 %v1527_v27, %v538_v8 }
 0x149   : > { %v547_v31 = vmul.f32 %v1360_v28, %v546_v29 }
 0x14a   : > { %v1529_v32 = vpop.eup %1528 }
 0x14b   : > { %v517_v33 = vmul.f32 %v1529_v32, %v509_v12  ;;  %v548_v34 = vadd.f32 %v1361_v30, %v547_v31 }
 0x14d   : > { %v550_v35 = vpack.c.bf16 %v548_v34, %v548_v34  ;;  %v524_v36 = vmul.f32 %v1360_v28, %v517_v33 }
 0x14f   : > { %1425 = vmatmul.mubr.msk.bf16.vlgmr.msra.gmra.mrb[0].mxu1 %vm503_vm0, %v550_v35  ;;  %v1718_v37 = vadd.f32 %v1361_v30, %v524_v36 }
 0x150   : > { %1436 = vmatprep.mubr.msk.bf16.mxu1 %vm1573_vm1, %v1572_v17 }
 0x151   : > { %v549_v38 = vpack.c.bf16 %v1718_v37, %v1718_v37 }
 0x153   : > { %1417 = vmatmul.mubr.msk.bf16.vlgmr.msra.gmra.mrb[0].mxu0 %vm503_vm0, %v549_v38 }
 0x154   : > { %1430 = vmatprep.mubr.msk.bf16.mxu0 %vm1573_vm1, %v1572_v17 }
 0x222   : > { %v677_v40 = vpop.f32.mrb[0].mxu1 }
 0x223   : > { %v678_v41 = vadd.f32 %v1366_v39, %v677_v40  ;;  %v1426_v42 = vpop.f32.mrb[1].mxu1 }
 0x224   : > { %v680_v43 = vpop.f32.mrb[2].mxu1 }
 0x225   : > { %v1733_v45 = vpack.c.bf16 %v678_v41, %v678_v41  ;;  %v1427_v46 = vpop.f32.mrb[3].mxu1 }
 0x226   : > { %v611_v47 = vpop.f32.mrb[0].mxu0 }
 0x227   : > { %v612_v48 = vadd.f32 %v1362_v44, %v611_v47  ;;  %806 = vrot.lane.b32.xlu0 %v1733_v45, %s1574_s23  ;;  %v1418_v49 = vpop.f32.mrb[1].mxu0  ;;  %v691_v50 = vsel %vm686_vm2, %v1733_v45, 0 }
 0x228   : > { %v614_v51 = vpop.f32.mrb[2].mxu0  ;;  %1429 = vmatpush3.bf16.xpose.msra.mxu0 %v691_v50 }
 0x229   : > { %v684_v52 = vpack.c.bf16 %v612_v48, %v612_v48  ;;  %v1419_v53 = vpop.f32.mrb[3].mxu0  ;;  %1440 = vmatprep.subr.bf16.mxu0 %v1572_v17 }
 0x22b   : > { %1030 = vrot.lane.b32.xlu0 %v1733_v45, %s1575_s24  ;;  %804 = vrot.lane.b32.xlu1 %v684_v52, %s1574_s23  ;;  %s1582_s23 = smov 16  }
 0x22f   : > { %918 = vrot.lane.b32.xlu1 %v1733_v45, %s1576_s30  ;;  %1431 = vmatmul.mubr.msk.bf16.vlgmr.msra.gmra.mrb[4].mxu0 %vm686_vm2, %v684_v52 }
 0x230   : > { %1442 = vmatprep.mubr.msk.bf16.mxu0 %vm1573_vm1, %v1572_v17 }
 0x233   : > { %916 = vrot.lane.b32.xlu1 %v684_v52, %s1576_s30 }
 0x237   : > { %1028 = vrot.lane.b32.xlu1 %v684_v52, %s1575_s24 }
 0x299   : > { %v807_v54 = vpop.permute.xlu0 %806 }
 0x29a   : > { %v812_v55 = vsel %vm686_vm2, %v807_v54, 0 }
 0x29b   : > { %1441 = vmatpush3.bf16.xpose.msra.mxu0 %v812_v55 }
 0x29c   : > { %1452 = vmatprep.subr.bf16.mxu0 %v1572_v17 }
 0x29d   : > { %v805_v56 = vpop.permute.xlu1 %804  ;;  %v1031_v59 = vpop.permute.xlu0 %1030 }
 0x29e   : > { %v1036_v61 = vsel %vm686_vm2, %v1031_v59, 0 }
 0x2a1   : > { %v919_v57 = vpop.permute.xlu1 %918 }
 0x2a2   : > { %v924_v58 = vsel %vm686_vm2, %v919_v57, 0  ;;  %1443 = vmatmul.mubr.msk.bf16.vlgmr.msra.gmra.mrb[8].mxu0 %vm686_vm2, %v805_v56 }
 0x2a3   : > { %1453 = vmatpush3.bf16.xpose.msra.mxu0 %v924_v58  ;;  %1454 = vmatprep.mubr.msk.bf16.mxu0 %vm1573_vm1, %v1572_v17 }
 0x2a4   : > { %1464 = vmatprep.subr.bf16.mxu0 %v1572_v17 }
 0x2a5   : > { %v917_v60 = vpop.permute.xlu1 %916 }
 0x2a9   : > { %v1029_v62 = vpop.permute.xlu1 %1028 }
 0x2aa   : > { %1455 = vmatmul.mubr.msk.bf16.vlgmr.msra.gmra.mrb[12].mxu0 %vm686_vm2, %v917_v60 }
 0x2ab   : > { %1465 = vmatpush3.bf16.xpose.msra.mxu0 %v1036_v61  ;;  %1466 = vmatprep.mubr.msk.bf16.mxu0 %vm1573_vm1, %v1572_v17 }
 0x2ac   : > { %1476 = vmatprep.subr.bf16.mxu0 %v1572_v17 }
 0x2b2   : > { %1467 = vmatmul.mubr.msk.bf16.vlgmr.msra.gmra.mrb[16].mxu0 %vm686_vm2, %v1029_v62 }
 0x2b3   : > { %1480 = vmatprep.mubr.msk.bf16.mxu0 %vm1573_vm1, %v1572_v17 }
 0x302   : > { %v727_v63 = vpop.f32.mrb[4].mxu0 }
 0x303   : > { %v733_v1 = vmul.f32 0.35355338, %v727_v63  ;;  %v1432_v2 = vpop.f32.mrb[5].mxu0 }
 0x304   : > { %v730_v3 = vpop.f32.mrb[6].mxu0 }
 0x305   : > { %v1433_v4 = vpop.f32.mrb[7].mxu0  ;;  %v740_v5 = vadd.f32 %v1371_v0, %v733_v1 }
 0x307   : > { %v741_v6 = vsel %vm686_vm2, %v740_v5, -inf }
 0x308   : > { %742 = vmax.xlane.f32.xlu0 %v741_v6 }
 0x375   : > { %v848_v7 = vpop.f32.mrb[8].mxu0 }
 0x376   : > { %v854_v8 = vmul.f32 0.35355338, %v848_v7  ;;  %v1444_v9 = vpop.f32.mrb[9].mxu0 }
 0x377   : > { %v851_v10 = vpop.f32.mrb[10].mxu0 }
 0x378   : > { %v1445_v11 = vpop.f32.mrb[11].mxu0  ;;  %v855_v12 = vadd.f32 %v1371_v0, %v854_v8 }
 0x37a   : > { %v856_v13 = vsel %vm686_vm2, %v855_v12, -inf }
 0x37b   : > { %857 = vmax.xlane.f32.xlu1 %v856_v13 }
 0x37d   : > { %v960_v14 = vpop.f32.mrb[12].mxu0 }
 0x37e   : > { %v966_v15 = vmul.f32 0.35355338, %v960_v14  ;;  %v1456_v16 = vpop.f32.mrb[13].mxu0  ;;  %v1524_v14 = vld [vmem:[%s1833_s7] sm:$0xff]  }
 0x37f   : > { %v963_v18 = vpop.f32.mrb[14].mxu0  ;;  %1477 = vmatpush3.bf16.msra.mxu0 %v1524_v14 }
 0x380   : > { %v1457_v19 = vpop.f32.mrb[15].mxu0  ;;  %v967_v20 = vadd.f32 %v1371_v0, %v966_v15  ;;  %1478 = vmatprep.subr.bf16.mxu0 %v1572_v17 }
 0x382   : > { %v968_v21 = vsel %vm686_vm2, %v967_v20, -inf }
 0x383   : > { %969 = vmax.xlane.f32.xlu0 %v968_v21 }
 0x385   : > { %v1072_v22 = vpop.f32.mrb[16].mxu0 }
 0x386   : > { %v1078_v23 = vmul.f32 0.35355338, %v1072_v22  ;;  %v1468_v24 = vpop.f32.mrb[17].mxu0 }
 0x387   : > { %v1075_v25 = vpop.f32.mrb[18].mxu0  ;;  %v1525_v24 = vld [vmem:[%s1833_s7 + $0x8] sm:$0xff]  }
 0x388   : > { %v1469_v26 = vpop.f32.mrb[19].mxu0  ;;  %v1079_v27 = vadd.f32 %v1371_v0, %v1078_v23  ;;  %1479 = vmatpush3.bf16.msra.mxu0 %v1525_v24 }
 0x38a   : > { %v1080_v28 = vsel %vm686_vm2, %v1079_v27, -inf }
 0x38b   : > { %1081 = vmax.xlane.f32.xlu0 %v1080_v28 }
 0x395   : > { %v743_v29 = vpop.xlane.xlu0 %742 }
 0x396   : > { %v744_v30 = vsub.f32 %v740_v5, %v743_v29 }
 0x398   : > { %v745_v31 = vmul.f32 1.442695, %v744_v30 }
 0x39a   : > { %1530 = vpow2.f32 %v745_v31 }
 0x3a4   : > { %v1531_v32 = vpop.eup %1530 }
 0x3a5   : > { %v747_v33 = vsel %vm686_vm2, %v1531_v32, 0.0 }
 0x3a6   : > { %748 = vadd.xlane.f32.xlu0 %v747_v33 }
 0x408   : > { %v858_v34 = vpop.xlane.xlu1 %857 }
 0x409   : > { %v859_v35 = vsub.f32 %v855_v12, %v858_v34 }
 0x40b   : > { %v860_v36 = vmul.f32 1.442695, %v859_v35  ;;  %v1379_v35 = vld [vmem:[%s1834_s8] ss:$0 sm:$0xff] }
 0x40d   : > { %1532 = vpow2.f32 %v860_v36 }
 0x410   : > { %v970_v38 = vpop.xlane.xlu0 %969 }
 0x411   : > { %v971_v39 = vsub.f32 %v967_v20, %v970_v38 }
 0x413   : > { %v972_v40 = vmul.f32 1.442695, %v971_v39 }
 0x415   : > { %1534 = vpow2.f32 %v972_v40 }
 0x417   : > { %v1533_v41 = vpop.eup %1532 }
 0x418   : > { %v862_v42 = vsel %vm686_vm2, %v1533_v41, 0.0  ;;  %v1082_v46 = vpop.xlane.xlu0 %1081 }
 0x419   : > { %863 = vadd.xlane.f32.xlu1 %v862_v42  ;;  %v1083_v47 = vsub.f32 %v1079_v27, %v1082_v46 }
 0x41b   : > { %v1084_v48 = vmul.f32 1.442695, %v1083_v47 }
 0x41d   : > { %1536 = vpow2.f32 %v1084_v48 }
 0x41f   : > { %v1535_v43 = vpop.eup %1534 }
 0x420   : > { %v974_v44 = vsel %vm686_vm2, %v1535_v43, 0.0 }
 0x421   : > { %975 = vadd.xlane.f32.xlu0 %v974_v44 }
 0x427   : > { %v1537_v49 = vpop.eup %1536 }
 0x428   : > { %v1086_v50 = vsel %vm686_vm2, %v1537_v49, 0.0 }
 0x42a   : > { %868 = vrot.lane.b32.xlu1 %v1733_v45, %s1577_s25 }
 0x42e   : > { %980 = vrot.lane.b32.xlu1 %v1733_v45, %s1578_s17 }
 0x433   : > { %v749_v51 = vpop.xlane.xlu0 %748 }
 0x434   : > { %1538 = vrcp.f32 %v749_v51 }
 0x437   : > { %754 = vrot.lane.b32.xlu0 %v1733_v45, %s1579_s18 }
 0x43e   : > { %v1539_v53 = vpop.eup %1538 }
 0x43f   : > { %v751_v55 = vmul.f32 %v1539_v53, %v1531_v32 }
 0x441   : > { %v752_v59 = vpack.c.bf16 %v751_v55, %v751_v55  ;;  %v1384_v55 = vld [vmem:[%s1836_s10] ss:$0 sm:$0xff] }
 0x452   : > { %1087 = vadd.xlane.f32.xlu1 %v1086_v50 }
 0x463   : > { %1092 = vrot.lane.b32.xlu1 %v1733_v45, %s1580_s19 }
 0x4a6   : > { %v864_v52 = vpop.xlane.xlu1 %863 }
 0x4a7   : > { %1540 = vrcp.f32 %v864_v52 }
 0x4aa   : > { %v869_v58 = vpop.permute.xlu1 %868 }
 0x4ab   : > { %v874_v45 = vsel %vm759_vm3, %v869_v58, 0 }
 0x4ae   : > { %v976_v54 = vpop.xlane.xlu0 %975  ;;  %v981_v62 = vpop.permute.xlu1 %980 }
 0x4af   : > { %1542 = vrcp.f32 %v976_v54  ;;  %v986_v1 = vsel %vm759_vm3, %v981_v62, 0 }
 0x4b1   : > { %v1541_v60 = vpop.eup %1540 }
 0x4b2   : > { %v755_v56 = vpop.permute.xlu0 %754  ;;  %v866_v61 = vmul.f32 %v1541_v60, %v1533_v41 }
 0x4b3   : > { %v761_v57 = vsel %vm759_vm3, %v755_v56, 0 }
 0x4b4   : > { %1435 = vmatpush3.bf16.msra.mxu1 %v761_v57  ;;  %v867_v63 = vpack.c.bf16 %v866_v61, %v866_v61 }
 0x4b5   : > { %1446 = vmatprep.subr.bf16.mxu1 %v1572_v17 }
 0x4b7   : > { %1437 = vmatmul.mubr.msk.bf16.vlgmr.msra.gmra.mrb[4].mxu1 %vm686_vm2, %v752_v59 }
 0x4b8   : > { %1447 = vmatpush3.bf16.msra.mxu1 %v874_v45  ;;  %1448 = vmatprep.mubr.msk.bf16.mxu1 %vm1573_vm1, %v1572_v17 }
 0x4b9   : > { %1458 = vmatprep.subr.bf16.mxu1 %v1572_v17  ;;  %v1543_v0 = vpop.eup %1542 }
 0x4ba   : > { %v978_v2 = vmul.f32 %v1543_v0, %v1535_v43 }
 0x4bc   : > { %v979_v3 = vpack.c.bf16 %v978_v2, %v978_v2 }
 0x4bf   : > { %1449 = vmatmul.mubr.msk.bf16.vlgmr.msra.gmra.mrb[8].mxu1 %vm686_vm2, %v867_v63 }
 0x4c0   : > { %1459 = vmatpush3.bf16.msra.mxu1 %v986_v1  ;;  %1460 = vmatprep.mubr.msk.bf16.mxu1 %vm1573_vm1, %v1572_v17 }
 0x4c1   : > { %1470 = vmatprep.subr.bf16.mxu1 %v1572_v17 }
 0x4c7   : > { %1461 = vmatmul.mubr.msk.bf16.vlgmr.msra.gmra.mrb[12].mxu1 %vm686_vm2, %v979_v3 }
 0x4c8   : > { %1472 = vmatprep.mubr.msk.bf16.mxu1 %vm1573_vm1, %v1572_v17 }
 0x4df   : > { %v1088_v4 = vpop.xlane.xlu1 %1087 }
 0x4e0   : > { %1544 = vrcp.f32 %v1088_v4 }
 0x4e3   : > { %v1093_v5 = vpop.permute.xlu1 %1092 }
 0x4e4   : > { %v1098_v6 = vsel %vm759_vm3, %v1093_v5, 0 }
 0x4e5   : > { %1471 = vmatpush3.bf16.msra.mxu1 %v1098_v6 }
 0x4ea   : > { %v1545_v7 = vpop.eup %1544 }
 0x4eb   : > { %v1090_v8 = vmul.f32 %v1545_v7, %v1537_v49 }
 0x4ed   : > { %v1091_v9 = vpack.c.bf16 %v1090_v8, %v1090_v8 }
 0x4ef   : > { %1473 = vmatmul.mubr.msk.bf16.vlgmr.msra.gmra.mrb[16].mxu1 %vm686_vm2, %v1091_v9 }
 0x58a   : > { %v797_v10 = vpop.f32.mrb[4].mxu1 }
 0x58b   : > { %v1438_v11 = vpop.f32.mrb[5].mxu1 }
 0x58c   : > { %v800_v12 = vpop.f32.mrb[6].mxu1 }
 0x58d   : > { %v1439_v13 = vpop.f32.mrb[7].mxu1 }
 0x592   : > { %v910_v15 = vpop.f32.mrb[8].mxu1 }
 0x593   : > { %1141 = vrot.lane.b32.xlu0 %v910_v15, %s1581_s22  ;;  %v1450_v16 = vpop.f32.mrb[9].mxu1  ;;  %s497_s22 = scalar_lea.vmem %s1839_s13, %s1675_s29 }
 0x594   : > { %v913_v18 = vpop.f32.mrb[10].mxu1 }
 0x595   : > { %v1451_v19 = vpop.f32.mrb[11].mxu1 }
 0x59a   : > { %v1022_v20 = vpop.f32.mrb[12].mxu1 }
 0x59b   : > { %1145 = vrot.lane.b32.xlu1 %v1022_v20, %s1582_s23  ;;  %v1462_v21 = vpop.f32.mrb[13].mxu1 }
 0x59c   : > { %v1025_v22 = vpop.f32.mrb[14].mxu1 }
 0x59d   : > { %v1463_v23 = vpop.f32.mrb[15].mxu1 }
 0x5c2   : > { %v1134_v25 = vpop.f32.mrb[16].mxu1 }
 0x5c3   : > { %1149 = vrot.lane.b32.xlu0 %v1134_v25, %s1583_s14  ;;  %v1474_v17 = vpop.f32.mrb[17].mxu1 }
 0x5c4   : > { %v1137_v26 = vpop.f32.mrb[18].mxu1 }
 0x5c5   : > { %v1475_v27 = vpop.f32.mrb[19].mxu1 }
 0x605   : > { %v1142_v28 = vpop.permute.xlu0 %1141 }
 0x606   : > { %v1152_v30 = vsel %vm686_vm2, %v797_v10, %v1142_v28 }
 0x60d   : > { %v1146_v29 = vpop.permute.xlu1 %1145 }
 0x60e   : > { %v1154_v31 = vsel %vm1153_vm4, %v1152_v30, %v1146_v29 }
 0x635   : > { %v1150_v32 = vpop.permute.xlu0 %1149 }
 0x636   : > { %v1156_v33 = vsel %vm1155_vm5, %v1154_v31, %v1150_v32 }
 0x637   : > { %v1157_v34 = vpack.c.bf16 %v1156_v33, %v1156_v33 }
 0x639   : > { %1481 = vmatmul.mubr.msk.bf16.vlgmr.msra.gmra.mrb[20].mxu0 %vm503_vm0, %v1157_v34 }
 0x70c   : > { %v1218_v36 = vpop.f32.mrb[20].mxu0 }
 0x70d   : > { %v1219_v38 = vadd.f32 %v1379_v35, %v1218_v36  ;;  %v1482_v39 = vpop.f32.mrb[21].mxu0 }
 0x70e   : > { %v1221_v40 = vpop.f32.mrb[22].mxu0 }
 0x70f   : > { %v1483_v41 = vpop.f32.mrb[23].mxu0  ;;  %v1224_v42 = vadd.f32 %v1219_v38, %v1718_v37  ;;  %v1383_v37 = vld [vmem:[%s1835_s9] ss:$0 sm:$0xff] }
 0x711   : > { %v1227_v43 = vsel %vm503_vm0, %v1224_v42, 0.0 }
 0x712   : > { %1228 = vadd.xlane.f32.xlu1 %v1227_v43 }
 0x79f   : > { %v1229_v44 = vpop.xlane.xlu1 %1228 }
 0x7a0   : > { %v1230_v46 = vmul.f32 0.03125, %v1229_v44 }
 0x7a2   : > { %v1231_v47 = vsub.f32 %v1224_v42, %v1230_v46 }
 0x7a4   : > { %v1232_v48 = vmul.f32 %v1231_v47, %v1231_v47 }
 0x7a6   : > { %v1233_v49 = vsel %vm503_vm0, %v1232_v48, 0.0 }
 0x7a7   : > { %1234 = vadd.xlane.f32.xlu0 %v1233_v49 }
 0x834   : > { %v1235_v50 = vpop.xlane.xlu0 %1234 }
 0x835   : > { %v1236_v51 = vmul.f32 0.03125, %v1235_v50 }
 0x837   : > { %v1237_v52 = vadd.f32 1e-06, %v1236_v51 }
 0x839   : > { %1546 = vrsqrt.f32 %v1237_v52 }
 0x843   : > { %v1547_v53 = vpop.eup %1546 }
 0x844   : > { %v1239_v54 = vmul.f32 %v1547_v53, %v1231_v47 }
 0x846   : > { %v1246_v56 = vmul.f32 %v1383_v37, %v1239_v54 }
 0x848   : > { %v1253_v57 = vadd.f32 %v1384_v55, %v1246_v56 }
 0x84a   : > { %v1254_v58 = vpack.c.bf16 %v1253_v57, %v1253_v57 }
 0x84c   : > { %1256 = vst.msk [vmem:[%s497_s22] sm:$0xf] %vm1255_vm6, %v1254_v58 }
 0x84d PF: > { %s23_s27 = sadd.s32 1, %s1570_s27   ;;  %s1840_s25 = smov %s1566_s26 }
 0x84e   : > { %p20_p5 = scmp.ge.s32.totalorder %s23_s27, 4   ;;  %s1841_s26 = smov %s1843_s28 }
 0x850   :  { %22 = sbr.rel (!%p20_p5) target bundleno = 2 (0x2), region = 108 }

// kernel: transform_sieve_jointer_hv.20
= control target key start
LH: loop header
LB: loop body
LE: loop exit
PB: predicated region body
PF: predicated region fallthrough
CT: control target
= control target key end

     0   :  { %s1601_s25 = smov 0   ;;  %s1603_s26 = smov 0   ;;  %s1762_s0 = inlined_call_operand.vmem [shape: bf16[2,8,32], index: 0, kind: input, shape index: {}, may-alias: {0,1}]   ;;  %s1763_s1 = inlined_call_operand.vmem [shape: bf16[2,8,32], index: 1, kind: input, shape index: {}, may-alias: {0,1}]   ;;  %s1764_s2 = inlined_call_operand.vmem [shape: f32[2,1,8], index: 2, kind: input, shape index: {}]   ;;  %s1765_s3 = inlined_call_operand.vmem [shape: bf16[32,32], index: 3, kind: input, shape index: {}]   ;;  %s1766_s4 = inlined_call_operand.vmem [shape: f32[1,32], index: 4, kind: input, shape index: {}]   ;;  %s1767_s5 = inlined_call_operand.vmem [shape: bf16[32,64], index: 5, kind: input, shape index: {}]   ;;  %s1768_s6 = inlined_call_operand.vmem [shape: f32[1,64], index: 6, kind: input, shape index: {}]   ;;  %s1769_s7 = inlined_call_operand.vmem [shape: bf16[32,32], index: 7, kind: input, shape index: {}]   ;;  %s1770_s8 = inlined_call_operand.vmem [shape: f32[1,32], index: 8, kind: input, shape index: {}]   ;;  %s1771_s9 = inlined_call_operand.vmem [shape: f32[1,32], index: 9, kind: input, shape index: {}]   ;;  %s1772_s10 = inlined_call_operand.vmem [shape: f32[1,32], index: 10, kind: input, shape index: {}]   ;;  %s1773_s11 = inlined_call_operand.vmem [shape: f32[1,32], index: 11, kind: input, shape index: {}]   ;;  %s1774_s12 = inlined_call_operand.vmem [shape: f32[1,32], index: 12, kind: input, shape index: {}]   ;;  %s1775_s13 = inlined_call_operand.vmem [shape: bf16[2,8,32], index: 13, kind: output, shape index: {}]  }
   0x1   :  { %s1605_s27 = smov 0  }
   0x2 LB: > { %s35_s11 = sadd.s32 1, %s1513_s26  ;;  %p1309_p0 = scmp.ge.s32.totalorder %s1517_s27, 1  ;;  %s1517_s27 = sphi %s1605_s27, %s23_s27   ;;  %s1513_s26 = sphi %s1603_s26, %s1777_s26   ;;  %s1509_s25 = sphi %s1601_s25, %s1776_s25  }
   0x3   : > { %p37_p1 = scmp.ge.s32.totalorder %s35_s11, 2  ;;  %p422_p2 = scmp.lt.s32.totalorder %s1517_s27, 3 }
   0x5   : > { %s1779_s11 = smov (%p37_p1, %s35_s11), 0  ;;  %p423_p3 = pnand %p1309_p0, %p422_p2 }
   0x6   : > { %v1471_v0 = vld [vmem:[%s1767_s5] sm:$0xff] (!%p423_p3)   ;;  %v1519_v1 = vmov (!%p423_p3), 0.0   ;;  %v1473_v3 = vld [vmem:[%s1767_s5 + $0x8] sm:$0xff] (!%p423_p3)   ;;  %vm1520_vm0 = vmmov (!%p423_p3), 0   ;;  %p477_p4 = scmp.lt.s32.totalorder (!%p423_p3), %s1509_s25, 1  ;;  %vm525_vm1 = vcmask (!%p423_p3), 261120  }
   0x7   : > { %426 = sbr.rel (%p423_p3) target bundleno = 1776 (0x6f0), region = 72  ;;  %1371 = vmatprep.subr.bf16.mxu1 (!%p423_p3), %v1519_v1  ;;  %1363 = vmatprep.subr.bf16.mxu0 (!%p423_p3), %v1519_v1  ;;  %v1472_v2 = vld [vmem:[%s1765_s3] sm:$0xff] (!%p423_p3)   ;;  %v1474_v4 = vld [vmem:[%s1765_s3 + $0x8] sm:$0xff] (!%p423_p3)   ;;  %vm638_vm2 = vcmask (!%p423_p3), 64512   ;;  %s1521_s14 = smov (!%p423_p3), 112   ;;  %vm711_vm3 = vcmask (!%p423_p3), 1043456  }
   0x8   : > { %1372 = vmatpush3.bf16.msra.mxu1 (!%p423_p3), %v1471_v0  ;;  %1375 = vmatprep.mubr.msk.bf16.mxu1 (!%p423_p3), %vm1520_vm0, %v1519_v1  ;;  %v1317_v7 = vld [vmem:[%s1768_s6] ss:$0 sm:$0xff] (!%p423_p3)  ;;  %s1522_s15 = smov (!%p423_p3), 120   ;;  %s1523_s16 = smov (!%p423_p3), 104   ;;  %vm1105_vm4 = vcmask (!%p423_p3), 130048   ;;  %vm1107_vm5 = vcmask (!%p423_p3), 195584  }
   0x9   : > { %1373 = vmatprep.subr.bf16.mxu1 (!%p423_p3), %v1519_v1  ;;  %1364 = vmatpush3.bf16.msra.mxu0 (!%p423_p3), %v1472_v2  ;;  %v1313_v8 = vld [vmem:[%s1766_s4] ss:$0 sm:$0xff] (!%p423_p3)  ;;  %s1526_s22 = smov (!%p423_p3), 72   ;;  %s1527_s23 = smov (!%p423_p3), 88   ;;  %vm1208_vm6 = vcmask (!%p423_p3), 257024  }
   0xa   : > { %1365 = vmatprep.subr.bf16.mxu0 (!%p423_p3), %v1519_v1  ;;  %1367 = vmatprep.mubr.msk.bf16.mxu0 (!%p423_p3), %vm1520_vm0, %v1519_v1  ;;  %s1528_s28 = smov (!%p423_p3), 8  }
   0xc   : > { %1374 = vmatpush3.bf16.msra.mxu1 (!%p423_p3), %v1473_v3 }
   0xd   : > { %1366 = vmatpush3.bf16.msra.mxu0 (!%p423_p3), %v1474_v4  ;;  %1385 = vmatprep.subr.bf16.mxu1 (!%p423_p3), %v1519_v1 }
   0xe   : > { %s1781_s25 = smov (!%p477_p4, %s1509_s25), 1  ;;  %1379 = vmatprep.subr.bf16.mxu0 %v1519_v1 }
   0xf   : > { %s1642_s18 = sshll.u32 %s1781_s25, 2  ;;  %s490_s20 = scalar_lea.vmem %s1764_s2, %s1781_s25 }
  0x10   : > { %s487_s21 = scalar_lea.vmem %s1763_s1, %s1642_s18  ;;  %s483_s24 = scalar_lea.vmem %s1762_s0, %s1642_s18  ;;  %v1322_v32 = vld [vmem:[%s490_s20] ss:$0 sm:$0xff] }
  0x11   : > { %v500_v5 = vld [vmem:[%s487_s21] sm:$0xf]  ;;  %s1524_s25 = smov 96   ;;  %s1525_s21 = smov 80  }
  0x12   : > { %1376 = vmatmul.mubr.msk.bf16.vlgmr.msra.gmra.mrb[0].mxu1 %vm525_vm1, %v500_v5  ;;  %v1655_v6 = vld [vmem:[%s483_s24] sm:$0xf]  ;;  %s497_s24 = scalar_lea.vmem %s1775_s13, %s1642_s18 }
  0x13   : > { %1368 = vmatmul.mubr.msk.bf16.vlgmr.msra.gmra.mrb[0].mxu0 %vm525_vm1, %v1655_v6  ;;  %1387 = vmatprep.mubr.msk.bf16.mxu1 %vm1520_vm0, %v1519_v1 }
  0x14   : > { %1381 = vmatprep.mubr.msk.bf16.mxu0 %vm1520_vm0, %v1519_v1 }
  0xe5   : > { %v629_v9 = vpop.f32.mrb[0].mxu1 }
  0xe6   : > { %v630_v10 = vadd.f32 %v1317_v7, %v629_v9  ;;  %v1377_v11 = vpop.f32.mrb[1].mxu1  ;;  %v563_v12 = vpop.f32.mrb[0].mxu0 }
  0xe7   : > { %v632_v13 = vpop.f32.mrb[2].mxu1  ;;  %v564_v14 = vadd.f32 %v1313_v8, %v563_v12  ;;  %v1369_v15 = vpop.f32.mrb[1].mxu0 }
  0xe8   : > { %v1669_v16 = vpack.c.bf16 %v630_v10, %v630_v10  ;;  %v1378_v17 = vpop.f32.mrb[3].mxu1  ;;  %v566_v18 = vpop.f32.mrb[2].mxu0 }
  0xe9   : > { %v1370_v19 = vpop.f32.mrb[3].mxu0  ;;  %v636_v20 = vpack.c.bf16 %v564_v14, %v564_v14 }
  0xea   : > { %870 = vrot.lane.b32.xlu1 %v1669_v16, %s1521_s14  ;;  %758 = vrot.lane.b32.xlu0 %v1669_v16, %s1522_s15  ;;  %v643_v21 = vsel %vm638_vm2, %v1669_v16, 0 }
  0xeb   : > { %1380 = vmatpush3.bf16.xpose.msra.mxu0 %v643_v21 }
  0xec   : > { %1391 = vmatprep.subr.bf16.mxu0 %v1519_v1 }
  0xee   : > { %868 = vrot.lane.b32.xlu1 %v636_v20, %s1521_s14  ;;  %756 = vrot.lane.b32.xlu0 %v636_v20, %s1522_s15  ;;  %s1529_s14 = smov 16   ;;  %s1530_s15 = smov 24  }
  0xf2   : > { %980 = vrot.lane.b32.xlu1 %v636_v20, %s1523_s16  ;;  %982 = vrot.lane.b32.xlu0 %v1669_v16, %s1523_s16 }
  0xf3   : > { %1382 = vmatmul.mubr.msk.bf16.vlgmr.msra.gmra.mrb[4].mxu0 %vm638_vm2, %v636_v20 }
  0xf4   : > { %1393 = vmatprep.mubr.msk.bf16.mxu0 %vm1520_vm0, %v1519_v1 }
 0x15c   : > { %v759_v22 = vpop.permute.xlu0 %758  ;;  %v871_v24 = vpop.permute.xlu1 %870 }
 0x15d   : > { %v764_v23 = vsel %vm638_vm2, %v759_v22, 0  ;;  %v876_v26 = vsel %vm638_vm2, %v871_v24, 0 }
 0x15e   : > { %1392 = vmatpush3.bf16.xpose.msra.mxu0 %v764_v23 }
 0x15f   : > { %1403 = vmatprep.subr.bf16.mxu0 %v1519_v1 }
 0x160   : > { %v757_v25 = vpop.permute.xlu0 %756  ;;  %v869_v28 = vpop.permute.xlu1 %868 }
 0x164   : > { %v983_v27 = vpop.permute.xlu0 %982  ;;  %v981_v30 = vpop.permute.xlu1 %980 }
 0x165   : > { %1394 = vmatmul.mubr.msk.bf16.vlgmr.msra.gmra.mrb[8].mxu0 %vm638_vm2, %v757_v25  ;;  %v988_v29 = vsel %vm638_vm2, %v983_v27, 0 }
 0x166   : > { %1404 = vmatpush3.bf16.xpose.msra.mxu0 %v876_v26  ;;  %1405 = vmatprep.mubr.msk.bf16.mxu0 %vm1520_vm0, %v1519_v1 }
 0x167   : > { %1415 = vmatprep.subr.bf16.mxu0 %v1519_v1 }
 0x16d   : > { %1406 = vmatmul.mubr.msk.bf16.vlgmr.msra.gmra.mrb[12].mxu0 %vm638_vm2, %v869_v28 }
 0x16e   : > { %1416 = vmatpush3.bf16.xpose.msra.mxu0 %v988_v29  ;;  %1417 = vmatprep.mubr.msk.bf16.mxu0 %vm1520_vm0, %v1519_v1 }
 0x16f   : > { %1427 = vmatprep.subr.bf16.mxu0 %v1519_v1 }
 0x175   : > { %1418 = vmatmul.mubr.msk.bf16.vlgmr.msra.gmra.mrb[16].mxu0 %vm638_vm2, %v981_v30 }
 0x176   : > { %1431 = vmatprep.mubr.msk.bf16.mxu0 %vm1520_vm0, %v1519_v1 }
 0x1c6   : > { %v679_v31 = vpop.f32.mrb[4].mxu0 }
 0x1c7   : > { %v685_v33 = vmul.f32 0.35355338, %v679_v31  ;;  %v1383_v34 = vpop.f32.mrb[5].mxu0 }
 0x1c8   : > { %v682_v35 = vpop.f32.mrb[6].mxu0 }
 0x1c9   : > { %v1384_v36 = vpop.f32.mrb[7].mxu0  ;;  %v692_v37 = vadd.f32 %v1322_v32, %v685_v33 }
 0x1cb   : > { %v693_v38 = vsel %vm638_vm2, %v692_v37, -inf }
 0x1cc   : > { %694 = vmax.xlane.f32.xlu0 %v693_v38 }
 0x238   : > { %v800_v39 = vpop.f32.mrb[8].mxu0 }
 0x239   : > { %v806_v40 = vmul.f32 0.35355338, %v800_v39  ;;  %v1395_v41 = vpop.f32.mrb[9].mxu0 }
 0x23a   : > { %v803_v42 = vpop.f32.mrb[10].mxu0 }
 0x23b   : > { %v1396_v43 = vpop.f32.mrb[11].mxu0  ;;  %v807_v44 = vadd.f32 %v1322_v32, %v806_v40 }
 0x23d   : > { %v808_v45 = vsel %vm638_vm2, %v807_v44, -inf }
 0x23e   : > { %809 = vmax.xlane.f32.xlu1 %v808_v45 }
 0x240   : > { %v912_v46 = vpop.f32.mrb[12].mxu0 }
 0x241   : > { %v918_v47 = vmul.f32 0.35355338, %v912_v46  ;;  %v1407_v48 = vpop.f32.mrb[13].mxu0  ;;  %v1475_v46 = vld [vmem:[%s1769_s7] sm:$0xff]  }
 0x242   : > { %v915_v49 = vpop.f32.mrb[14].mxu0  ;;  %1428 = vmatpush3.bf16.msra.mxu0 %v1475_v46 }
 0x243   : > { %v1408_v50 = vpop.f32.mrb[15].mxu0  ;;  %v919_v51 = vadd.f32 %v1322_v32, %v918_v47  ;;  %1429 = vmatprep.subr.bf16.mxu0 %v1519_v1 }
 0x245   : > { %v920_v52 = vsel %vm638_vm2, %v919_v51, -inf }
 0x246   : > { %921 = vmax.xlane.f32.xlu0 %v920_v52 }
 0x248   : > { %v1024_v53 = vpop.f32.mrb[16].mxu0 }
 0x249   : > { %v1030_v54 = vmul.f32 0.35355338, %v1024_v53  ;;  %v1419_v55 = vpop.f32.mrb[17].mxu0 }
 0x24a   : > { %v1027_v56 = vpop.f32.mrb[18].mxu0 }
 0x24b   : > { %v1420_v57 = vpop.f32.mrb[19].mxu0  ;;  %v1031_v58 = vadd.f32 %v1322_v32, %v1030_v54 }
 0x24d   : > { %v1032_v59 = vsel %vm638_vm2, %v1031_v58, -inf }
 0x24e   : > { %1033 = vmax.xlane.f32.xlu0 %v1032_v59 }
 0x259   : > { %v695_v60 = vpop.xlane.xlu0 %694 }
 0x25a   : > { %v696_v61 = vsub.f32 %v692_v37, %v695_v60 }
 0x25c   : > { %v697_v62 = vmul.f32 1.442695, %v696_v61 }
 0x25e   : > { %1477 = vpow2.f32 %v697_v62 }
 0x268   : > { %v1478_v63 = vpop.eup %1477 }
 0x269   : > { %v699_v0 = vsel %vm638_vm2, %v1478_v63, 0.0 }
 0x26a   : > { %700 = vadd.xlane.f32.xlu1 %v699_v0 }
 0x27b   : > { %706 = vrot.lane.b32.xlu1 %v1669_v16, %s1524_s25 }
 0x2cb   : > { %v810_v2 = vpop.xlane.xlu1 %809 }
 0x2cc   : > { %v811_v3 = vsub.f32 %v807_v44, %v810_v2 }
 0x2ce   : > { %v812_v4 = vmul.f32 1.442695, %v811_v3  ;;  %v1330_v3 = vld [vmem:[%s1770_s8] ss:$0 sm:$0xff] }
 0x2d0   : > { %1479 = vpow2.f32 %v812_v4  ;;  %v501_v4 = vunpack.c.l.bf16 %v1655_v6 }
 0x2d3   : > { %v922_v5 = vpop.xlane.xlu0 %921 }
 0x2d4   : > { %v923_v7 = vsub.f32 %v919_v51, %v922_v5  ;;  %v1476_v51 = vld [vmem:[%s1769_s7 + $0x8] sm:$0xff]  }
 0x2d5   : > { %1430 = vmatpush3.bf16.msra.mxu0 %v1476_v51 }
 0x2d6   : > { %v924_v8 = vmul.f32 1.442695, %v923_v7 }
 0x2d8   : > { %1481 = vpow2.f32 %v924_v8 }
 0x2da   : > { %v1480_v9 = vpop.eup %1479 }
 0x2db   : > { %v1034_v10 = vpop.xlane.xlu0 %1033  ;;  %v814_v11 = vsel %vm638_vm2, %v1480_v9, 0.0 }
 0x2dc   : > { %v1035_v12 = vsub.f32 %v1031_v58, %v1034_v10  ;;  %815 = vadd.xlane.f32.xlu0 %v814_v11 }
 0x2de   : > { %v1036_v13 = vmul.f32 1.442695, %v1035_v12 }
 0x2e0   : > { %1483 = vpow2.f32 %v1036_v13 }
 0x2e2   : > { %v1482_v14 = vpop.eup %1481 }
 0x2e3   : > { %v926_v15 = vsel %vm638_vm2, %v1482_v14, 0.0 }
 0x2e4   : > { %927 = vadd.xlane.f32.xlu1 %v926_v15 }
 0x2ea   : > { %v1484_v17 = vpop.eup %1483 }
 0x2eb   : > { %v1038_v18 = vsel %vm638_vm2, %v1484_v17, 0.0 }
 0x2ec   : > { %1039 = vadd.xlane.f32.xlu0 %v1038_v18 }
 0x2f5   : > { %932 = vrot.lane.b32.xlu1 %v1669_v16, %s1525_s21 }
 0x2f7   : > { %v701_v19 = vpop.xlane.xlu1 %700 }
 0x2f8   : > { %1485 = vrcp.f32 %v701_v19 }
 0x2f9   : > { %1044 = vrot.lane.b32.xlu1 %v1669_v16, %s1526_s22 }
 0x2fb   : > { %v707_v20 = vpop.permute.xlu1 %706 }
 0x2fc   : > { %v713_v21 = vsel %vm711_vm3, %v707_v20, 0 }
 0x2fd   : > { %1386 = vmatpush3.bf16.msra.mxu1 %v713_v21 }
 0x2fe   : > { %1397 = vmatprep.subr.bf16.mxu1 %v1519_v1 }
 0x302   : > { %v1486_v22 = vpop.eup %1485  ;;  %820 = vrot.lane.b32.xlu0 %v1669_v16, %s1527_s23 }
 0x303   : > { %v703_v23 = vmul.f32 %v1486_v22, %v1478_v63  ;;  %v1334_v22 = vld [vmem:[%s1771_s9] ss:$0 sm:$0xff] }
 0x305   : > { %v704_v24 = vpack.c.bf16 %v703_v23, %v703_v23 }
 0x307   : > { %1388 = vmatmul.mubr.msk.bf16.vlgmr.msra.gmra.mrb[4].mxu1 %vm638_vm2, %v704_v24  ;;  %v1335_v24 = vld [vmem:[%s1772_s10] ss:$0 sm:$0xff] }
 0x308   : > { %1399 = vmatprep.mubr.msk.bf16.mxu1 %vm1520_vm0, %v1519_v1 }
 0x369   : > { %v816_v25 = vpop.xlane.xlu0 %815 }
 0x36a   : > { %1487 = vrcp.f32 %v816_v25 }
 0x371   : > { %v928_v26 = vpop.xlane.xlu1 %927 }
 0x372   : > { %1489 = vrcp.f32 %v928_v26 }
 0x374   : > { %v1488_v27 = vpop.eup %1487 }
 0x375   : > { %v818_v29 = vmul.f32 %v1488_v27, %v1480_v9  ;;  %v933_v32 = vpop.permute.xlu1 %932 }
 0x376   : > { %v938_v34 = vsel %vm711_vm3, %v933_v32, 0 }
 0x377   : > { %v819_v16 = vpack.c.bf16 %v818_v29, %v818_v29 }
 0x379   : > { %v1040_v28 = vpop.xlane.xlu0 %1039  ;;  %v1045_v36 = vpop.permute.xlu1 %1044 }
 0x37a   : > { %1491 = vrcp.f32 %v1040_v28  ;;  %v1050_v39 = vsel %vm711_vm3, %v1045_v36, 0 }
 0x37c   : > { %v1490_v33 = vpop.eup %1489 }
 0x37d   : > { %v821_v30 = vpop.permute.xlu0 %820  ;;  %v930_v35 = vmul.f32 %v1490_v33, %v1482_v14 }
 0x37e   : > { %v826_v31 = vsel %vm711_vm3, %v821_v30, 0 }
 0x37f   : > { %1398 = vmatpush3.bf16.msra.mxu1 %v826_v31  ;;  %v931_v37 = vpack.c.bf16 %v930_v35, %v930_v35 }
 0x380   : > { %1409 = vmatprep.subr.bf16.mxu1 %v1519_v1 }
 0x382   : > { %1400 = vmatmul.mubr.msk.bf16.vlgmr.msra.gmra.mrb[8].mxu1 %vm638_vm2, %v819_v16 }
 0x383   : > { %1410 = vmatpush3.bf16.msra.mxu1 %v938_v34  ;;  %1411 = vmatprep.mubr.msk.bf16.mxu1 %vm1520_vm0, %v1519_v1 }
 0x384   : > { %1421 = vmatprep.subr.bf16.mxu1 %v1519_v1  ;;  %v1492_v38 = vpop.eup %1491 }
 0x385   : > { %v1042_v40 = vmul.f32 %v1492_v38, %v1484_v17 }
 0x387   : > { %v1043_v41 = vpack.c.bf16 %v1042_v40, %v1042_v40 }
 0x38a   : > { %1412 = vmatmul.mubr.msk.bf16.vlgmr.msra.gmra.mrb[12].mxu1 %vm638_vm2, %v931_v37 }
 0x38b   : > { %1422 = vmatpush3.bf16.msra.mxu1 %v1050_v39  ;;  %1423 = vmatprep.mubr.msk.bf16.mxu1 %vm1520_vm0, %v1519_v1 }
 0x392   : > { %1424 = vmatmul.mubr.msk.bf16.vlgmr.msra.gmra.mrb[16].mxu1 %vm638_vm2, %v1043_v41 }
 0x3da   : > { %v749_v42 = vpop.f32.mrb[4].mxu1 }
 0x3db   : > { %v1389_v43 = vpop.f32.mrb[5].mxu1 }
 0x3dc   : > { %v752_v44 = vpop.f32.mrb[6].mxu1 }
 0x3dd   : > { %v1390_v45 = vpop.f32.mrb[7].mxu1 }
 0x455   : > { %v862_v47 = vpop.f32.mrb[8].mxu1 }
 0x456   : > { %1093 = vrot.lane.b32.xlu0 %v862_v47, %s1528_s28  ;;  %v1401_v48 = vpop.f32.mrb[9].mxu1 }
 0x457   : > { %v865_v49 = vpop.f32.mrb[10].mxu1 }
 0x458   : > { %v1402_v50 = vpop.f32.mrb[11].mxu1 }
 0x45d   : > { %v974_v52 = vpop.f32.mrb[12].mxu1 }
 0x45e   : > { %1097 = vrot.lane.b32.xlu1 %v974_v52, %s1529_s14  ;;  %v1413_v53 = vpop.f32.mrb[13].mxu1 }
 0x45f   : > { %v977_v54 = vpop.f32.mrb[14].mxu1 }
 0x460   : > { %v1414_v55 = vpop.f32.mrb[15].mxu1 }
 0x465   : > { %v1086_v56 = vpop.f32.mrb[16].mxu1 }
 0x466   : > { %1101 = vrot.lane.b32.xlu0 %v1086_v56, %s1530_s15  ;;  %v1425_v1 = vpop.f32.mrb[17].mxu1 }
 0x467   : > { %v1089_v57 = vpop.f32.mrb[18].mxu1 }
 0x468   : > { %v1426_v58 = vpop.f32.mrb[19].mxu1 }
 0x4c8   : > { %v1094_v59 = vpop.permute.xlu0 %1093 }
 0x4c9   : > { %v1104_v61 = vsel %vm638_vm2, %v749_v42, %v1094_v59 }
 0x4d0   : > { %v1098_v60 = vpop.permute.xlu1 %1097 }
 0x4d1   : > { %v1106_v62 = vsel %vm1105_vm4, %v1104_v61, %v1098_v60 }
 0x4d8   : > { %v1102_v63 = vpop.permute.xlu0 %1101 }
 0x4d9   : > { %v1108_v0 = vsel %vm1107_vm5, %v1106_v62, %v1102_v63 }
 0x4da   : > { %v1109_v2 = vpack.c.bf16 %v1108_v0, %v1108_v0 }
 0x4dc   : > { %1432 = vmatmul.mubr.msk.bf16.vlgmr.msra.gmra.mrb[20].mxu0 %vm525_vm1, %v1109_v2 }
 0x5af   : > { %v1170_v5 = vpop.f32.mrb[20].mxu0 }
 0x5b0   : > { %v1171_v7 = vadd.f32 %v1330_v3, %v1170_v5  ;;  %v1433_v8 = vpop.f32.mrb[21].mxu0 }
 0x5b1   : > { %v1173_v9 = vpop.f32.mrb[22].mxu0 }
 0x5b2   : > { %v1434_v10 = vpop.f32.mrb[23].mxu0  ;;  %v1176_v11 = vadd.f32 %v1171_v7, %v501_v4 }
 0x5b4   : > { %v1179_v12 = vsel %vm525_vm1, %v1176_v11, 0.0 }
 0x5b5   : > { %1180 = vadd.xlane.f32.xlu1 %v1179_v12 }
 0x642   : > { %v1181_v13 = vpop.xlane.xlu1 %1180 }
 0x643   : > { %v1183_v14 = vmul.f32 0.03125, %v1181_v13 }
 0x645   : > { %v1184_v15 = vsub.f32 %v1176_v11, %v1183_v14 }
 0x647   : > { %v1185_v17 = vmul.f32 %v1184_v15, %v1184_v15 }
 0x649   : > { %v1186_v18 = vsel %vm525_vm1, %v1185_v17, 0.0 }
 0x64a   : > { %1187 = vadd.xlane.f32.xlu0 %v1186_v18 }
 0x6d7   : > { %v1188_v19 = vpop.xlane.xlu0 %1187 }
 0x6d8   : > { %v1189_v20 = vmul.f32 0.03125, %v1188_v19 }
 0x6da   : > { %v1190_v6 = vadd.f32 1e-06, %v1189_v20 }
 0x6dc   : > { %1493 = vrsqrt.f32 %v1190_v6 }
 0x6e6   : > { %v1494_v21 = vpop.eup %1493 }
 0x6e7   : > { %v1192_v23 = vmul.f32 %v1494_v21, %v1184_v15 }
 0x6e9   : > { %v1199_v25 = vmul.f32 %v1334_v22, %v1192_v23 }
 0x6eb   : > { %v1206_v26 = vadd.f32 %v1335_v24, %v1199_v25 }
 0x6ed   : > { %v1207_v27 = vpack.c.bf16 %v1206_v26, %v1206_v26 }
 0x6ef   : > { %1209 = vst.msk [vmem:[%s497_s24] sm:$0xf] %vm1208_vm6, %v1207_v27 }
 0x6f0 PF: > { %s23_s27 = sadd.s32 1, %s1517_s27   ;;  %s1776_s25 = smov %s1513_s26 }
 0x6f1   : > { %p20_p5 = scmp.ge.s32.totalorder %s23_s27, 4   ;;  %s1777_s26 = smov %s1779_s11 }
 0x6f3   :  { %22 = sbr.rel (!%p20_p5) target bundleno = 2 (0x2), region = 108 }

// kernel: transform_sieve_jointer_hv.29
= control target key start
LH: loop header
LB: loop body
LE: loop exit
PB: predicated region body
PF: predicated region fallthrough
CT: control target
= control target key end

     0   :  { %9 = vsyncpa [#allocation3], 0  ;;  %s807_s0 = inlined_call_operand.vmem [shape: bf16[2,8,32], index: 0, kind: input, shape index: {}, may-alias: {0,1}]   ;;  %s808_s1 = inlined_call_operand.vmem [shape: bf16[2,8,32], index: 1, kind: input, shape index: {}, may-alias: {0,1}]   ;;  %s809_s2 = inlined_call_operand.vmem [shape: f32[2,8,1], index: 2, kind: input, shape index: {}]   ;;  %s810_s3 = inlined_call_operand.vmem [shape: f32[2,1,8], index: 3, kind: input, shape index: {}]   ;;  %s811_s4 = inlined_call_operand.hbm [shape: f32[2,8,8], index: 4, kind: output, shape index: {}]  }
   0x1   :  { %11 = vsyncpa [#allocation3 + $0x1], 0  ;;  %s681_s15 = smov 0   ;;  %s683_s16 = smov 0  }
   0x2   :  { %s685_s17 = smov 0   ;;  %s687_s18 = smov 0  }
   0x3   :  { %s689_s19 = smov 0   ;;  %s691_s20 = smov 0  }
   0x4 LB: > { %s484_s21 = sadd.s32 4294967295, %s650_s20   ;;  %s485_s22 = sadd.s32 4294967294, %s650_s20   ;;  %s650_s20 = sphi %s691_s20, %s17_s20   ;;  %s646_s19 = sphi %s689_s19, %s818_s19   ;;  %s642_s18 = sphi %s687_s18, %s817_s18   ;;  %s638_s17 = sphi %s685_s17, %s816_s17   ;;  %s634_s16 = sphi %s683_s16, %s815_s16   ;;  %s630_s15 = sphi %s681_s15, %s814_s15  }
   0x5   : > { %s29_s23 = sadd.s32 1, %s646_s19  ;;  %s146_s24 = sadd.s32 1, %s638_s17 }
   0x6   : > { %p31_p0 = scmp.ge.s32.totalorder %s29_s23, 2  ;;  %p156_p1 = scmp.ne.s32.totalorder %s638_s17, %s634_s16 }
   0x7   : > { %p157_p2 = scmp.eq.s32.totalorder %s484_s21, 1  ;;  %p162_p3 = scmp.ne.s32.totalorder %s634_s16, %s630_s15 }
   0x8   : > { %s820_s23 = smov (%p31_p0, %s29_s23), 0  ;;  %p163_p5 = scmp.eq.s32.totalorder %s485_s22, 1 }
   0x9   : > { %p721_p4 = por %p157_p2, %p156_p1  ;;  %s141_s26 = ssub.s32 %s646_s19, %s820_s23 }
   0xa   : > { %p488_p6 = scmp.ge.s32.totalorder %s650_s20, 1  ;;  %p144_p7 = scmp.eq.s32.totalorder %s141_s26, 0 }
   0xb   : > { %p728_p8 = por %p163_p5, %p162_p3  ;;  %p214_p9 = scmp.lt.s32.totalorder %s650_s20, 3 }
   0xc   : > { %s734_s28 = scalar_select %p144_p7, %s638_s17, %s146_s24  }
   0xd   : > { %p215_p10 = pnand %p488_p6, %p214_p9 }
   0xe   : > { %p256_p11 = scmp.lt.s32.totalorder (!%p215_p10), %s642_s18, 1  ;;  %v652_v0 = vmov (!%p215_p10), 0.0   ;;  %vm653_vm0 = vmmov (!%p215_p10), 0   ;;  %v654_v1 = vmov (!%p215_p10), 0   ;;  %vm280_vm1 = vcmask (!%p215_p10), 261120   ;;  %s253_s26 = sand.u32 (!%p215_p10), 1, %s634_s16  }
   0xf   : > { %218 = sbr.rel (%p215_p10) target bundleno = 291 (0x123), region = 36  ;;  %503 = vmatprep.subr.bf16.mxu0 (!%p215_p10), %v652_v0  ;;  %505 = vmatprep.mubr.msk.bf16.mxu0 (!%p215_p10), %vm653_vm0, %v652_v0  ;;  %v348_v12 = vlaneseq (!%p215_p10)  ;;  %vm360_vm3 = vcmask (!%p215_p10), 64512   ;;  %s363_s10 = scalar_lea.sflag (!%p215_p10), [#allocation3], %s253_s26 }
  0x10   : > { %567 = vset.pattern.permute.xlu0 (!%p215_p10), %v654_v1 }
  0x11   : > { %v349_v14 = vshrl.u32 (!%p215_p10), %v348_v12, 7  ;;  %v354_v15 = vand.u32 (!%p215_p10), 127, %v348_v12 }
  0x13   : > { %vm355_vm2 = vcmp.gt.s32.totalorder (!%p215_p10), %v354_v15, %v349_v14 }
  0x14   : > { %v496_v20 = vsel (!%p215_p10), %vm355_vm2, 1.0, %v652_v0 }
  0x16   : > { %s738_s29 = scalar_select %p256_p11, %s642_s18, 1 }
  0x18   : > { %s490_s30 = sshll.u32 %s738_s29, 2  ;;  %s492_s5 = sshll.u32 %s738_s29, 3 }
  0x19   : > { %s266_s8 = scalar_lea.vmem %s808_s1, %s490_s30  ;;  %s273_s11 = scalar_lea.vmem %s809_s2, %s492_s5 }
  0x1a   : > { %v279_v2 = vld [vmem:[%s266_s8] sm:$0xf]  ;;  %s262_s14 = scalar_lea.vmem %s807_s0, %s490_s30  ;;  %s276_s24 = scalar_lea.vmem %s810_s3, %s738_s29 }
  0x1b   : > { %v285_v3 = vsel %vm280_vm1, %v279_v2, 0  ;;  %v334_v4 = vld [vmem:[%s273_s11] sm:$0xff]  ;;  %s489_s30 = sshll.u32 %s253_s26, 3  ;;  %s498_s5 = sshll.u32 %s642_s18, 7 }
  0x1c   : > { %504 = vmatpush3.bf16.xpose.msra.mxu0 %v285_v3  ;;  %338 = vperm.xlu0 %567, %v334_v4   ;;  %v278_v5 = vld [vmem:[%s262_s14] sm:$0xf]  ;;  %s255_s6 = scalar_lea.vmem [#allocation2], %s489_s30  ;;  %s760_s9 = scalar_lea.hbm %s811_s4, %s498_s5 }
  0x1d   : > { %v495_v17 = vld [vmem:[%s276_s24] ss:$0 sm:$0xff]  ;;  %s377_s7 = sshll.u32 %s255_s6, 4  ;;  %s655_s18 = smov [#allocation2]   ;;  %s762_s7 = int_to_ptr.vmem [resolvable:$true] %s377_s7 }
  0x1e   : > { %s572_s11 = scalar_lea.vmem %s762_s7, 128  ;;  %s576_s12 = sshll.u32 %s655_s18, 4  ;;  %s577_s12 = int_to_ptr.vmem [resolvable:$false] %s576_s12 }
  0x1f   : > { %p573_p12 = scmp.ne.s32.totalorder %s762_s7, %s572_s11  ;;  %s578_s13 = scalar_lea.vmem %s577_s12, 256 }
  0x20   : > { %p579_p1 = scmp.lt.s32.totalorder %s762_s7, %s577_s12  ;;  %p580_p2 = scmp.lt.s32.totalorder %s578_s13, %s572_s11 }
  0x21   : > { %p574_p13 = pnand %p573_p12, %p721_p4 }
  0x22   : > { %p581_p3 = por %p580_p2, %p579_p1 }
  0x23   : > { %506 = vmatmul.mubr.msk.bf16.vlgmr.msra.gmra.mrb[0].mxu0 %vm280_vm1, %v278_v5  ;;  %p575_p0 = pneg %p574_p13 }
  0x25   : > { %p582_p5 = pnand %p581_p3, %p575_p0 }
  0x9b   : > { %v339_v18 = vpop.permute.xlu0 %338 }
  0x9c   : > { %v347_v19 = vmul.f32 %v495_v17, %v339_v18 }
  0x9e   : > { %v358_v21 = vmul.f32 %v496_v20, %v347_v19 }
  0xf6   : > { %v321_v6 = vpop.f32.mrb[0].mxu0 }
  0xf7   : > { %v494_v7 = vmul.f32 -0.17677669, %v321_v6  ;;  %v507_v8 = vpop.f32.mrb[1].mxu0 }
  0xf8   : > { %v324_v9 = vpop.f32.mrb[2].mxu0 }
  0xf9   : > { %v329_v10 = vmul.f32 1.442695, %v494_v7  ;;  %v508_v11 = vpop.f32.mrb[3].mxu0 }
  0xfb   : > { %568 = vpow2.f32 %v329_v10 }
 0x105   : > { %v569_v13 = vpop.eup %568 }
 0x106   : > { %v331_v16 = vadd.f32 1.0, %v569_v13 }
 0x108   : > { %570 = vrcp.f32 %v331_v16 }
 0x112   : > { %v571_v22 = vpop.eup %570 }
 0x113   : > { %v359_v23 = vmul.f32 %v571_v22, %v358_v21 }
 0x115   : > { %361 = vst.msk [vmem:[%s255_s6] sm:$0xff] %vm360_vm3, %v359_v23 }
 0x116   : > { %585 = shalt.err (!%p582_p5)
}
 0x117   : > { %s586_s14 = scalar_lea.hbm %s760_s9, 128  ;;  %s590_s24 = scalar_lea.hbm %s811_s4, 256 }
 0x118   : > { %p587_p6 = scmp.ne.s32.totalorder %s760_s9, %s586_s14  ;;  %p591_p10 = scmp.lt.u32.totalorder %s760_s9, %s811_s4 }
 0x119   : > { %p592_p11 = scmp.lt.u32.totalorder %s590_s24, %s586_s14  ;;  %p594_p13 = scmp.lt.u32.totalorder %s586_s14, %s760_s9 }
 0x11a   : > { %p588_p7 = pnand %p587_p6, %p721_p4 }
 0x11b   : > { %p593_p12 = por %p592_p11, %p591_p10 }
 0x11c   : > { %p589_p9 = pneg %p588_p7 }
 0x11d   : > { %p595_p0 = por %p594_p13, %p593_p12 }
 0x11f   : > { %p596_p1 = pnand %p595_p0, %p589_p9 }
 0x121   : > { %599 = shalt.err (!%p596_p1)
}
 0x122   : > { %509 = dma.vmem_to_hbm [thread:$0]  (%p721_p4), %s762_s7, 128, %s760_s9, %s363_s10  }
 0x123 PF: > { %p515_p2 = scmp.ge.s32.totalorder %s650_s20, 2  ;;  %s389_s5 = sand.u32 1, %s630_s15  }
 0x124   : > { %s390_s6 = scalar_lea.sflag [#allocation3], %s389_s5 }
 0x125   : > { %p512_p3 = pnand %p515_p2, %p728_p8 }
 0x127   : > { %625 = dma.done.wait (!%p512_p3), %s390_s6, 128  }
 0x128   : > { %627 = vsyncadd (!%p512_p3), %s390_s6, 4294967168  ;;  %s17_s20 = sadd.s32 1, %s650_s20   ;;  %s814_s15 = smov %s634_s16 }
 0x129   : > { %p14_p5 = scmp.ge.s32.totalorder %s17_s20, 4   ;;  %s815_s16 = smov %s638_s17 }
 0x12a   : > { %s816_s17 = smov %s734_s28  ;;  %s817_s18 = smov %s646_s19 }
 0x12b   : > { %s818_s19 = smov %s820_s23  ;;  %16 = sbr.rel (!%p14_p5) target bundleno = 4 (0x4), region = 80 }
 0x132   :  { %395 = vsyncpa [#allocation3], 1 }
 0x133   :  { %397 = vsyncpa [#allocation3 + $0x1], 1 }

</bundles_post_ra>
